<compile_context>
chip_gen: v6e
topology: v6e:2x2x1
jax: 0.10.0
libtpu: 0.0.40
codegen_flags: <defaults>
</compile_context>

<pallas_src>
import jax
import jax.numpy as jnp
from jax.experimental import pallas as pl
from jax.experimental.pallas import tpu as pltpu

# ---- model hyper-parameters (consistent with the PyTorch module) ------------
SEQUENCE_LENGTH = 28          # hard-coded in the PyTorch module (fc in_features)
INPUT_SIZE = 16
HIDDEN_SIZE = 32
NUM_LAYERS = 2
NUM_CLASSES = 10
BATCH = 2


def make_rnn_kernel(num_layers, Bp, T, I, H, C):
    """Builds the Pallas kernel body for the whole forward pass.

    Kernel refs (all VMEM-resident):
      x_flat (T*Bp, I); per layer: w_ih_t (in,H), w_hh_t (H,H), b (1,H);
      fc_w_t (T*H, C); fc_b (1,C); out (Bp, C);
      scratch: pre (T*Bp, H), seq (T*Bp, H).
    """
    f32 = jnp.float32

    def kernel(*refs):
        x_ref = refs[0]
        idx = 1
        layers = []
        for _ in range(num_layers):
            layers.append(refs[idx:idx + 3])
            idx += 3
        fc_w_ref = refs[idx]
        fc_b_ref = refs[idx + 1]
        out_ref = refs[idx + 2]
        pre_ref = refs[idx + 3]          # VMEM scratch: precomputed input projection
        seq_ref = refs[idx + 4]          # VMEM scratch: per-step outputs (generic path)

        def fc_block(t):                 # static row-slice of the FC weight for step t
            return fc_w_ref[pl.ds(t * H, H), :]

        # ---- layer 0 input projection, hoisted off the recurrence -----------
        w_ih0, w_hh0, b0 = layers[0]
        pre_ref[...] = (jnp.dot(x_ref[...], w_ih0[...],
                                preferred_element_type=f32) + b0[...])

        if num_layers == 2:
            # ---- fused, 1-step-skewed recurrence over both layers + FC ------
            w_ih1, w_hh1, b1 = layers[1]
            w_hh0v = w_hh0[...]                        # hoisted weight loads
            w_ih1v = w_ih1[...]
            w_hh1v = w_hh1[...]
            b1v = jnp.broadcast_to(b1[...], (Bp, H))   # hoisted broadcast

            # prologue: h0 at t=0 (h1 not yet active); logits starts at fc bias
            h0 = jnp.tanh(pre_ref[pl.ds(0, Bp), :])
            h1 = jnp.zeros((Bp, H), f32)
            logits = jnp.broadcast_to(fc_b_ref[...], (Bp, C))

            # fused steps s=1..T-1: layer0 -> h0_s, layer1 -> h1_{s-1} (+FC)
            for s in range(1, T):                      # static, fully unrolled
                h0_new = jnp.tanh(
                    pre_ref[pl.ds(s * Bp, Bp), :]
                    + jnp.dot(h0, w_hh0v, preferred_element_type=f32))
                h1_new = jnp.tanh(
                    jnp.dot(h0, w_ih1v, preferred_element_type=f32)
                    + jnp.dot(h1, w_hh1v, preferred_element_type=f32)
                    + b1v)
                logits = logits + jnp.dot(h1_new, fc_block(s - 1),
                                          preferred_element_type=f32)
                h0, h1 = h0_new, h1_new

            # epilogue: last layer-1 step (t = T-1)
            h1_last = jnp.tanh(
                jnp.dot(h0, w_ih1v, preferred_element_type=f32)
                + jnp.dot(h1, w_hh1v, preferred_element_type=f32)
                + b1v)
            logits = logits + jnp.dot(h1_last, fc_block(T - 1),
                                      preferred_element_type=f32)

            out_ref[...] = logits
        else:
            # ---- generic path: layers sequential, projection hoisted, FC ----
            # folded into the last layer's loop.
            for l in range(num_layers):
                w_ih, w_hh, b = layers[l]
                if l > 0:
                    # one-shot projection of the previous layer's full sequence
                    pre_ref[...] = (jnp.dot(seq_ref[...], w_ih[...],
                                            preferred_element_type=f32) + b[...])
                w_hhv = w_hh[...]
                last = (l == num_layers - 1)
                h = jnp.zeros((Bp, H), f32)
                logits = jnp.broadcast_to(fc_b_ref[...], (Bp, C))
                for t in range(T):                     # static, fully unrolled
                    h = jnp.tanh(pre_ref[pl.ds(t * Bp, Bp), :]
                                 + jnp.dot(h, w_hhv, preferred_element_type=f32))
                    if last:
                        logits = logits + jnp.dot(h, fc_block(t),
                                                  preferred_element_type=f32)
                    else:
                        seq_ref[pl.ds(t * Bp, Bp), :] = h
                if last:
                    out_ref[...] = logits

    return kernel


def rnn_forward(x, layer_params, fc_w_t, fc_b):
    """x: (B, T, I) float32, batch_first like the PyTorch module."""
    B, T, I = x.shape
    H = layer_params[0][1].shape[0]
    C = fc_w_t.shape[1]
    Bp = ((B + 7) // 8) * 8                              # pad batch to sublane tile

    x_tbi = jnp.transpose(x, (1, 0, 2))                  # (T, B, I) time-major
    x_pad = jnp.pad(x_tbi, ((0, 0), (0, Bp - B), (0, 0)))
    x_flat = x_pad.reshape(T * Bp, I)                    # (T*Bp, I)

    inputs = [x_flat]
    for (w_ih_t, w_hh_t, b) in layer_params:
        inputs += [w_ih_t, w_hh_t, b.reshape(1, H)]
    inputs += [fc_w_t, fc_b.reshape(1, C)]

    vmem_spec = pl.BlockSpec(memory_space=pltpu.MemorySpace.VMEM)
    kernel = make_rnn_kernel(len(layer_params), Bp, T, I, H, C)

    out_pad = pl.pallas_call(
        kernel,
        out_shape=jax.ShapeDtypeStruct((Bp, C), jnp.float32),
        in_specs=[vmem_spec] * len(inputs),
        out_specs=vmem_spec,
        scratch_shapes=[pltpu.VMEM((T * Bp, H), jnp.float32),   # pre (input proj)
                        pltpu.VMEM((T * Bp, H), jnp.float32)],  # seq (generic path)
        compiler_params=pltpu.CompilerParams(vmem_limit_bytes=32 * 1024 * 1024),
    )(*inputs)
    return out_pad[:B]


def rnn_reference(x, layer_params, fc_w_t, fc_b):
    """Pure-JAX reference mirroring nn.RNN(tanh, batch_first) + Linear."""
    B, T, _ = x.shape
    H = layer_params[0][1].shape[0]
    seq = x
    for (w_ih_t, w_hh_t, b) in layer_params:
        h = jnp.zeros((B, H), jnp.float32)
        outs = []
        for t in range(T):
            h = jnp.tanh(seq[:, t] @ w_ih_t + h @ w_hh_t + b)
            outs.append(h)
        seq = jnp.stack(outs, axis=1)                    # (B, T, H)
    flat = seq.reshape(B, -1)                            # (B, T*H)
    return flat @ fc_w_t + fc_b


def init_params(key):
    """Deterministic init mimicking PyTorch's uniform(-1/sqrt(fan), 1/sqrt(fan))."""
    params = []
    k_rnn = 1.0 / jnp.sqrt(HIDDEN_SIZE)
    for l in range(NUM_LAYERS):
        in_dim = INPUT_SIZE if l == 0 else HIDDEN_SIZE
        key, k1, k2, k3, k4 = jax.random.split(key, 5)
        w_ih = jax.random.uniform(k1, (HIDDEN_SIZE, in_dim), jnp.float32, -k_rnn, k_rnn)
        w_hh = jax.random.uniform(k2, (HIDDEN_SIZE, HIDDEN_SIZE), jnp.float32, -k_rnn, k_rnn)
        b_ih = jax.random.uniform(k3, (HIDDEN_SIZE,), jnp.float32, -k_rnn, k_rnn)
        b_hh = jax.random.uniform(k4, (HIDDEN_SIZE,), jnp.float32, -k_rnn, k_rnn)
        # kernel takes transposed weights and the summed bias (identical math)
        params.append((w_ih.T, w_hh.T, b_ih + b_hh))

    fc_in = HIDDEN_SIZE * SEQUENCE_LENGTH
    k_fc = 1.0 / jnp.sqrt(fc_in)
    key, k5, k6 = jax.random.split(key, 3)
    fc_w = jax.random.uniform(k5, (NUM_CLASSES, fc_in), jnp.float32, -k_fc, k_fc)
    fc_b = jax.random.uniform(k6, (NUM_CLASSES,), jnp.float32, -k_fc, k_fc)
    return params, fc_w.T, fc_b


if __name__ == "__main__":
    root = jax.random.PRNGKey(0)
    k_x, k_p = jax.random.split(root)

    x = jax.random.normal(k_x, (BATCH, SEQUENCE_LENGTH, INPUT_SIZE), jnp.float32)
    layer_params, fc_w_t, fc_b = init_params(k_p)

    out = rnn_forward(x, layer_params, fc_w_t, fc_b)
    out = jax.block_until_ready(out)

    ref = rnn_reference(x, layer_params, fc_w_t, fc_b)
    assert out.shape == (BATCH, NUM_CLASSES), out.shape
    assert jnp.allclose(out, ref, atol=1e-2, rtol=1e-2), (
        f"max abs diff {jnp.max(jnp.abs(out - ref))}")

    print("KERNEL_OK")
</pallas_src>

<mosaic_0001>
module attributes {stable_mosaic.version = 11 : i64} {
  func.func @kernel(%arg0: memref<224x16xf32, #tpu.memory_space<vmem>>, %arg1: memref<16x32xf32, #tpu.memory_space<vmem>>, %arg2: memref<32x32xf32, #tpu.memory_space<vmem>>, %arg3: memref<1x32xf32, #tpu.memory_space<vmem>>, %arg4: memref<32x32xf32, #tpu.memory_space<vmem>>, %arg5: memref<32x32xf32, #tpu.memory_space<vmem>>, %arg6: memref<1x32xf32, #tpu.memory_space<vmem>>, %arg7: memref<896x10xf32, #tpu.memory_space<vmem>>, %arg8: memref<1x10xf32, #tpu.memory_space<vmem>>, %arg9: memref<8x10xf32, #tpu.memory_space<vmem>>, %arg10: memref<224x32xf32, #tpu.memory_space<vmem>>, %arg11: memref<224x32xf32, #tpu.memory_space<vmem>>) attributes {dimension_semantics = [], scalar_prefetch = 0 : i64, scratch_operands = 2 : i64, tpu.core_type = #tpu.core_type<tc>} {
    %c0 = arith.constant 0 : index
    %c0_0 = arith.constant 0 : index
    %0 = vector.load %arg0[%c0, %c0_0] : memref<224x16xf32, #tpu.memory_space<vmem>>, vector<224x16xf32>
    %c0_1 = arith.constant 0 : index
    %c0_2 = arith.constant 0 : index
    %1 = vector.load %arg1[%c0_1, %c0_2] : memref<16x32xf32, #tpu.memory_space<vmem>>, vector<16x32xf32>
    %cst = arith.constant dense<0.000000e+00> : vector<224x32xf32>
    %2 = tpu.matmul %0, %1, %cst {dimension_numbers = #tpu.dot_dimension_numbers<[1], [0], [0], [1], [0, 0, 1, 1], [], []>} : vector<224x16xf32>, vector<16x32xf32>, vector<224x32xf32> -> vector<224x32xf32>
    %c0_3 = arith.constant 0 : index
    %c0_4 = arith.constant 0 : index
    %3 = vector.load %arg3[%c0_3, %c0_4] : memref<1x32xf32, #tpu.memory_space<vmem>>, vector<1x32xf32>
    %4 = vector.broadcast %3 : vector<1x32xf32> to vector<224x32xf32>
    %5 = arith.addf %2, %4 : vector<224x32xf32>
    %c0_5 = arith.constant 0 : index
    %c0_6 = arith.constant 0 : index
    %6 = vector.load %arg10[%c0_5, %c0_6] : memref<224x32xf32, #tpu.memory_space<vmem>>, vector<224x32xf32>
    tpu.vector_store %arg10[%c0_5, %c0_6], %5 {strides = array<i32>} : memref<224x32xf32, #tpu.memory_space<vmem>>, vector<224x32xf32>,
    %c0_7 = arith.constant 0 : index
    %c0_8 = arith.constant 0 : index
    %7 = vector.load %arg2[%c0_7, %c0_8] : memref<32x32xf32, #tpu.memory_space<vmem>>, vector<32x32xf32>
    %c0_9 = arith.constant 0 : index
    %c0_10 = arith.constant 0 : index
    %8 = vector.load %arg4[%c0_9, %c0_10] : memref<32x32xf32, #tpu.memory_space<vmem>>, vector<32x32xf32>
    %c0_11 = arith.constant 0 : index
    %c0_12 = arith.constant 0 : index
    %9 = vector.load %arg5[%c0_11, %c0_12] : memref<32x32xf32, #tpu.memory_space<vmem>>, vector<32x32xf32>
    %c0_13 = arith.constant 0 : index
    %c0_14 = arith.constant 0 : index
    %10 = vector.load %arg6[%c0_13, %c0_14] : memref<1x32xf32, #tpu.memory_space<vmem>>, vector<1x32xf32>
    %11 = vector.shape_cast %10 : vector<1x32xf32> to vector<1x32xf32>
    %12 = vector.broadcast %11 : vector<1x32xf32> to vector<8x32xf32>
    %c0_15 = arith.constant 0 : index
    %c0_16 = arith.constant 0 : index
    %13 = vector.load %arg10[%c0_15, %c0_16] : memref<224x32xf32, #tpu.memory_space<vmem>>, vector<8x32xf32>
    %14 = math.tanh %13 : vector<8x32xf32>
    %cst_17 = arith.constant 0.000000e+00 : f32
    %15 = vector.broadcast %cst_17 : f32 to vector<8x32xf32>
    %c0_18 = arith.constant 0 : index
    %c0_19 = arith.constant 0 : index
    %16 = vector.load %arg8[%c0_18, %c0_19] : memref<1x10xf32, #tpu.memory_space<vmem>>, vector<1x10xf32>
    %17 = vector.shape_cast %16 : vector<1x10xf32> to vector<1x10xf32>
    %18 = vector.broadcast %17 : vector<1x10xf32> to vector<8x10xf32>
    %c8 = arith.constant 8 : index
    %c0_20 = arith.constant 0 : index
    %19 = vector.load %arg10[%c8, %c0_20] : memref<224x32xf32, #tpu.memory_space<vmem>>, vector<8x32xf32>
    %cst_21 = arith.constant dense<0.000000e+00> : vector<8x32xf32>
    %20 = tpu.matmul %14, %7, %cst_21 {dimension_numbers = #tpu.dot_dimension_numbers<[1], [0], [0], [1], [0, 0, 1, 1], [], []>} : vector<8x32xf32>, vector<32x32xf32>, vector<8x32xf32> -> vector<8x32xf32>
    %21 = arith.addf %19, %20 : vector<8x32xf32>
    %22 = math.tanh %21 : vector<8x32xf32>
    %cst_22 = arith.constant dense<0.000000e+00> : vector<8x32xf32>
    %23 = tpu.matmul %14, %8, %cst_22 {dimension_numbers = #tpu.dot_dimension_numbers<[1], [0], [0], [1], [0, 0, 1, 1], [], []>} : vector<8x32xf32>, vector<32x32xf32>, vector<8x32xf32> -> vector<8x32xf32>
    %cst_23 = arith.constant dense<0.000000e+00> : vector<8x32xf32>
    %24 = tpu.matmul %15, %9, %cst_23 {dimension_numbers = #tpu.dot_dimension_numbers<[1], [0], [0], [1], [0, 0, 1, 1], [], []>} : vector<8x32xf32>, vector<32x32xf32>, vector<8x32xf32> -> vector<8x32xf32>
    %25 = arith.addf %23, %24 : vector<8x32xf32>
    %26 = arith.addf %25, %12 : vector<8x32xf32>
    %27 = math.tanh %26 : vector<8x32xf32>
    %c0_24 = arith.constant 0 : index
    %c0_25 = arith.constant 0 : index
    %28 = vector.load %arg7[%c0_24, %c0_25] : memref<896x10xf32, #tpu.memory_space<vmem>>, vector<32x10xf32>
    %cst_26 = arith.constant dense<0.000000e+00> : vector<8x10xf32>
    %29 = tpu.matmul %27, %28, %cst_26 {dimension_numbers = #tpu.dot_dimension_numbers<[1], [0], [0], [1], [0, 0, 1, 1], [], []>} : vector<8x32xf32>, vector<32x10xf32>, vector<8x10xf32> -> vector<8x10xf32>
    %30 = arith.addf %18, %29 : vector<8x10xf32>
    %c16 = arith.constant 16 : index
    %c0_27 = arith.constant 0 : index
    %31 = vector.load %arg10[%c16, %c0_27] : memref<224x32xf32, #tpu.memory_space<vmem>>, vector<8x32xf32>
    %cst_28 = arith.constant dense<0.000000e+00> : vector<8x32xf32>
    %32 = tpu.matmul %22, %7, %cst_28 {dimension_numbers = #tpu.dot_dimension_numbers<[1], [0], [0], [1], [0, 0, 1, 1], [], []>} : vector<8x32xf32>, vector<32x32xf32>, vector<8x32xf32> -> vector<8x32xf32>
    %33 = arith.addf %31, %32 : vector<8x32xf32>
    %34 = math.tanh %33 : vector<8x32xf32>
    %cst_29 = arith.constant dense<0.000000e+00> : vector<8x32xf32>
    %35 = tpu.matmul %22, %8, %cst_29 {dimension_numbers = #tpu.dot_dimension_numbers<[1], [0], [0], [1], [0, 0, 1, 1], [], []>} : vector<8x32xf32>, vector<32x32xf32>, vector<8x32xf32> -> vector<8x32xf32>
    %cst_30 = arith.constant dense<0.000000e+00> : vector<8x32xf32>
    %36 = tpu.matmul %27, %9, %cst_30 {dimension_numbers = #tpu.dot_dimension_numbers<[1], [0], [0], [1], [0, 0, 1, 1], [], []>} : vector<8x32xf32>, vector<32x32xf32>, vector<8x32xf32> -> vector<8x32xf32>
    %37 = arith.addf %35, %36 : vector<8x32xf32>
    %38 = arith.addf %37, %12 : vector<8x32xf32>
    %39 = math.tanh %38 : vector<8x32xf32>
    %c32 = arith.constant 32 : index
    %c0_31 = arith.constant 0 : index
    %40 = vector.load %arg7[%c32, %c0_31] : memref<896x10xf32, #tpu.memory_space<vmem>>, vector<32x10xf32>
    %cst_32 = arith.constant dense<0.000000e+00> : vector<8x10xf32>
    %41 = tpu.matmul %39, %40, %cst_32 {dimension_numbers = #tpu.dot_dimension_numbers<[1], [0], [0], [1], [0, 0, 1, 1], [], []>} : vector<8x32xf32>, vector<32x10xf32>, vector<8x10xf32> -> vector<8x10xf32>
    %42 = arith.addf %30, %41 : vector<8x10xf32>
    %c24 = arith.constant 24 : index
    %c0_33 = arith.constant 0 : index
    %43 = vector.load %arg10[%c24, %c0_33] : memref<224x32xf32, #tpu.memory_space<vmem>>, vector<8x32xf32>
    %cst_34 = arith.constant dense<0.000000e+00> : vector<8x32xf32>
    %44 = tpu.matmul %34, %7, %cst_34 {dimension_numbers = #tpu.dot_dimension_numbers<[1], [0], [0], [1], [0, 0, 1, 1], [], []>} : vector<8x32xf32>, vector<32x32xf32>, vector<8x32xf32> -> vector<8x32xf32>
    %45 = arith.addf %43, %44 : vector<8x32xf32>
    %46 = math.tanh %45 : vector<8x32xf32>
    %cst_35 = arith.constant dense<0.000000e+00> : vector<8x32xf32>
    %47 = tpu.matmul %34, %8, %cst_35 {dimension_numbers = #tpu.dot_dimension_numbers<[1], [0], [0], [1], [0, 0, 1, 1], [], []>} : vector<8x32xf32>, vector<32x32xf32>, vector<8x32xf32> -> vector<8x32xf32>
    %cst_36 = arith.constant dense<0.000000e+00> : vector<8x32xf32>
    %48 = tpu.matmul %39, %9, %cst_36 {dimension_numbers = #tpu.dot_dimension_numbers<[1], [0], [0], [1], [0, 0, 1, 1], [], []>} : vector<8x32xf32>, vector<32x32xf32>, vector<8x32xf32> -> vector<8x32xf32>
    %49 = arith.addf %47, %48 : vector<8x32xf32>
    %50 = arith.addf %49, %12 : vector<8x32xf32>
    %51 = math.tanh %50 : vector<8x32xf32>
    %c64 = arith.constant 64 : index
    %c0_37 = arith.constant 0 : index
    %52 = vector.load %arg7[%c64, %c0_37] : memref<896x10xf32, #tpu.memory_space<vmem>>, vector<32x10xf32>
    %cst_38 = arith.constant dense<0.000000e+00> : vector<8x10xf32>
    %53 = tpu.matmul %51, %52, %cst_38 {dimension_numbers = #tpu.dot_dimension_numbers<[1], [0], [0], [1], [0, 0, 1, 1], [], []>} : vector<8x32xf32>, vector<32x10xf32>, vector<8x10xf32> -> vector<8x10xf32>
    %54 = arith.addf %42, %53 : vector<8x10xf32>
    %c32_39 = arith.constant 32 : index
    %c0_40 = arith.constant 0 : index
    %55 = vector.load %arg10[%c32_39, %c0_40] : memref<224x32xf32, #tpu.memory_space<vmem>>, vector<8x32xf32>
    %cst_41 = arith.constant dense<0.000000e+00> : vector<8x32xf32>
    %56 = tpu.matmul %46, %7, %cst_41 {dimension_numbers = #tpu.dot_dimension_numbers<[1], [0], [0], [1], [0, 0, 1, 1], [], []>} : vector<8x32xf32>, vector<32x32xf32>, vector<8x32xf32> -> vector<8x32xf32>
    %57 = arith.addf %55, %56 : vector<8x32xf32>
    %58 = math.tanh %57 : vector<8x32xf32>
    %cst_42 = arith.constant dense<0.000000e+00> : vector<8x32xf32>
    %59 = tpu.matmul %46, %8, %cst_42 {dimension_numbers = #tpu.dot_dimension_numbers<[1], [0], [0], [1], [0, 0, 1, 1], [], []>} : vector<8x32xf32>, vector<32x32xf32>, vector<8x32xf32> -> vector<8x32xf32>
    %cst_43 = arith.constant dense<0.000000e+00> : vector<8x32xf32>
    %60 = tpu.matmul %51, %9, %cst_43 {dimension_numbers = #tpu.dot_dimension_numbers<[1], [0], [0], [1], [0, 0, 1, 1], [], []>} : vector<8x32xf32>, vector<32x32xf32>, vector<8x32xf32> -> vector<8x32xf32>
    %61 = arith.addf %59, %60 : vector<8x32xf32>
    %62 = arith.addf %61, %12 : vector<8x32xf32>
    %63 = math.tanh %62 : vector<8x32xf32>
    %c96 = arith.constant 96 : index
    %c0_44 = arith.constant 0 : index
    %64 = vector.load %arg7[%c96, %c0_44] : memref<896x10xf32, #tpu.memory_space<vmem>>, vector<32x10xf32>
    %cst_45 = arith.constant dense<0.000000e+00> : vector<8x10xf32>
    %65 = tpu.matmul %63, %64, %cst_45 {dimension_numbers = #tpu.dot_dimension_numbers<[1], [0], [0], [1], [0, 0, 1, 1], [], []>} : vector<8x32xf32>, vector<32x10xf32>, vector<8x10xf32> -> vector<8x10xf32>
    %66 = arith.addf %54, %65 : vector<8x10xf32>
    %c40 = arith.constant 40 : index
    %c0_46 = arith.constant 0 : index
    %67 = vector.load %arg10[%c40, %c0_46] : memref<224x32xf32, #tpu.memory_space<vmem>>, vector<8x32xf32>
    %cst_47 = arith.constant dense<0.000000e+00> : vector<8x32xf32>
    %68 = tpu.matmul %58, %7, %cst_47 {dimension_numbers = #tpu.dot_dimension_numbers<[1], [0], [0], [1], [0, 0, 1, 1], [], []>} : vector<8x32xf32>, vector<32x32xf32>, vector<8x32xf32> -> vector<8x32xf32>
    %69 = arith.addf %67, %68 : vector<8x32xf32>
    %70 = math.tanh %69 : vector<8x32xf32>
    %cst_48 = arith.constant dense<0.000000e+00> : vector<8x32xf32>
    %71 = tpu.matmul %58, %8, %cst_48 {dimension_numbers = #tpu.dot_dimension_numbers<[1], [0], [0], [1], [0, 0, 1, 1], [], []>} : vector<8x32xf32>, vector<32x32xf32>, vector<8x32xf32> -> vector<8x32xf32>
    %cst_49 = arith.constant dense<0.000000e+00> : vector<8x32xf32>
    %72 = tpu.matmul %63, %9, %cst_49 {dimension_numbers = #tpu.dot_dimension_numbers<[1], [0], [0], [1], [0, 0, 1, 1], [], []>} : vector<8x32xf32>, vector<32x32xf32>, vector<8x32xf32> -> vector<8x32xf32>
    %73 = arith.addf %71, %72 : vector<8x32xf32>
    %74 = arith.addf %73, %12 : vector<8x32xf32>
    %75 = math.tanh %74 : vector<8x32xf32>
    %c128 = arith.constant 128 : index
    %c0_50 = arith.constant 0 : index
    %76 = vector.load %arg7[%c128, %c0_50] : memref<896x10xf32, #tpu.memory_space<vmem>>, vector<32x10xf32>
    %cst_51 = arith.constant dense<0.000000e+00> : vector<8x10xf32>
    %77 = tpu.matmul %75, %76, %cst_51 {dimension_numbers = #tpu.dot_dimension_numbers<[1], [0], [0], [1], [0, 0, 1, 1], [], []>} : vector<8x32xf32>, vector<32x10xf32>, vector<8x10xf32> -> vector<8x10xf32>
    %78 = arith.addf %66, %77 : vector<8x10xf32>
    %c48 = arith.constant 48 : index
    %c0_52 = arith.constant 0 : index
    %79 = vector.load %arg10[%c48, %c0_52] : memref<224x32xf32, #tpu.memory_space<vmem>>, vector<8x32xf32>
    %cst_53 = arith.constant dense<0.000000e+00> : vector<8x32xf32>
    %80 = tpu.matmul %70, %7, %cst_53 {dimension_numbers = #tpu.dot_dimension_numbers<[1], [0], [0], [1], [0, 0, 1, 1], [], []>} : vector<8x32xf32>, vector<32x32xf32>, vector<8x32xf32> -> vector<8x32xf32>
    %81 = arith.addf %79, %80 : vector<8x32xf32>
    %82 = math.tanh %81 : vector<8x32xf32>
    %cst_54 = arith.constant dense<0.000000e+00> : vector<8x32xf32>
    %83 = tpu.matmul %70, %8, %cst_54 {dimension_numbers = #tpu.dot_dimension_numbers<[1], [0], [0], [1], [0, 0, 1, 1], [], []>} : vector<8x32xf32>, vector<32x32xf32>, vector<8x32xf32> -> vector<8x32xf32>
    %cst_55 = arith.constant dense<0.000000e+00> : vector<8x32xf32>
    %84 = tpu.matmul %75, %9, %cst_55 {dimension_numbers = #tpu.dot_dimension_numbers<[1], [0], [0], [1], [0, 0, 1, 1], [], []>} : vector<8x32xf32>, vector<32x32xf32>, vector<8x32xf32> -> vector<8x32xf32>
    %85 = arith.addf %83, %84 : vector<8x32xf32>
    %86 = arith.addf %85, %12 : vector<8x32xf32>
    %87 = math.tanh %86 : vector<8x32xf32>
    %c160 = arith.constant 160 : index
    %c0_56 = arith.constant 0 : index
    %88 = vector.load %arg7[%c160, %c0_56] : memref<896x10xf32, #tpu.memory_space<vmem>>, vector<32x10xf32>
    %cst_57 = arith.constant dense<0.000000e+00> : vector<8x10xf32>
    %89 = tpu.matmul %87, %88, %cst_57 {dimension_numbers = #tpu.dot_dimension_numbers<[1], [0], [0], [1], [0, 0, 1, 1], [], []>} : vector<8x32xf32>, vector<32x10xf32>, vector<8x10xf32> -> vector<8x10xf32>
    %90 = arith.addf %78, %89 : vector<8x10xf32>
    %c56 = arith.constant 56 : index
    %c0_58 = arith.constant 0 : index
    %91 = vector.load %arg10[%c56, %c0_58] : memref<224x32xf32, #tpu.memory_space<vmem>>, vector<8x32xf32>
    %cst_59 = arith.constant dense<0.000000e+00> : vector<8x32xf32>
    %92 = tpu.matmul %82, %7, %cst_59 {dimension_numbers = #tpu.dot_dimension_numbers<[1], [0], [0], [1], [0, 0, 1, 1], [], []>} : vector<8x32xf32>, vector<32x32xf32>, vector<8x32xf32> -> vector<8x32xf32>
    %93 = arith.addf %91, %92 : vector<8x32xf32>
    %94 = math.tanh %93 : vector<8x32xf32>
    %cst_60 = arith.constant dense<0.000000e+00> : vector<8x32xf32>
    %95 = tpu.matmul %82, %8, %cst_60 {dimension_numbers = #tpu.dot_dimension_numbers<[1], [0], [0], [1], [0, 0, 1, 1], [], []>} : vector<8x32xf32>, vector<32x32xf32>, vector<8x32xf32> -> vector<8x32xf32>
    %cst_61 = arith.constant dense<0.000000e+00> : vector<8x32xf32>
    %96 = tpu.matmul %87, %9, %cst_61 {dimension_numbers = #tpu.dot_dimension_numbers<[1], [0], [0], [1], [0, 0, 1, 1], [], []>} : vector<8x32xf32>, vector<32x32xf32>, vector<8x32xf32> -> vector<8x32xf32>
    %97 = arith.addf %95, %96 : vector<8x32xf32>
    %98 = arith.addf %97, %12 : vector<8x32xf32>
    %99 = math.tanh %98 : vector<8x32xf32>
    %c192 = arith.constant 192 : index
    %c0_62 = arith.constant 0 : index
    %100 = vector.load %arg7[%c192, %c0_62] : memref<896x10xf32, #tpu.memory_space<vmem>>, vector<32x10xf32>
    %cst_63 = arith.constant dense<0.000000e+00> : vector<8x10xf32>
    %101 = tpu.matmul %99, %100, %cst_63 {dimension_numbers = #tpu.dot_dimension_numbers<[1], [0], [0], [1], [0, 0, 1, 1], [], []>} : vector<8x32xf32>, vector<32x10xf32>, vector<8x10xf32> -> vector<8x10xf32>
    %102 = arith.addf %90, %101 : vector<8x10xf32>
    %c64_64 = arith.constant 64 : index
    %c0_65 = arith.constant 0 : index
    %103 = vector.load %arg10[%c64_64, %c0_65] : memref<224x32xf32, #tpu.memory_space<vmem>>, vector<8x32xf32>
    %cst_66 = arith.constant dense<0.000000e+00> : vector<8x32xf32>
    %104 = tpu.matmul %94, %7, %cst_66 {dimension_numbers = #tpu.dot_dimension_numbers<[1], [0], [0], [1], [0, 0, 1, 1], [], []>} : vector<8x32xf32>, vector<32x32xf32>, vector<8x32xf32> -> vector<8x32xf32>
    %105 = arith.addf %103, %104 : vector<8x32xf32>
    %106 = math.tanh %105 : vector<8x32xf32>
    %cst_67 = arith.constant dense<0.000000e+00> : vector<8x32xf32>
    %107 = tpu.matmul %94, %8, %cst_67 {dimension_numbers = #tpu.dot_dimension_numbers<[1], [0], [0], [1], [0, 0, 1, 1], [], []>} : vector<8x32xf32>, vector<32x32xf32>, vector<8x32xf32> -> vector<8x32xf32>
    %cst_68 = arith.constant dense<0.000000e+00> : vector<8x32xf32>
    %108 = tpu.matmul %99, %9, %cst_68 {dimension_numbers = #tpu.dot_dimension_numbers<[1], [0], [0], [1], [0, 0, 1, 1], [], []>} : vector<8x32xf32>, vector<32x32xf32>, vector<8x32xf32> -> vector<8x32xf32>
    %109 = arith.addf %107, %108 : vector<8x32xf32>
    %110 = arith.addf %109, %12 : vector<8x32xf32>
    %111 = math.tanh %110 : vector<8x32xf32>
    %c224 = arith.constant 224 : index
    %c0_69 = arith.constant 0 : index
    %112 = vector.load %arg7[%c224, %c0_69] : memref<896x10xf32, #tpu.memory_space<vmem>>, vector<32x10xf32>
    %cst_70 = arith.constant dense<0.000000e+00> : vector<8x10xf32>
    %113 = tpu.matmul %111, %112, %cst_70 {dimension_numbers = #tpu.dot_dimension_numbers<[1], [0], [0], [1], [0, 0, 1, 1], [], []>} : vector<8x32xf32>, vector<32x10xf32>, vector<8x10xf32> -> vector<8x10xf32>
    %114 = arith.addf %102, %113 : vector<8x10xf32>
    %c72 = arith.constant 72 : index
    %c0_71 = arith.constant 0 : index
    %115 = vector.load %arg10[%c72, %c0_71] : memref<224x32xf32, #tpu.memory_space<vmem>>, vector<8x32xf32>
    %cst_72 = arith.constant dense<0.000000e+00> : vector<8x32xf32>
    %116 = tpu.matmul %106, %7, %cst_72 {dimension_numbers = #tpu.dot_dimension_numbers<[1], [0], [0], [1], [0, 0, 1, 1], [], []>} : vector<8x32xf32>, vector<32x32xf32>, vector<8x32xf32> -> vector<8x32xf32>
    %117 = arith.addf %115, %116 : vector<8x32xf32>
    %118 = math.tanh %117 : vector<8x32xf32>
    %cst_73 = arith.constant dense<0.000000e+00> : vector<8x32xf32>
    %119 = tpu.matmul %106, %8, %cst_73 {dimension_numbers = #tpu.dot_dimension_numbers<[1], [0], [0], [1], [0, 0, 1, 1], [], []>} : vector<8x32xf32>, vector<32x32xf32>, vector<8x32xf32> -> vector<8x32xf32>
    %cst_74 = arith.constant dense<0.000000e+00> : vector<8x32xf32>
    %120 = tpu.matmul %111, %9, %cst_74 {dimension_numbers = #tpu.dot_dimension_numbers<[1], [0], [0], [1], [0, 0, 1, 1], [], []>} : vector<8x32xf32>, vector<32x32xf32>, vector<8x32xf32> -> vector<8x32xf32>
    %121 = arith.addf %119, %120 : vector<8x32xf32>
    %122 = arith.addf %121, %12 : vector<8x32xf32>
    %123 = math.tanh %122 : vector<8x32xf32>
    %c256 = arith.constant 256 : index
    %c0_75 = arith.constant 0 : index
    %124 = vector.load %arg7[%c256, %c0_75] : memref<896x10xf32, #tpu.memory_space<vmem>>, vector<32x10xf32>
    %cst_76 = arith.constant dense<0.000000e+00> : vector<8x10xf32>
    %125 = tpu.matmul %123, %124, %cst_76 {dimension_numbers = #tpu.dot_dimension_numbers<[1], [0], [0], [1], [0, 0, 1, 1], [], []>} : vector<8x32xf32>, vector<32x10xf32>, vector<8x10xf32> -> vector<8x10xf32>
    %126 = arith.addf %114, %125 : vector<8x10xf32>
    %c80 = arith.constant 80 : index
    %c0_77 = arith.constant 0 : index
    %127 = vector.load %arg10[%c80, %c0_77] : memref<224x32xf32, #tpu.memory_space<vmem>>, vector<8x32xf32>
    %cst_78 = arith.constant dense<0.000000e+00> : vector<8x32xf32>
    %128 = tpu.matmul %118, %7, %cst_78 {dimension_numbers = #tpu.dot_dimension_numbers<[1], [0], [0], [1], [0, 0, 1, 1], [], []>} : vector<8x32xf32>, vector<32x32xf32>, vector<8x32xf32> -> vector<8x32xf32>
    %129 = arith.addf %127, %128 : vector<8x32xf32>
    %130 = math.tanh %129 : vector<8x32xf32>
    %cst_79 = arith.constant dense<0.000000e+00> : vector<8x32xf32>
    %131 = tpu.matmul %118, %8, %cst_79 {dimension_numbers = #tpu.dot_dimension_numbers<[1], [0], [0], [1], [0, 0, 1, 1], [], []>} : vector<8x32xf32>, vector<32x32xf32>, vector<8x32xf32> -> vector<8x32xf32>
    %cst_80 = arith.constant dense<0.000000e+00> : vector<8x32xf32>
    %132 = tpu.matmul %123, %9, %cst_80 {dimension_numbers = #tpu.dot_dimension_numbers<[1], [0], [0], [1], [0, 0, 1, 1], [], []>} : vector<8x32xf32>, vector<32x32xf32>, vector<8x32xf32> -> vector<8x32xf32>
    %133 = arith.addf %131, %132 : vector<8x32xf32>
    %134 = arith.addf %133, %12 : vector<8x32xf32>
    %135 = math.tanh %134 : vector<8x32xf32>
    %c288 = arith.constant 288 : index
    %c0_81 = arith.constant 0 : index
    %136 = vector.load %arg7[%c288, %c0_81] : memref<896x10xf32, #tpu.memory_space<vmem>>, vector<32x10xf32>
    %cst_82 = arith.constant dense<0.000000e+00> : vector<8x10xf32>
    %137 = tpu.matmul %135, %136, %cst_82 {dimension_numbers = #tpu.dot_dimension_numbers<[1], [0], [0], [1], [0, 0, 1, 1], [], []>} : vector<8x32xf32>, vector<32x10xf32>, vector<8x10xf32> -> vector<8x10xf32>
    %138 = arith.addf %126, %137 : vector<8x10xf32>
    %c88 = arith.constant 88 : index
    %c0_83 = arith.constant 0 : index
    %139 = vector.load %arg10[%c88, %c0_83] : memref<224x32xf32, #tpu.memory_space<vmem>>, vector<8x32xf32>
    %cst_84 = arith.constant dense<0.000000e+00> : vector<8x32xf32>
    %140 = tpu.matmul %130, %7, %cst_84 {dimension_numbers = #tpu.dot_dimension_numbers<[1], [0], [0], [1], [0, 0, 1, 1], [], []>} : vector<8x32xf32>, vector<32x32xf32>, vector<8x32xf32> -> vector<8x32xf32>
    %141 = arith.addf %139, %140 : vector<8x32xf32>
    %142 = math.tanh %141 : vector<8x32xf32>
    %cst_85 = arith.constant dense<0.000000e+00> : vector<8x32xf32>
    %143 = tpu.matmul %130, %8, %cst_85 {dimension_numbers = #tpu.dot_dimension_numbers<[1], [0], [0], [1], [0, 0, 1, 1], [], []>} : vector<8x32xf32>, vector<32x32xf32>, vector<8x32xf32> -> vector<8x32xf32>
    %cst_86 = arith.constant dense<0.000000e+00> : vector<8x32xf32>
    %144 = tpu.matmul %135, %9, %cst_86 {dimension_numbers = #tpu.dot_dimension_numbers<[1], [0], [0], [1], [0, 0, 1, 1], [], []>} : vector<8x32xf32>, vector<32x32xf32>, vector<8x32xf32> -> vector<8x32xf32>
    %145 = arith.addf %143, %144 : vector<8x32xf32>
    %146 = arith.addf %145, %12 : vector<8x32xf32>
    %147 = math.tanh %146 : vector<8x32xf32>
    %c320 = arith.constant 320 : index
    %c0_87 = arith.constant 0 : index
    %148 = vector.load %arg7[%c320, %c0_87] : memref<896x10xf32, #tpu.memory_space<vmem>>, vector<32x10xf32>
    %cst_88 = arith.constant dense<0.000000e+00> : vector<8x10xf32>
    %149 = tpu.matmul %147, %148, %cst_88 {dimension_numbers = #tpu.dot_dimension_numbers<[1], [0], [0], [1], [0, 0, 1, 1], [], []>} : vector<8x32xf32>, vector<32x10xf32>, vector<8x10xf32> -> vector<8x10xf32>
    %150 = arith.addf %138, %149 : vector<8x10xf32>
    %c96_89 = arith.constant 96 : index
    %c0_90 = arith.constant 0 : index
    %151 = vector.load %arg10[%c96_89, %c0_90] : memref<224x32xf32, #tpu.memory_space<vmem>>, vector<8x32xf32>
    %cst_91 = arith.constant dense<0.000000e+00> : vector<8x32xf32>
    %152 = tpu.matmul %142, %7, %cst_91 {dimension_numbers = #tpu.dot_dimension_numbers<[1], [0], [0], [1], [0, 0, 1, 1], [], []>} : vector<8x32xf32>, vector<32x32xf32>, vector<8x32xf32> -> vector<8x32xf32>
    %153 = arith.addf %151, %152 : vector<8x32xf32>
    %154 = math.tanh %153 : vector<8x32xf32>
    %cst_92 = arith.constant dense<0.000000e+00> : vector<8x32xf32>
    %155 = tpu.matmul %142, %8, %cst_92 {dimension_numbers = #tpu.dot_dimension_numbers<[1], [0], [0], [1], [0, 0, 1, 1], [], []>} : vector<8x32xf32>, vector<32x32xf32>, vector<8x32xf32> -> vector<8x32xf32>
    %cst_93 = arith.constant dense<0.000000e+00> : vector<8x32xf32>
    %156 = tpu.matmul %147, %9, %cst_93 {dimension_numbers = #tpu.dot_dimension_numbers<[1], [0], [0], [1], [0, 0, 1, 1], [], []>} : vector<8x32xf32>, vector<32x32xf32>, vector<8x32xf32> -> vector<8x32xf32>
    %157 = arith.addf %155, %156 : vector<8x32xf32>
    %158 = arith.addf %157, %12 : vector<8x32xf32>
    %159 = math.tanh %158 : vector<8x32xf32>
    %c352 = arith.constant 352 : index
    %c0_94 = arith.constant 0 : index
    %160 = vector.load %arg7[%c352, %c0_94] : memref<896x10xf32, #tpu.memory_space<vmem>>, vector<32x10xf32>
    %cst_95 = arith.constant dense<0.000000e+00> : vector<8x10xf32>
    %161 = tpu.matmul %159, %160, %cst_95 {dimension_numbers = #tpu.dot_dimension_numbers<[1], [0], [0], [1], [0, 0, 1, 1], [], []>} : vector<8x32xf32>, vector<32x10xf32>, vector<8x10xf32> -> vector<8x10xf32>
    %162 = arith.addf %150, %161 : vector<8x10xf32>
    %c104 = arith.constant 104 : index
    %c0_96 = arith.constant 0 : index
    %163 = vector.load %arg10[%c104, %c0_96] : memref<224x32xf32, #tpu.memory_space<vmem>>, vector<8x32xf32>
    %cst_97 = arith.constant dense<0.000000e+00> : vector<8x32xf32>
    %164 = tpu.matmul %154, %7, %cst_97 {dimension_numbers = #tpu.dot_dimension_numbers<[1], [0], [0], [1], [0, 0, 1, 1], [], []>} : vector<8x32xf32>, vector<32x32xf32>, vector<8x32xf32> -> vector<8x32xf32>
    %165 = arith.addf %163, %164 : vector<8x32xf32>
    %166 = math.tanh %165 : vector<8x32xf32>
    %cst_98 = arith.constant dense<0.000000e+00> : vector<8x32xf32>
    %167 = tpu.matmul %154, %8, %cst_98 {dimension_numbers = #tpu.dot_dimension_numbers<[1], [0], [0], [1], [0, 0, 1, 1], [], []>} : vector<8x32xf32>, vector<32x32xf32>, vector<8x32xf32> -> vector<8x32xf32>
    %cst_99 = arith.constant dense<0.000000e+00> : vector<8x32xf32>
    %168 = tpu.matmul %159, %9, %cst_99 {dimension_numbers = #tpu.dot_dimension_numbers<[1], [0], [0], [1], [0, 0, 1, 1], [], []>} : vector<8x32xf32>, vector<32x32xf32>, vector<8x32xf32> -> vector<8x32xf32>
    %169 = arith.addf %167, %168 : vector<8x32xf32>
    %170 = arith.addf %169, %12 : vector<8x32xf32>
    %171 = math.tanh %170 : vector<8x32xf32>
    %c384 = arith.constant 384 : index
    %c0_100 = arith.constant 0 : index
    %172 = vector.load %arg7[%c384, %c0_100] : memref<896x10xf32, #tpu.memory_space<vmem>>, vector<32x10xf32>
    %cst_101 = arith.constant dense<0.000000e+00> : vector<8x10xf32>
    %173 = tpu.matmul %171, %172, %cst_101 {dimension_numbers = #tpu.dot_dimension_numbers<[1], [0], [0], [1], [0, 0, 1, 1], [], []>} : vector<8x32xf32>, vector<32x10xf32>, vector<8x10xf32> -> vector<8x10xf32>
    %174 = arith.addf %162, %173 : vector<8x10xf32>
    %c112 = arith.constant 112 : index
    %c0_102 = arith.constant 0 : index
    %175 = vector.load %arg10[%c112, %c0_102] : memref<224x32xf32, #tpu.memory_space<vmem>>, vector<8x32xf32>
    %cst_103 = arith.constant dense<0.000000e+00> : vector<8x32xf32>
    %176 = tpu.matmul %166, %7, %cst_103 {dimension_numbers = #tpu.dot_dimension_numbers<[1], [0], [0], [1], [0, 0, 1, 1], [], []>} : vector<8x32xf32>, vector<32x32xf32>, vector<8x32xf32> -> vector<8x32xf32>
    %177 = arith.addf %175, %176 : vector<8x32xf32>
    %178 = math.tanh %177 : vector<8x32xf32>
    %cst_104 = arith.constant dense<0.000000e+00> : vector<8x32xf32>
    %179 = tpu.matmul %166, %8, %cst_104 {dimension_numbers = #tpu.dot_dimension_numbers<[1], [0], [0], [1], [0, 0, 1, 1], [], []>} : vector<8x32xf32>, vector<32x32xf32>, vector<8x32xf32> -> vector<8x32xf32>
    %cst_105 = arith.constant dense<0.000000e+00> : vector<8x32xf32>
    %180 = tpu.matmul %171, %9, %cst_105 {dimension_numbers = #tpu.dot_dimension_numbers<[1], [0], [0], [1], [0, 0, 1, 1], [], []>} : vector<8x32xf32>, vector<32x32xf32>, vector<8x32xf32> -> vector<8x32xf32>
    %181 = arith.addf %179, %180 : vector<8x32xf32>
    %182 = arith.addf %181, %12 : vector<8x32xf32>
    %183 = math.tanh %182 : vector<8x32xf32>
    %c416 = arith.constant 416 : index
    %c0_106 = arith.constant 0 : index
    %184 = vector.load %arg7[%c416, %c0_106] : memref<896x10xf32, #tpu.memory_space<vmem>>, vector<32x10xf32>
    %cst_107 = arith.constant dense<0.000000e+00> : vector<8x10xf32>
    %185 = tpu.matmul %183, %184, %cst_107 {dimension_numbers = #tpu.dot_dimension_numbers<[1], [0], [0], [1], [0, 0, 1, 1], [], []>} : vector<8x32xf32>, vector<32x10xf32>, vector<8x10xf32> -> vector<8x10xf32>
    %186 = arith.addf %174, %185 : vector<8x10xf32>
    %c120 = arith.constant 120 : index
    %c0_108 = arith.constant 0 : index
    %187 = vector.load %arg10[%c120, %c0_108] : memref<224x32xf32, #tpu.memory_space<vmem>>, vector<8x32xf32>
    %cst_109 = arith.constant dense<0.000000e+00> : vector<8x32xf32>
    %188 = tpu.matmul %178, %7, %cst_109 {dimension_numbers = #tpu.dot_dimension_numbers<[1], [0], [0], [1], [0, 0, 1, 1], [], []>} : vector<8x32xf32>, vector<32x32xf32>, vector<8x32xf32> -> vector<8x32xf32>
    %189 = arith.addf %187, %188 : vector<8x32xf32>
    %190 = math.tanh %189 : vector<8x32xf32>
    %cst_110 = arith.constant dense<0.000000e+00> : vector<8x32xf32>
    %191 = tpu.matmul %178, %8, %cst_110 {dimension_numbers = #tpu.dot_dimension_numbers<[1], [0], [0], [1], [0, 0, 1, 1], [], []>} : vector<8x32xf32>, vector<32x32xf32>, vector<8x32xf32> -> vector<8x32xf32>
    %cst_111 = arith.constant dense<0.000000e+00> : vector<8x32xf32>
    %192 = tpu.matmul %183, %9, %cst_111 {dimension_numbers = #tpu.dot_dimension_numbers<[1], [0], [0], [1], [0, 0, 1, 1], [], []>} : vector<8x32xf32>, vector<32x32xf32>, vector<8x32xf32> -> vector<8x32xf32>
    %193 = arith.addf %191, %192 : vector<8x32xf32>
    %194 = arith.addf %193, %12 : vector<8x32xf32>
    %195 = math.tanh %194 : vector<8x32xf32>
    %c448 = arith.constant 448 : index
    %c0_112 = arith.constant 0 : index
    %196 = vector.load %arg7[%c448, %c0_112] : memref<896x10xf32, #tpu.memory_space<vmem>>, vector<32x10xf32>
    %cst_113 = arith.constant dense<0.000000e+00> : vector<8x10xf32>
    %197 = tpu.matmul %195, %196, %cst_113 {dimension_numbers = #tpu.dot_dimension_numbers<[1], [0], [0], [1], [0, 0, 1, 1], [], []>} : vector<8x32xf32>, vector<32x10xf32>, vector<8x10xf32> -> vector<8x10xf32>
    %198 = arith.addf %186, %197 : vector<8x10xf32>
    %c128_114 = arith.constant 128 : index
    %c0_115 = arith.constant 0 : index
    %199 = vector.load %arg10[%c128_114, %c0_115] : memref<224x32xf32, #tpu.memory_space<vmem>>, vector<8x32xf32>
    %cst_116 = arith.constant dense<0.000000e+00> : vector<8x32xf32>
    %200 = tpu.matmul %190, %7, %cst_116 {dimension_numbers = #tpu.dot_dimension_numbers<[1], [0], [0], [1], [0, 0, 1, 1], [], []>} : vector<8x32xf32>, vector<32x32xf32>, vector<8x32xf32> -> vector<8x32xf32>
    %201 = arith.addf %199, %200 : vector<8x32xf32>
    %202 = math.tanh %201 : vector<8x32xf32>
    %cst_117 = arith.constant dense<0.000000e+00> : vector<8x32xf32>
    %203 = tpu.matmul %190, %8, %cst_117 {dimension_numbers = #tpu.dot_dimension_numbers<[1], [0], [0], [1], [0, 0, 1, 1], [], []>} : vector<8x32xf32>, vector<32x32xf32>, vector<8x32xf32> -> vector<8x32xf32>
    %cst_118 = arith.constant dense<0.000000e+00> : vector<8x32xf32>
    %204 = tpu.matmul %195, %9, %cst_118 {dimension_numbers = #tpu.dot_dimension_numbers<[1], [0], [0], [1], [0, 0, 1, 1], [], []>} : vector<8x32xf32>, vector<32x32xf32>, vector<8x32xf32> -> vector<8x32xf32>
    %205 = arith.addf %203, %204 : vector<8x32xf32>
    %206 = arith.addf %205, %12 : vector<8x32xf32>
    %207 = math.tanh %206 : vector<8x32xf32>
    %c480 = arith.constant 480 : index
    %c0_119 = arith.constant 0 : index
    %208 = vector.load %arg7[%c480, %c0_119] : memref<896x10xf32, #tpu.memory_space<vmem>>, vector<32x10xf32>
    %cst_120 = arith.constant dense<0.000000e+00> : vector<8x10xf32>
    %209 = tpu.matmul %207, %208, %cst_120 {dimension_numbers = #tpu.dot_dimension_numbers<[1], [0], [0], [1], [0, 0, 1, 1], [], []>} : vector<8x32xf32>, vector<32x10xf32>, vector<8x10xf32> -> vector<8x10xf32>
    %210 = arith.addf %198, %209 : vector<8x10xf32>
    %c136 = arith.constant 136 : index
    %c0_121 = arith.constant 0 : index
    %211 = vector.load %arg10[%c136, %c0_121] : memref<224x32xf32, #tpu.memory_space<vmem>>, vector<8x32xf32>
    %cst_122 = arith.constant dense<0.000000e+00> : vector<8x32xf32>
    %212 = tpu.matmul %202, %7, %cst_122 {dimension_numbers = #tpu.dot_dimension_numbers<[1], [0], [0], [1], [0, 0, 1, 1], [], []>} : vector<8x32xf32>, vector<32x32xf32>, vector<8x32xf32> -> vector<8x32xf32>
    %213 = arith.addf %211, %212 : vector<8x32xf32>
    %214 = math.tanh %213 : vector<8x32xf32>
    %cst_123 = arith.constant dense<0.000000e+00> : vector<8x32xf32>
    %215 = tpu.matmul %202, %8, %cst_123 {dimension_numbers = #tpu.dot_dimension_numbers<[1], [0], [0], [1], [0, 0, 1, 1], [], []>} : vector<8x32xf32>, vector<32x32xf32>, vector<8x32xf32> -> vector<8x32xf32>
    %cst_124 = arith.constant dense<0.000000e+00> : vector<8x32xf32>
    %216 = tpu.matmul %207, %9, %cst_124 {dimension_numbers = #tpu.dot_dimension_numbers<[1], [0], [0], [1], [0, 0, 1, 1], [], []>} : vector<8x32xf32>, vector<32x32xf32>, vector<8x32xf32> -> vector<8x32xf32>
    %217 = arith.addf %215, %216 : vector<8x32xf32>
    %218 = arith.addf %217, %12 : vector<8x32xf32>
    %219 = math.tanh %218 : vector<8x32xf32>
    %c512 = arith.constant 512 : index
    %c0_125 = arith.constant 0 : index
    %220 = vector.load %arg7[%c512, %c0_125] : memref<896x10xf32, #tpu.memory_space<vmem>>, vector<32x10xf32>
    %cst_126 = arith.constant dense<0.000000e+00> : vector<8x10xf32>
    %221 = tpu.matmul %219, %220, %cst_126 {dimension_numbers = #tpu.dot_dimension_numbers<[1], [0], [0], [1], [0, 0, 1, 1], [], []>} : vector<8x32xf32>, vector<32x10xf32>, vector<8x10xf32> -> vector<8x10xf32>
    %222 = arith.addf %210, %221 : vector<8x10xf32>
    %c144 = arith.constant 144 : index
    %c0_127 = arith.constant 0 : index
    %223 = vector.load %arg10[%c144, %c0_127] : memref<224x32xf32, #tpu.memory_space<vmem>>, vector<8x32xf32>
    %cst_128 = arith.constant dense<0.000000e+00> : vector<8x32xf32>
    %224 = tpu.matmul %214, %7, %cst_128 {dimension_numbers = #tpu.dot_dimension_numbers<[1], [0], [0], [1], [0, 0, 1, 1], [], []>} : vector<8x32xf32>, vector<32x32xf32>, vector<8x32xf32> -> vector<8x32xf32>
    %225 = arith.addf %223, %224 : vector<8x32xf32>
    %226 = math.tanh %225 : vector<8x32xf32>
    %cst_129 = arith.constant dense<0.000000e+00> : vector<8x32xf32>
    %227 = tpu.matmul %214, %8, %cst_129 {dimension_numbers = #tpu.dot_dimension_numbers<[1], [0], [0], [1], [0, 0, 1, 1], [], []>} : vector<8x32xf32>, vector<32x32xf32>, vector<8x32xf32> -> vector<8x32xf32>
    %cst_130 = arith.constant dense<0.000000e+00> : vector<8x32xf32>
    %228 = tpu.matmul %219, %9, %cst_130 {dimension_numbers = #tpu.dot_dimension_numbers<[1], [0], [0], [1], [0, 0, 1, 1], [], []>} : vector<8x32xf32>, vector<32x32xf32>, vector<8x32xf32> -> vector<8x32xf32>
    %229 = arith.addf %227, %228 : vector<8x32xf32>
    %230 = arith.addf %229, %12 : vector<8x32xf32>
    %231 = math.tanh %230 : vector<8x32xf32>
    %c544 = arith.constant 544 : index
    %c0_131 = arith.constant 0 : index
    %232 = vector.load %arg7[%c544, %c0_131] : memref<896x10xf32, #tpu.memory_space<vmem>>, vector<32x10xf32>
    %cst_132 = arith.constant dense<0.000000e+00> : vector<8x10xf32>
    %233 = tpu.matmul %231, %232, %cst_132 {dimension_numbers = #tpu.dot_dimension_numbers<[1], [0], [0], [1], [0, 0, 1, 1], [], []>} : vector<8x32xf32>, vector<32x10xf32>, vector<8x10xf32> -> vector<8x10xf32>
    %234 = arith.addf %222, %233 : vector<8x10xf32>
    %c152 = arith.constant 152 : index
    %c0_133 = arith.constant 0 : index
    %235 = vector.load %arg10[%c152, %c0_133] : memref<224x32xf32, #tpu.memory_space<vmem>>, vector<8x32xf32>
    %cst_134 = arith.constant dense<0.000000e+00> : vector<8x32xf32>
    %236 = tpu.matmul %226, %7, %cst_134 {dimension_numbers = #tpu.dot_dimension_numbers<[1], [0], [0], [1], [0, 0, 1, 1], [], []>} : vector<8x32xf32>, vector<32x32xf32>, vector<8x32xf32> -> vector<8x32xf32>
    %237 = arith.addf %235, %236 : vector<8x32xf32>
    %238 = math.tanh %237 : vector<8x32xf32>
    %cst_135 = arith.constant dense<0.000000e+00> : vector<8x32xf32>
    %239 = tpu.matmul %226, %8, %cst_135 {dimension_numbers = #tpu.dot_dimension_numbers<[1], [0], [0], [1], [0, 0, 1, 1], [], []>} : vector<8x32xf32>, vector<32x32xf32>, vector<8x32xf32> -> vector<8x32xf32>
    %cst_136 = arith.constant dense<0.000000e+00> : vector<8x32xf32>
    %240 = tpu.matmul %231, %9, %cst_136 {dimension_numbers = #tpu.dot_dimension_numbers<[1], [0], [0], [1], [0, 0, 1, 1], [], []>} : vector<8x32xf32>, vector<32x32xf32>, vector<8x32xf32> -> vector<8x32xf32>
    %241 = arith.addf %239, %240 : vector<8x32xf32>
    %242 = arith.addf %241, %12 : vector<8x32xf32>
    %243 = math.tanh %242 : vector<8x32xf32>
    %c576 = arith.constant 576 : index
    %c0_137 = arith.constant 0 : index
    %244 = vector.load %arg7[%c576, %c0_137] : memref<896x10xf32, #tpu.memory_space<vmem>>, vector<32x10xf32>
    %cst_138 = arith.constant dense<0.000000e+00> : vector<8x10xf32>
    %245 = tpu.matmul %243, %244, %cst_138 {dimension_numbers = #tpu.dot_dimension_numbers<[1], [0], [0], [1], [0, 0, 1, 1], [], []>} : vector<8x32xf32>, vector<32x10xf32>, vector<8x10xf32> -> vector<8x10xf32>
    %246 = arith.addf %234, %245 : vector<8x10xf32>
    %c160_139 = arith.constant 160 : index
    %c0_140 = arith.constant 0 : index
    %247 = vector.load %arg10[%c160_139, %c0_140] : memref<224x32xf32, #tpu.memory_space<vmem>>, vector<8x32xf32>
    %cst_141 = arith.constant dense<0.000000e+00> : vector<8x32xf32>
    %248 = tpu.matmul %238, %7, %cst_141 {dimension_numbers = #tpu.dot_dimension_numbers<[1], [0], [0], [1], [0, 0, 1, 1], [], []>} : vector<8x32xf32>, vector<32x32xf32>, vector<8x32xf32> -> vector<8x32xf32>
    %249 = arith.addf %247, %248 : vector<8x32xf32>
    %250 = math.tanh %249 : vector<8x32xf32>
    %cst_142 = arith.constant dense<0.000000e+00> : vector<8x32xf32>
    %251 = tpu.matmul %238, %8, %cst_142 {dimension_numbers = #tpu.dot_dimension_numbers<[1], [0], [0], [1], [0, 0, 1, 1], [], []>} : vector<8x32xf32>, vector<32x32xf32>, vector<8x32xf32> -> vector<8x32xf32>
    %cst_143 = arith.constant dense<0.000000e+00> : vector<8x32xf32>
    %252 = tpu.matmul %243, %9, %cst_143 {dimension_numbers = #tpu.dot_dimension_numbers<[1], [0], [0], [1], [0, 0, 1, 1], [], []>} : vector<8x32xf32>, vector<32x32xf32>, vector<8x32xf32> -> vector<8x32xf32>
    %253 = arith.addf %251, %252 : vector<8x32xf32>
    %254 = arith.addf %253, %12 : vector<8x32xf32>
    %255 = math.tanh %254 : vector<8x32xf32>
    %c608 = arith.constant 608 : index
    %c0_144 = arith.constant 0 : index
    %256 = vector.load %arg7[%c608, %c0_144] : memref<896x10xf32, #tpu.memory_space<vmem>>, vector<32x10xf32>
    %cst_145 = arith.constant dense<0.000000e+00> : vector<8x10xf32>
    %257 = tpu.matmul %255, %256, %cst_145 {dimension_numbers = #tpu.dot_dimension_numbers<[1], [0], [0], [1], [0, 0, 1, 1], [], []>} : vector<8x32xf32>, vector<32x10xf32>, vector<8x10xf32> -> vector<8x10xf32>
    %258 = arith.addf %246, %257 : vector<8x10xf32>
    %c168 = arith.constant 168 : index
    %c0_146 = arith.constant 0 : index
    %259 = vector.load %arg10[%c168, %c0_146] : memref<224x32xf32, #tpu.memory_space<vmem>>, vector<8x32xf32>
    %cst_147 = arith.constant dense<0.000000e+00> : vector<8x32xf32>
    %260 = tpu.matmul %250, %7, %cst_147 {dimension_numbers = #tpu.dot_dimension_numbers<[1], [0], [0], [1], [0, 0, 1, 1], [], []>} : vector<8x32xf32>, vector<32x32xf32>, vector<8x32xf32> -> vector<8x32xf32>
    %261 = arith.addf %259, %260 : vector<8x32xf32>
    %262 = math.tanh %261 : vector<8x32xf32>
    %cst_148 = arith.constant dense<0.000000e+00> : vector<8x32xf32>
    %263 = tpu.matmul %250, %8, %cst_148 {dimension_numbers = #tpu.dot_dimension_numbers<[1], [0], [0], [1], [0, 0, 1, 1], [], []>} : vector<8x32xf32>, vector<32x32xf32>, vector<8x32xf32> -> vector<8x32xf32>
    %cst_149 = arith.constant dense<0.000000e+00> : vector<8x32xf32>
    %264 = tpu.matmul %255, %9, %cst_149 {dimension_numbers = #tpu.dot_dimension_numbers<[1], [0], [0], [1], [0, 0, 1, 1], [], []>} : vector<8x32xf32>, vector<32x32xf32>, vector<8x32xf32> -> vector<8x32xf32>
    %265 = arith.addf %263, %264 : vector<8x32xf32>
    %266 = arith.addf %265, %12 : vector<8x32xf32>
    %267 = math.tanh %266 : vector<8x32xf32>
    %c640 = arith.constant 640 : index
    %c0_150 = arith.constant 0 : index
    %268 = vector.load %arg7[%c640, %c0_150] : memref<896x10xf32, #tpu.memory_space<vmem>>, vector<32x10xf32>
    %cst_151 = arith.constant dense<0.000000e+00> : vector<8x10xf32>
    %269 = tpu.matmul %267, %268, %cst_151 {dimension_numbers = #tpu.dot_dimension_numbers<[1], [0], [0], [1], [0, 0, 1, 1], [], []>} : vector<8x32xf32>, vector<32x10xf32>, vector<8x10xf32> -> vector<8x10xf32>
    %270 = arith.addf %258, %269 : vector<8x10xf32>
    %c176 = arith.constant 176 : index
    %c0_152 = arith.constant 0 : index
    %271 = vector.load %arg10[%c176, %c0_152] : memref<224x32xf32, #tpu.memory_space<vmem>>, vector<8x32xf32>
    %cst_153 = arith.constant dense<0.000000e+00> : vector<8x32xf32>
    %272 = tpu.matmul %262, %7, %cst_153 {dimension_numbers = #tpu.dot_dimension_numbers<[1], [0], [0], [1], [0, 0, 1, 1], [], []>} : vector<8x32xf32>, vector<32x32xf32>, vector<8x32xf32> -> vector<8x32xf32>
    %273 = arith.addf %271, %272 : vector<8x32xf32>
    %274 = math.tanh %273 : vector<8x32xf32>
    %cst_154 = arith.constant dense<0.000000e+00> : vector<8x32xf32>
    %275 = tpu.matmul %262, %8, %cst_154 {dimension_numbers = #tpu.dot_dimension_numbers<[1], [0], [0], [1], [0, 0, 1, 1], [], []>} : vector<8x32xf32>, vector<32x32xf32>, vector<8x32xf32> -> vector<8x32xf32>
    %cst_155 = arith.constant dense<0.000000e+00> : vector<8x32xf32>
    %276 = tpu.matmul %267, %9, %cst_155 {dimension_numbers = #tpu.dot_dimension_numbers<[1], [0], [0], [1], [0, 0, 1, 1], [], []>} : vector<8x32xf32>, vector<32x32xf32>, vector<8x32xf32> -> vector<8x32xf32>
    %277 = arith.addf %275, %276 : vector<8x32xf32>
    %278 = arith.addf %277, %12 : vector<8x32xf32>
    %279 = math.tanh %278 : vector<8x32xf32>
    %c672 = arith.constant 672 : index
    %c0_156 = arith.constant 0 : index
    %280 = vector.load %arg7[%c672, %c0_156] : memref<896x10xf32, #tpu.memory_space<vmem>>, vector<32x10xf32>
    %cst_157 = arith.constant dense<0.000000e+00> : vector<8x10xf32>
    %281 = tpu.matmul %279, %280, %cst_157 {dimension_numbers = #tpu.dot_dimension_numbers<[1], [0], [0], [1], [0, 0, 1, 1], [], []>} : vector<8x32xf32>, vector<32x10xf32>, vector<8x10xf32> -> vector<8x10xf32>
    %282 = arith.addf %270, %281 : vector<8x10xf32>
    %c184 = arith.constant 184 : index
    %c0_158 = arith.constant 0 : index
    %283 = vector.load %arg10[%c184, %c0_158] : memref<224x32xf32, #tpu.memory_space<vmem>>, vector<8x32xf32>
    %cst_159 = arith.constant dense<0.000000e+00> : vector<8x32xf32>
    %284 = tpu.matmul %274, %7, %cst_159 {dimension_numbers = #tpu.dot_dimension_numbers<[1], [0], [0], [1], [0, 0, 1, 1], [], []>} : vector<8x32xf32>, vector<32x32xf32>, vector<8x32xf32> -> vector<8x32xf32>
    %285 = arith.addf %283, %284 : vector<8x32xf32>
    %286 = math.tanh %285 : vector<8x32xf32>
    %cst_160 = arith.constant dense<0.000000e+00> : vector<8x32xf32>
    %287 = tpu.matmul %274, %8, %cst_160 {dimension_numbers = #tpu.dot_dimension_numbers<[1], [0], [0], [1], [0, 0, 1, 1], [], []>} : vector<8x32xf32>, vector<32x32xf32>, vector<8x32xf32> -> vector<8x32xf32>
    %cst_161 = arith.constant dense<0.000000e+00> : vector<8x32xf32>
    %288 = tpu.matmul %279, %9, %cst_161 {dimension_numbers = #tpu.dot_dimension_numbers<[1], [0], [0], [1], [0, 0, 1, 1], [], []>} : vector<8x32xf32>, vector<32x32xf32>, vector<8x32xf32> -> vector<8x32xf32>
    %289 = arith.addf %287, %288 : vector<8x32xf32>
    %290 = arith.addf %289, %12 : vector<8x32xf32>
    %291 = math.tanh %290 : vector<8x32xf32>
    %c704 = arith.constant 704 : index
    %c0_162 = arith.constant 0 : index
    %292 = vector.load %arg7[%c704, %c0_162] : memref<896x10xf32, #tpu.memory_space<vmem>>, vector<32x10xf32>
    %cst_163 = arith.constant dense<0.000000e+00> : vector<8x10xf32>
    %293 = tpu.matmul %291, %292, %cst_163 {dimension_numbers = #tpu.dot_dimension_numbers<[1], [0], [0], [1], [0, 0, 1, 1], [], []>} : vector<8x32xf32>, vector<32x10xf32>, vector<8x10xf32> -> vector<8x10xf32>
    %294 = arith.addf %282, %293 : vector<8x10xf32>
    %c192_164 = arith.constant 192 : index
    %c0_165 = arith.constant 0 : index
    %295 = vector.load %arg10[%c192_164, %c0_165] : memref<224x32xf32, #tpu.memory_space<vmem>>, vector<8x32xf32>
    %cst_166 = arith.constant dense<0.000000e+00> : vector<8x32xf32>
    %296 = tpu.matmul %286, %7, %cst_166 {dimension_numbers = #tpu.dot_dimension_numbers<[1], [0], [0], [1], [0, 0, 1, 1], [], []>} : vector<8x32xf32>, vector<32x32xf32>, vector<8x32xf32> -> vector<8x32xf32>
    %297 = arith.addf %295, %296 : vector<8x32xf32>
    %298 = math.tanh %297 : vector<8x32xf32>
    %cst_167 = arith.constant dense<0.000000e+00> : vector<8x32xf32>
    %299 = tpu.matmul %286, %8, %cst_167 {dimension_numbers = #tpu.dot_dimension_numbers<[1], [0], [0], [1], [0, 0, 1, 1], [], []>} : vector<8x32xf32>, vector<32x32xf32>, vector<8x32xf32> -> vector<8x32xf32>
    %cst_168 = arith.constant dense<0.000000e+00> : vector<8x32xf32>
    %300 = tpu.matmul %291, %9, %cst_168 {dimension_numbers = #tpu.dot_dimension_numbers<[1], [0], [0], [1], [0, 0, 1, 1], [], []>} : vector<8x32xf32>, vector<32x32xf32>, vector<8x32xf32> -> vector<8x32xf32>
    %301 = arith.addf %299, %300 : vector<8x32xf32>
    %302 = arith.addf %301, %12 : vector<8x32xf32>
    %303 = math.tanh %302 : vector<8x32xf32>
    %c736 = arith.constant 736 : index
    %c0_169 = arith.constant 0 : index
    %304 = vector.load %arg7[%c736, %c0_169] : memref<896x10xf32, #tpu.memory_space<vmem>>, vector<32x10xf32>
    %cst_170 = arith.constant dense<0.000000e+00> : vector<8x10xf32>
    %305 = tpu.matmul %303, %304, %cst_170 {dimension_numbers = #tpu.dot_dimension_numbers<[1], [0], [0], [1], [0, 0, 1, 1], [], []>} : vector<8x32xf32>, vector<32x10xf32>, vector<8x10xf32> -> vector<8x10xf32>
    %306 = arith.addf %294, %305 : vector<8x10xf32>
    %c200 = arith.constant 200 : index
    %c0_171 = arith.constant 0 : index
    %307 = vector.load %arg10[%c200, %c0_171] : memref<224x32xf32, #tpu.memory_space<vmem>>, vector<8x32xf32>
    %cst_172 = arith.constant dense<0.000000e+00> : vector<8x32xf32>
    %308 = tpu.matmul %298, %7, %cst_172 {dimension_numbers = #tpu.dot_dimension_numbers<[1], [0], [0], [1], [0, 0, 1, 1], [], []>} : vector<8x32xf32>, vector<32x32xf32>, vector<8x32xf32> -> vector<8x32xf32>
    %309 = arith.addf %307, %308 : vector<8x32xf32>
    %310 = math.tanh %309 : vector<8x32xf32>
    %cst_173 = arith.constant dense<0.000000e+00> : vector<8x32xf32>
    %311 = tpu.matmul %298, %8, %cst_173 {dimension_numbers = #tpu.dot_dimension_numbers<[1], [0], [0], [1], [0, 0, 1, 1], [], []>} : vector<8x32xf32>, vector<32x32xf32>, vector<8x32xf32> -> vector<8x32xf32>
    %cst_174 = arith.constant dense<0.000000e+00> : vector<8x32xf32>
    %312 = tpu.matmul %303, %9, %cst_174 {dimension_numbers = #tpu.dot_dimension_numbers<[1], [0], [0], [1], [0, 0, 1, 1], [], []>} : vector<8x32xf32>, vector<32x32xf32>, vector<8x32xf32> -> vector<8x32xf32>
    %313 = arith.addf %311, %312 : vector<8x32xf32>
    %314 = arith.addf %313, %12 : vector<8x32xf32>
    %315 = math.tanh %314 : vector<8x32xf32>
    %c768 = arith.constant 768 : index
    %c0_175 = arith.constant 0 : index
    %316 = vector.load %arg7[%c768, %c0_175] : memref<896x10xf32, #tpu.memory_space<vmem>>, vector<32x10xf32>
    %cst_176 = arith.constant dense<0.000000e+00> : vector<8x10xf32>
    %317 = tpu.matmul %315, %316, %cst_176 {dimension_numbers = #tpu.dot_dimension_numbers<[1], [0], [0], [1], [0, 0, 1, 1], [], []>} : vector<8x32xf32>, vector<32x10xf32>, vector<8x10xf32> -> vector<8x10xf32>
    %318 = arith.addf %306, %317 : vector<8x10xf32>
    %c208 = arith.constant 208 : index
    %c0_177 = arith.constant 0 : index
    %319 = vector.load %arg10[%c208, %c0_177] : memref<224x32xf32, #tpu.memory_space<vmem>>, vector<8x32xf32>
    %cst_178 = arith.constant dense<0.000000e+00> : vector<8x32xf32>
    %320 = tpu.matmul %310, %7, %cst_178 {dimension_numbers = #tpu.dot_dimension_numbers<[1], [0], [0], [1], [0, 0, 1, 1], [], []>} : vector<8x32xf32>, vector<32x32xf32>, vector<8x32xf32> -> vector<8x32xf32>
    %321 = arith.addf %319, %320 : vector<8x32xf32>
    %322 = math.tanh %321 : vector<8x32xf32>
    %cst_179 = arith.constant dense<0.000000e+00> : vector<8x32xf32>
    %323 = tpu.matmul %310, %8, %cst_179 {dimension_numbers = #tpu.dot_dimension_numbers<[1], [0], [0], [1], [0, 0, 1, 1], [], []>} : vector<8x32xf32>, vector<32x32xf32>, vector<8x32xf32> -> vector<8x32xf32>
    %cst_180 = arith.constant dense<0.000000e+00> : vector<8x32xf32>
    %324 = tpu.matmul %315, %9, %cst_180 {dimension_numbers = #tpu.dot_dimension_numbers<[1], [0], [0], [1], [0, 0, 1, 1], [], []>} : vector<8x32xf32>, vector<32x32xf32>, vector<8x32xf32> -> vector<8x32xf32>
    %325 = arith.addf %323, %324 : vector<8x32xf32>
    %326 = arith.addf %325, %12 : vector<8x32xf32>
    %327 = math.tanh %326 : vector<8x32xf32>
    %c800 = arith.constant 800 : index
    %c0_181 = arith.constant 0 : index
    %328 = vector.load %arg7[%c800, %c0_181] : memref<896x10xf32, #tpu.memory_space<vmem>>, vector<32x10xf32>
    %cst_182 = arith.constant dense<0.000000e+00> : vector<8x10xf32>
    %329 = tpu.matmul %327, %328, %cst_182 {dimension_numbers = #tpu.dot_dimension_numbers<[1], [0], [0], [1], [0, 0, 1, 1], [], []>} : vector<8x32xf32>, vector<32x10xf32>, vector<8x10xf32> -> vector<8x10xf32>
    %330 = arith.addf %318, %329 : vector<8x10xf32>
    %c216 = arith.constant 216 : index
    %c0_183 = arith.constant 0 : index
    %331 = vector.load %arg10[%c216, %c0_183] : memref<224x32xf32, #tpu.memory_space<vmem>>, vector<8x32xf32>
    %cst_184 = arith.constant dense<0.000000e+00> : vector<8x32xf32>
    %332 = tpu.matmul %322, %7, %cst_184 {dimension_numbers = #tpu.dot_dimension_numbers<[1], [0], [0], [1], [0, 0, 1, 1], [], []>} : vector<8x32xf32>, vector<32x32xf32>, vector<8x32xf32> -> vector<8x32xf32>
    %333 = arith.addf %331, %332 : vector<8x32xf32>
    %334 = math.tanh %333 : vector<8x32xf32>
    %cst_185 = arith.constant dense<0.000000e+00> : vector<8x32xf32>
    %335 = tpu.matmul %322, %8, %cst_185 {dimension_numbers = #tpu.dot_dimension_numbers<[1], [0], [0], [1], [0, 0, 1, 1], [], []>} : vector<8x32xf32>, vector<32x32xf32>, vector<8x32xf32> -> vector<8x32xf32>
    %cst_186 = arith.constant dense<0.000000e+00> : vector<8x32xf32>
    %336 = tpu.matmul %327, %9, %cst_186 {dimension_numbers = #tpu.dot_dimension_numbers<[1], [0], [0], [1], [0, 0, 1, 1], [], []>} : vector<8x32xf32>, vector<32x32xf32>, vector<8x32xf32> -> vector<8x32xf32>
    %337 = arith.addf %335, %336 : vector<8x32xf32>
    %338 = arith.addf %337, %12 : vector<8x32xf32>
    %339 = math.tanh %338 : vector<8x32xf32>
    %c832 = arith.constant 832 : index
    %c0_187 = arith.constant 0 : index
    %340 = vector.load %arg7[%c832, %c0_187] : memref<896x10xf32, #tpu.memory_space<vmem>>, vector<32x10xf32>
    %cst_188 = arith.constant dense<0.000000e+00> : vector<8x10xf32>
    %341 = tpu.matmul %339, %340, %cst_188 {dimension_numbers = #tpu.dot_dimension_numbers<[1], [0], [0], [1], [0, 0, 1, 1], [], []>} : vector<8x32xf32>, vector<32x10xf32>, vector<8x10xf32> -> vector<8x10xf32>
    %342 = arith.addf %330, %341 : vector<8x10xf32>
    %cst_189 = arith.constant dense<0.000000e+00> : vector<8x32xf32>
    %343 = tpu.matmul %334, %8, %cst_189 {dimension_numbers = #tpu.dot_dimension_numbers<[1], [0], [0], [1], [0, 0, 1, 1], [], []>} : vector<8x32xf32>, vector<32x32xf32>, vector<8x32xf32> -> vector<8x32xf32>
    %cst_190 = arith.constant dense<0.000000e+00> : vector<8x32xf32>
    %344 = tpu.matmul %339, %9, %cst_190 {dimension_numbers = #tpu.dot_dimension_numbers<[1], [0], [0], [1], [0, 0, 1, 1], [], []>} : vector<8x32xf32>, vector<32x32xf32>, vector<8x32xf32> -> vector<8x32xf32>
    %345 = arith.addf %343, %344 : vector<8x32xf32>
    %346 = arith.addf %345, %12 : vector<8x32xf32>
    %347 = math.tanh %346 : vector<8x32xf32>
    %c864 = arith.constant 864 : index
    %c0_191 = arith.constant 0 : index
    %348 = vector.load %arg7[%c864, %c0_191] : memref<896x10xf32, #tpu.memory_space<vmem>>, vector<32x10xf32>
    %cst_192 = arith.constant dense<0.000000e+00> : vector<8x10xf32>
    %349 = tpu.matmul %347, %348, %cst_192 {dimension_numbers = #tpu.dot_dimension_numbers<[1], [0], [0], [1], [0, 0, 1, 1], [], []>} : vector<8x32xf32>, vector<32x10xf32>, vector<8x10xf32> -> vector<8x10xf32>
    %350 = arith.addf %342, %349 : vector<8x10xf32>
    %c0_193 = arith.constant 0 : index
    %c0_194 = arith.constant 0 : index
    %351 = vector.load %arg9[%c0_193, %c0_194] : memref<8x10xf32, #tpu.memory_space<vmem>>, vector<8x10xf32>
    tpu.vector_store %arg9[%c0_193, %c0_194], %350 {strides = array<i32>} : memref<8x10xf32, #tpu.memory_space<vmem>>, vector<8x10xf32>,
    return
  }
}

</mosaic_0001>

<bundles_post_ra>
// kernel: tpu_custom_call.1
= control target key start
LH: loop header
LB: loop body
LE: loop exit
PB: predicated region body
PF: predicated region fallthrough
CT: control target
= control target key end

     0   :  { %vm70_vm0 = vcmask 130048   ;;  %s12830_s0 = inlined_call_operand.vmem [shape: f32[224,16], index: 0, kind: input, shape index: {}]   ;;  %s12831_s1 = inlined_call_operand.vmem [shape: f32[16,32], index: 1, kind: input, shape index: {}]   ;;  %s12832_s2 = inlined_call_operand.vmem [shape: f32[32,32], index: 2, kind: input, shape index: {}]   ;;  %s12833_s3 = inlined_call_operand.vmem [shape: f32[1,32], index: 3, kind: input, shape index: {}]   ;;  %s12834_s4 = inlined_call_operand.vmem [shape: f32[32,32], index: 4, kind: input, shape index: {}]   ;;  %s12835_s5 = inlined_call_operand.vmem [shape: f32[32,32], index: 5, kind: input, shape index: {}]   ;;  %s12836_s6 = inlined_call_operand.vmem [shape: f32[1,32], index: 6, kind: input, shape index: {}]   ;;  %s12837_s7 = inlined_call_operand.vmem [shape: f32[896,10], index: 7, kind: input, shape index: {}]   ;;  %s12838_s8 = inlined_call_operand.vmem [shape: f32[1,10], index: 8, kind: input, shape index: {}]   ;;  %s12839_s9 = inlined_call_operand.hbm [shape: f32[8,10], index: 9, kind: output, shape index: {}]  }
   0x1   :  { %v62_v0 = vld [vmem:[%s12831_s1 + $0x8] sm:$0xff]  ;;  %v61_v1 = vld [vmem:[%s12831_s1] sm:$0xff] }
   0x2   :  { %v33_v2 = vld [vmem:[%s12830_s0] sm:$0xff]  ;;  %9377 = vmatprep.subr.mxu0 %v62_v0 }
   0x3   :  { %9381 = vmatprep.mubr.msk.f32.mxu0 %vm70_vm0, %v33_v2 }
   0x4   :  { %14 = vsyncpa [#allocation5], 0  ;;  %9378 = vmatpush3.msra.mxu0 %v62_v0  ;;  %v34_v3 = vld [vmem:[%s12830_s0 + $0x8] sm:$0xff]  ;;  %v10890_v4 = vld [vmem:[%s12832_s2 + $0x18] sm:$0xff]  ;;  %v10820_v5 = vmov 0.0   ;;  %vm10821_vm1 = vmmov 0  }
   0x5   :  { %9379 = vmatprep.subr.mxu0 %v61_v1  ;;  %9423 = vmatprep.subr.mxu1 %v10820_v5  ;;  %v10896_v6 = vld [vmem:[%s12832_s2 + $0x10] sm:$0xff]  ;;  %v10906_v7 = vld [vmem:[%s12832_s2 + $0x8] sm:$0xff]  ;;  %v10913_v8 = vld [vmem:[%s12832_s2] sm:$0xff]  ;;  %vm360_vm2 = vcmask 261120   ;;  %s10822_s25 = smov [#allocation4]   ;;  %vm8635_vm3 = vcmask 80896  }
   0x6   :  { %9380 = vmatpush3.msra.mxu0 %v61_v1  ;;  %9431 = vmatprep.mubr.msk.f32.mxu1 %vm10821_vm1, %v10820_v5  ;;  %v10922_v9 = vld [vmem:[%s12833_s3] ss:$0 sm:$0xff]  ;;  %v10931_v15 = vld [vmem:[%s12835_s5 + $0x18] sm:$0xff]  ;;  %v10937_v17 = vld [vmem:[%s12835_s5 + $0x10] sm:$0xff] }
   0x7   :  { %9382 = vmatmul.mubr.msk.f32.vlgmr.msra.gmra.mxu0 %vm70_vm0, %v34_v3  ;;  %9424 = vmatpush3.msra.mxu1 %v10890_v4  ;;  %v10946_v18 = vld [vmem:[%s12835_s5 + $0x8] sm:$0xff]  ;;  %v10953_v19 = vld [vmem:[%s12835_s5] sm:$0xff]  ;;  %v10960_v20 = vld [vmem:[%s12834_s4 + $0x18] sm:$0xff] }
   0x8   :  { %9500 = vmatprep.subr.mxu0 %v10820_v5  ;;  %9425 = vmatprep.subr.mxu1 %v10820_v5  ;;  %v10968_v21 = vld [vmem:[%s12834_s4 + $0x10] sm:$0xff]  ;;  %v10977_v22 = vld [vmem:[%s12834_s4 + $0x8] sm:$0xff]  ;;  %v10984_v23 = vld [vmem:[%s12834_s4] sm:$0xff] }
   0x9   :  { %9426 = vmatpush3.msra.mxu1 %v10896_v6  ;;  %v641_v24 = vld [vmem:[%s12837_s7 + $0x18] sm:$0xff]  ;;  %v35_v25 = vld [vmem:[%s12830_s0 + $0x10] sm:$0xff]  ;;  %v639_v28 = vld [vmem:[%s12837_s7 + $0x8] sm:$0xff] }
   0xa   :  { %9427 = vmatprep.subr.mxu1 %v10820_v5  ;;  %v640_v26 = vld [vmem:[%s12837_s7 + $0x10] sm:$0xff]  ;;  %9384 = vmatprep.mubr.msk.f32.mxu0 %vm70_vm0, %v35_v25  ;;  %v36_v27 = vld [vmem:[%s12830_s0 + $0x18] sm:$0xff]  ;;  %v638_v29 = vld [vmem:[%s12837_s7] sm:$0xff] }
   0xb   :  { %9428 = vmatpush3.msra.mxu1 %v10906_v7  ;;  %9385 = vmatmul.mubr.msk.f32.gmra.mxu0 %vm70_vm0, %v36_v27  ;;  %v937_v30 = vld [vmem:[%s12837_s7 + $0x38] sm:$0xff]  ;;  %v37_v31 = vld [vmem:[%s12830_s0 + $0x20] sm:$0xff]  ;;  %v38_v32 = vld [vmem:[%s12830_s0 + $0x28] sm:$0xff] }
   0xc   :  { %9429 = vmatprep.subr.mxu1 %v10820_v5  ;;  %9501 = vmatpush3.msra.mxu0 %v937_v30  ;;  %v39_v33 = vld [vmem:[%s12830_s0 + $0x30] sm:$0xff]  ;;  %v40_v34 = vld [vmem:[%s12830_s0 + $0x38] sm:$0xff]  ;;  %v41_v35 = vld [vmem:[%s12830_s0 + $0x40] sm:$0xff] }
   0xd   :  { %9430 = vmatpush3.msra.mxu1 %v10913_v8  ;;  %9387 = vmatprep.mubr.msk.f32.mxu0 %vm70_vm0, %v37_v31  ;;  %v42_v36 = vld [vmem:[%s12830_s0 + $0x48] sm:$0xff]  ;;  %v11048_v41 = vld [vmem:[%s12836_s6] ss:$0 sm:$0xff]  ;;  %v936_v54 = vld [vmem:[%s12837_s7 + $0x30] sm:$0xff] }
   0xe   :  { %9434 = vmatprep.subr.mxu1 %v10820_v5  ;;  %9502 = vmatprep.subr.mxu0 %v10820_v5  ;;  %v43_v55 = vld [vmem:[%s12830_s0 + $0x50] sm:$0xff]  ;;  %v44_v56 = vld [vmem:[%s12830_s0 + $0x58] sm:$0xff]  ;;  %v45_v57 = vld [vmem:[%s12830_s0 + $0x60] sm:$0xff] }
   0xf   :  { %9388 = vmatmul.mubr.msk.f32.gmra.mxu0 %vm70_vm0, %v38_v32  ;;  %v46_v58 = vld [vmem:[%s12830_s0 + $0x68] sm:$0xff]  ;;  %v47_v59 = vld [vmem:[%s12830_s0 + $0x70] sm:$0xff]  ;;  %v48_v60 = vld [vmem:[%s12830_s0 + $0x78] sm:$0xff] }
  0x10   :  { %9390 = vmatprep.mubr.msk.f32.mxu0 %vm70_vm0, %v39_v33  ;;  %9503 = vmatpush3.msra.mxu0 %v936_v54  ;;  %v935_v61 = vld [vmem:[%s12837_s7 + $0x28] sm:$0xff]  ;;  %v49_v62 = vld [vmem:[%s12830_s0 + $0x80] sm:$0xff]  ;;  %v51_v0 = vld [vmem:[%s12830_s0 + $0x90] sm:$0xff] }
  0x11   :  { %9504 = vmatprep.subr.mxu0 %v10820_v5  ;;  %v50_v63 = vld [vmem:[%s12830_s0 + $0x88] sm:$0xff]  ;;  %v52_v1 = vld [vmem:[%s12830_s0 + $0x98] sm:$0xff]  ;;  %v53_v2 = vld [vmem:[%s12830_s0 + $0xa0] sm:$0xff] }
  0x12   :  { %9505 = vmatpush3.msra.mxu0 %v935_v61  ;;  %v54_v3 = vld [vmem:[%s12830_s0 + $0xa8] sm:$0xff] }
  0x13   :  { %9391 = vmatmul.mubr.msk.f32.gmra.mxu0 %vm70_vm0, %v40_v34  ;;  %9506 = vmatprep.subr.mxu0 %v10820_v5 }
  0x14   :  { %9393 = vmatprep.mubr.msk.f32.mxu0 %vm70_vm0, %v41_v35 }
  0x17   :  { %9394 = vmatmul.mubr.msk.f32.gmra.mxu0 %vm70_vm0, %v42_v36 }
  0x18   :  { %9396 = vmatprep.mubr.msk.f32.mxu0 %vm70_vm0, %v43_v55 }
  0x1b   :  { %9397 = vmatmul.mubr.msk.f32.gmra.mxu0 %vm70_vm0, %v44_v56 }
  0x1c   :  { %9399 = vmatprep.mubr.msk.f32.mxu0 %vm70_vm0, %v45_v57 }
  0x1f   :  { %9400 = vmatmul.mubr.msk.f32.gmra.mxu0 %vm70_vm0, %v46_v58 }
  0x20   :  { %9402 = vmatprep.mubr.msk.f32.mxu0 %vm70_vm0, %v47_v59 }
  0x23   :  { %9403 = vmatmul.mubr.msk.f32.gmra.mxu0 %vm70_vm0, %v48_v60 }
  0x24   :  { %9405 = vmatprep.mubr.msk.f32.mxu0 %vm70_vm0, %v49_v62 }
  0x27   :  { %9406 = vmatmul.mubr.msk.f32.gmra.mxu0 %vm70_vm0, %v50_v63 }
  0x28   :  { %9408 = vmatprep.mubr.msk.f32.mxu0 %vm70_vm0, %v51_v0 }
  0x2b   :  { %9409 = vmatmul.mubr.msk.f32.gmra.mxu0 %vm70_vm0, %v52_v1 }
  0x2c   :  { %9411 = vmatprep.mubr.msk.f32.mxu0 %vm70_vm0, %v53_v2 }
  0x2f   :  { %9412 = vmatmul.mubr.msk.f32.gmra.mxu0 %vm70_vm0, %v54_v3 }
  0xc7   :  { %v9383_v10 = vpop.f32.mrf.mxu0 }
  0xc8   :  { %v227_v11 = vadd.f32 %v9383_v10, %v10922_v9  ;;  %v55_v10 = vld [vmem:[%s12830_s0 + $0xb0] sm:$0xff] }
  0xc9   :  { %v221_v12 = vpop.f32.mrf.mxu0  ;;  %9414 = vmatprep.mubr.msk.f32.mxu0 %vm70_vm0, %v55_v10 }
  0xca   :  { %362 = vst.msk [vmem:[#allocation2 + $0x8] sm:$0xff] %vm360_vm2, %v227_v11  ;;  %v222_v13 = vadd.f32 %v10922_v9, %v221_v12  ;;  %v56_v11 = vld [vmem:[%s12830_s0 + $0xb8] sm:$0xff]  ;;  %v934_v12 = vld [vmem:[%s12837_s7 + $0x20] sm:$0xff] }
  0xcb   :  { %v9386_v50 = vpop.f32.mrf.mxu0  ;;  %9415 = vmatmul.mubr.msk.f32.gmra.mxu0 %vm70_vm0, %v56_v11 }
  0xcc   :  { %361 = vst.msk [vmem:[#allocation2] sm:$0xff] %vm360_vm2, %v222_v13  ;;  %v237_v51 = vadd.f32 %v9386_v50, %v10922_v9  ;;  %9507 = vmatpush3.msra.mxu0 %v934_v12  ;;  %v57_v13 = vld [vmem:[%s12830_s0 + $0xc0] sm:$0xff] }
  0xcd   :  { %v231_v52 = vpop.f32.mrf.mxu0  ;;  %9522 = vmatprep.subr.mxu0 %v10820_v5  ;;  %9417 = vmatprep.mubr.msk.f32.mxu0 %vm70_vm0, %v57_v13 }
  0xce   :  { %364 = vst.msk [vmem:[#allocation2 + $0x18] sm:$0xff] %vm360_vm2, %v237_v51  ;;  %v232_v53 = vadd.f32 %v10922_v9, %v231_v52 }
  0xcf   :  { %v9389_v25 = vpop.f32.mrf.mxu0 }
  0xd0   :  { %363 = vst.msk [vmem:[#allocation2 + $0x10] sm:$0xff] %vm360_vm2, %v232_v53 }
  0xd1   :  { %v417_v46 = vld [vmem:[#allocation2 + $0x8] sm:$0xff]  ;;  %v241_v27 = vpop.f32.mrf.mxu0 }
  0xd3   :  { %v408_v14 = vld [vmem:[#allocation2] sm:$0xff] }
  0xd4   :  { %10647 = vtanh.f32 %v408_v14  ;;  %v58_v14 = vld [vmem:[%s12830_s0 + $0xc8] sm:$0xff] }
  0xd5   :  { %9418 = vmatmul.mubr.msk.f32.gmra.mxu0 %vm70_vm0, %v58_v14 }
  0xe1   :  { %v10648_v16 = vpop.eup %10647 }
  0xe2   :  { %9432 = vmatmul.mubr.msk.f32.vlgmr.msra.gmra.mxu1 %vm360_vm2, %v10648_v16 }
  0xe3   :  { %9435 = vmatpush3.msra.mxu1 %v10931_v15  ;;  %9442 = vmatprep.mubr.msk.f32.mxu1 %vm10821_vm1, %v10820_v5 }
  0xe4   :  { %9436 = vmatprep.subr.mxu1 %v10820_v5 }
  0xe5   :  { %9437 = vmatpush3.msra.mxu1 %v10937_v17 }
  0xe6   :  { %9438 = vmatprep.subr.mxu1 %v10820_v5 }
  0xe7   :  { %9439 = vmatpush3.msra.mxu1 %v10946_v18 }
  0xe8   :  { %9440 = vmatprep.subr.mxu1 %v10820_v5 }
  0xe9   :  { %9441 = vmatpush3.msra.mxu1 %v10953_v19 }
  0xea   :  { %9443 = vmatmul.mubr.f32.vlgmr.msra.gmra.mxu1 %v10820_v5  ;;  %9445 = vmatprep.subr.mxu1 %v10820_v5 }
  0xeb   :  { %9446 = vmatpush3.msra.mxu1 %v10960_v20  ;;  %9453 = vmatprep.mubr.msk.f32.mxu1 %vm10821_vm1, %v10820_v5 }
  0xec   :  { %9447 = vmatprep.subr.mxu1 %v10820_v5 }
  0xed   :  { %9448 = vmatpush3.msra.mxu1 %v10968_v21 }
  0xee   :  { %9449 = vmatprep.subr.mxu1 %v10820_v5 }
  0xef   :  { %9450 = vmatpush3.msra.mxu1 %v10977_v22 }
  0xf0   :  { %9451 = vmatprep.subr.mxu1 %v10820_v5 }
  0xf1   :  { %9452 = vmatpush3.msra.mxu1 %v10984_v23 }
  0xf2   :  { %9454 = vmatmul.mubr.msk.f32.vlgmr.msra.gmra.mxu1 %vm360_vm2, %v10648_v16  ;;  %9456 = vmatprep.subr.mxu1 %v10820_v5  ;;  %v59_v16 = vld [vmem:[%s12830_s0 + $0xd0] sm:$0xff] }
  0xf3   :  { %9464 = vmatprep.mubr.msk.f32.mxu1 %vm10821_vm1, %v10820_v5  ;;  %9457 = vmatpush3.msra.mxu1 %v641_v24  ;;  %v60_v24 = vld [vmem:[%s12830_s0 + $0xd8] sm:$0xff] }
  0xf4   :  { %9458 = vmatprep.subr.mxu1 %v10820_v5  ;;  %9420 = vmatprep.mubr.msk.f32.mxu0 %vm70_vm0, %v59_v16 }
  0xf5   :  { %9459 = vmatpush3.msra.mxu1 %v640_v26  ;;  %9421 = vmatmul.mubr.msk.f32.gmra.mxu0 %vm70_vm0, %v60_v24  ;;  %v247_v26 = vadd.f32 %v9389_v25, %v10922_v9 }
  0xf6   :  { %9460 = vmatprep.subr.mxu1 %v10820_v5  ;;  %9508 = vmatprep.mubr.msk.f32.mxu0 %vm10821_vm1, %v10820_v5 }
  0xf7   :  { %9461 = vmatpush3.msra.mxu1 %v639_v28  ;;  %366 = vst.msk [vmem:[#allocation2 + $0x28] sm:$0xff] %vm360_vm2, %v247_v26  ;;  %v242_v28 = vadd.f32 %v10922_v9, %v241_v27 }
  0xf8   :  { %9462 = vmatprep.subr.mxu1 %v10820_v5 }
  0xf9   :  { %9463 = vmatpush3.msra.mxu1 %v638_v29  ;;  %365 = vst.msk [vmem:[#allocation2 + $0x20] sm:$0xff] %vm360_vm2, %v242_v28  ;;  %v9392_v29 = vpop.f32.mrf.mxu0 }
  0xfa   :  { %9467 = vmatprep.subr.mxu1 %v10820_v5  ;;  %v257_v30 = vadd.f32 %v9392_v29, %v10922_v9 }
  0xfb   :  { %v251_v31 = vpop.f32.mrf.mxu0 }
  0xfc   :  { %368 = vst.msk [vmem:[#allocation2 + $0x38] sm:$0xff] %vm360_vm2, %v257_v30  ;;  %v252_v32 = vadd.f32 %v10922_v9, %v251_v31 }
  0xfd   :  { %v9395_v33 = vpop.f32.mrf.mxu0 }
  0xfe   :  { %367 = vst.msk [vmem:[#allocation2 + $0x30] sm:$0xff] %vm360_vm2, %v252_v32  ;;  %v267_v34 = vadd.f32 %v9395_v33, %v10922_v9 }
  0xff   :  { %v261_v35 = vpop.f32.mrf.mxu0 }
 0x100   :  { %370 = vst.msk [vmem:[#allocation2 + $0x48] sm:$0xff] %vm360_vm2, %v267_v34  ;;  %v262_v36 = vadd.f32 %v10922_v9, %v261_v35 }
 0x101   :  { %v9398_v52 = vpop.f32.mrf.mxu0 }
 0x102   :  { %369 = vst.msk [vmem:[#allocation2 + $0x40] sm:$0xff] %vm360_vm2, %v262_v36  ;;  %v277_v53 = vadd.f32 %v9398_v52, %v10922_v9 }
 0x103   :  { %v271_v54 = vpop.f32.mrf.mxu0 }
 0x104   :  { %372 = vst.msk [vmem:[#allocation2 + $0x58] sm:$0xff] %vm360_vm2, %v277_v53  ;;  %v272_v55 = vadd.f32 %v10922_v9, %v271_v54 }
 0x105   :  { %v9401_v56 = vpop.f32.mrf.mxu0 }
 0x106   :  { %371 = vst.msk [vmem:[#allocation2 + $0x50] sm:$0xff] %vm360_vm2, %v272_v55  ;;  %v287_v57 = vadd.f32 %v9401_v56, %v10922_v9 }
 0x107   :  { %v281_v58 = vpop.f32.mrf.mxu0 }
 0x108   :  { %374 = vst.msk [vmem:[#allocation2 + $0x68] sm:$0xff] %vm360_vm2, %v287_v57  ;;  %v282_v59 = vadd.f32 %v10922_v9, %v281_v58 }
 0x109   :  { %v9404_v60 = vpop.f32.mrf.mxu0 }
 0x10a   :  { %373 = vst.msk [vmem:[#allocation2 + $0x60] sm:$0xff] %vm360_vm2, %v282_v59  ;;  %v297_v61 = vadd.f32 %v9404_v60, %v10922_v9  ;;  %v1529_v59 = vld [vmem:[%s12837_s7 + $0x78] sm:$0xff]  ;;  %v1528_v60 = vld [vmem:[%s12837_s7 + $0x70] sm:$0xff] }
 0x10b   :  { %v291_v62 = vpop.f32.mrf.mxu0 }
 0x10c   :  { %376 = vst.msk [vmem:[#allocation2 + $0x78] sm:$0xff] %vm360_vm2, %v297_v61  ;;  %v292_v63 = vadd.f32 %v10922_v9, %v291_v62  ;;  %v1527_v61 = vld [vmem:[%s12837_s7 + $0x68] sm:$0xff]  ;;  %v1526_v62 = vld [vmem:[%s12837_s7 + $0x60] sm:$0xff] }
 0x10d   :  { %v9407_v0 = vpop.f32.mrf.mxu0 }
 0x10e   :  { %375 = vst.msk [vmem:[#allocation2 + $0x70] sm:$0xff] %vm360_vm2, %v292_v63  ;;  %v307_v1 = vadd.f32 %v9407_v0, %v10922_v9  ;;  %v1308_v63 = vld [vmem:[#allocation2 + $0x20] sm:$0xff] }
 0x10f   :  { %v301_v2 = vpop.f32.mrf.mxu0 }
 0x110   :  { %378 = vst.msk [vmem:[#allocation2 + $0x88] sm:$0xff] %vm360_vm2, %v307_v1  ;;  %v302_v3 = vadd.f32 %v10922_v9, %v301_v2 }
 0x111   :  { %v9410_v10 = vpop.f32.mrf.mxu0 }
 0x112   :  { %377 = vst.msk [vmem:[#allocation2 + $0x80] sm:$0xff] %vm360_vm2, %v302_v3  ;;  %v317_v11 = vadd.f32 %v9410_v10, %v10922_v9 }
 0x113   :  { %v311_v12 = vpop.f32.mrf.mxu0 }
 0x114   :  { %380 = vst.msk [vmem:[#allocation2 + $0x98] sm:$0xff] %vm360_vm2, %v317_v11  ;;  %v312_v13 = vadd.f32 %v10922_v9, %v311_v12 }
 0x115   :  { %v9413_v14 = vpop.f32.mrf.mxu0 }
 0x116   :  { %379 = vst.msk [vmem:[#allocation2 + $0x90] sm:$0xff] %vm360_vm2, %v312_v13  ;;  %v327_v16 = vadd.f32 %v9413_v14, %v10922_v9 }
 0x117   :  { %v321_v24 = vpop.f32.mrf.mxu0 }
 0x118   :  { %382 = vst.msk [vmem:[#allocation2 + $0xa8] sm:$0xff] %vm360_vm2, %v327_v16  ;;  %v322_v25 = vadd.f32 %v10922_v9, %v321_v24 }
 0x11a   :  { %381 = vst.msk [vmem:[#allocation2 + $0xa0] sm:$0xff] %vm360_vm2, %v322_v25 }
 0x18b   :  { %v9416_v26 = vpop.f32.mrf.mxu0 }
 0x18c   :  { %v337_v27 = vadd.f32 %v9416_v26, %v10922_v9 }
 0x18d   :  { %v331_v28 = vpop.f32.mrf.mxu0 }
 0x18e   :  { %384 = vst.msk [vmem:[#allocation2 + $0xb8] sm:$0xff] %vm360_vm2, %v337_v27  ;;  %v332_v29 = vadd.f32 %v10922_v9, %v331_v28  ;;  %v1825_v28 = vld [vmem:[%s12837_s7 + $0x98] sm:$0xff] }
 0x190   :  { %383 = vst.msk [vmem:[#allocation2 + $0xb0] sm:$0xff] %vm360_vm2, %v332_v29  ;;  %v1824_v29 = vld [vmem:[%s12837_s7 + $0x90] sm:$0xff] }
 0x195   :  { %v9419_v30 = vpop.f32.mrf.mxu0 }
 0x196   :  { %v347_v31 = vadd.f32 %v9419_v30, %v10922_v9  ;;  %v1823_v30 = vld [vmem:[%s12837_s7 + $0x88] sm:$0xff] }
 0x197   :  { %v341_v32 = vpop.f32.mrf.mxu0 }
 0x198   :  { %386 = vst.msk [vmem:[#allocation2 + $0xc8] sm:$0xff] %vm360_vm2, %v347_v31  ;;  %v342_v33 = vadd.f32 %v10922_v9, %v341_v32  ;;  %v1822_v31 = vld [vmem:[%s12837_s7 + $0x80] sm:$0xff]  ;;  %v1604_v32 = vld [vmem:[#allocation2 + $0x28] sm:$0xff] }
 0x19a   :  { %385 = vst.msk [vmem:[#allocation2 + $0xc0] sm:$0xff] %vm360_vm2, %v342_v33 }
 0x1a2   :  { %v487_v37 = vpop.f32.mrf.mxu1 }
 0x1a3   :  { %v491_v47 = vadd.f32 %v487_v37, %v417_v46 }
 0x1a4   :  { %v9433_v38 = vpop.f32.mrf.mxu1 }
 0x1aa   :  { %v562_v39 = vpop.f32.mrf.mxu1 }
 0x1ac   :  { %v9444_v40 = vpop.f32.mrf.mxu1 }
 0x1b2   :  { %v632_v42 = vpop.f32.mrf.mxu1 }
 0x1b3   :  { %v633_v43 = vadd.f32 %v632_v42, %v562_v39  ;;  %v716_v39 = vld [vmem:[#allocation2 + $0x10] sm:$0xff] }
 0x1b4   :  { %v9455_v44 = vpop.f32.mrf.mxu1 }
 0x1b5   :  { %v636_v45 = vadd.f32 %v11048_v41, %v633_v43  ;;  %v9422_v34 = vpop.f32.mrf.mxu0 }
 0x1b6   :  { %v357_v35 = vadd.f32 %v9422_v34, %v10922_v9 }
 0x1b7   :  { %10649 = vtanh.f32 %v636_v45  ;;  %v351_v36 = vpop.f32.mrf.mxu0 }
 0x1b8   :  { %10651 = vtanh.f32 %v491_v47  ;;  %388 = vst.msk [vmem:[#allocation2 + $0xd8] sm:$0xff] %vm360_vm2, %v357_v35 }
 0x1c4   :  { %v10650_v48 = vpop.eup %10649 }
 0x1c5   :  { %9465 = vmatmul.mubr.msk.f32.vlgmr.msra.gmra.mxu1 %vm360_vm2, %v10650_v48  ;;  %v10652_v49 = vpop.eup %10651 }
 0x1c6   :  { %9468 = vmatpush3.msra.mxu1 %v10890_v4  ;;  %9475 = vmatprep.mubr.msk.f32.mxu1 %vm10821_vm1, %v10820_v5 }
 0x1c7   :  { %9469 = vmatprep.subr.mxu1 %v10820_v5 }
 0x1c8   :  { %9470 = vmatpush3.msra.mxu1 %v10896_v6 }
 0x1c9   :  { %9471 = vmatprep.subr.mxu1 %v10820_v5 }
 0x1ca   :  { %9472 = vmatpush3.msra.mxu1 %v10906_v7 }
 0x1cb   :  { %9473 = vmatprep.subr.mxu1 %v10820_v5 }
 0x1cc   :  { %9474 = vmatpush3.msra.mxu1 %v10913_v8 }
 0x1cd   :  { %9476 = vmatmul.mubr.msk.f32.vlgmr.msra.gmra.mxu1 %vm360_vm2, %v10652_v49  ;;  %9478 = vmatprep.subr.mxu1 %v10820_v5 }
 0x1ce   :  { %9479 = vmatpush3.msra.mxu1 %v10931_v15  ;;  %9486 = vmatprep.mubr.msk.f32.mxu1 %vm10821_vm1, %v10820_v5 }
 0x1cf   :  { %9480 = vmatprep.subr.mxu1 %v10820_v5 }
 0x1d0   :  { %9481 = vmatpush3.msra.mxu1 %v10937_v17 }
 0x1d1   :  { %9482 = vmatprep.subr.mxu1 %v10820_v5 }
 0x1d2   :  { %9483 = vmatpush3.msra.mxu1 %v10946_v18 }
 0x1d3   :  { %9484 = vmatprep.subr.mxu1 %v10820_v5 }
 0x1d4   :  { %9485 = vmatpush3.msra.mxu1 %v10953_v19 }
 0x1d5   :  { %9487 = vmatmul.mubr.msk.f32.vlgmr.msra.gmra.mxu1 %vm360_vm2, %v10650_v48  ;;  %9489 = vmatprep.subr.mxu1 %v10820_v5 }
 0x1d6   :  { %9490 = vmatpush3.msra.mxu1 %v10960_v20  ;;  %9497 = vmatprep.mubr.msk.f32.mxu1 %vm10821_vm1, %v10820_v5 }
 0x1d7   :  { %9491 = vmatprep.subr.mxu1 %v10820_v5 }
 0x1d8   :  { %9492 = vmatpush3.msra.mxu1 %v10968_v21 }
 0x1d9   :  { %9493 = vmatprep.subr.mxu1 %v10820_v5 }
 0x1da   :  { %9494 = vmatpush3.msra.mxu1 %v10977_v22 }
 0x1db   :  { %9495 = vmatprep.subr.mxu1 %v10820_v5 }
 0x1dc   :  { %9496 = vmatpush3.msra.mxu1 %v10984_v23 }
 0x1dd   :  { %9498 = vmatmul.mubr.msk.f32.vlgmr.msra.gmra.mxu1 %vm360_vm2, %v10652_v49  ;;  %9511 = vmatprep.subr.mxu1 %v10820_v5 }
 0x1de   :  { %9512 = vmatpush3.msra.mxu1 %v10890_v4  ;;  %9519 = vmatprep.mubr.msk.f32.mxu1 %vm10821_vm1, %v10820_v5 }
 0x1df   :  { %9513 = vmatprep.subr.mxu1 %v10820_v5 }
 0x1e0   :  { %9514 = vmatpush3.msra.mxu1 %v10896_v6 }
 0x1e1   :  { %9515 = vmatprep.subr.mxu1 %v10820_v5 }
 0x1e2   :  { %9516 = vmatpush3.msra.mxu1 %v10906_v7 }
 0x1e3   :  { %9517 = vmatprep.subr.mxu1 %v10820_v5 }
 0x1e4   :  { %9518 = vmatpush3.msra.mxu1 %v10913_v8 }
 0x1e5   :  { %9533 = vmatprep.subr.mxu1 %v10820_v5 }
 0x285   :  { %v11197_v37 = vpop.f32.mrf.mxu1 }
 0x287   :  { %v9466_v38 = vpop.f32.mrf.mxu1 }
 0x288   :  { %v352_v38 = vadd.f32 %v10922_v9, %v351_v36  ;;  %v1230_v9 = vld [vmem:[%s12837_s7 + $0x40] sm:$0xff] }
 0x28a   :  { %387 = vst.msk [vmem:[#allocation2 + $0xd0] sm:$0xff] %vm360_vm2, %v352_v38 }
 0x28d   :  { %v786_v40 = vpop.f32.mrf.mxu1 }
 0x28e   :  { %v790_v42 = vadd.f32 %v786_v40, %v716_v39  ;;  %v1233_v39 = vld [vmem:[%s12837_s7 + $0x58] sm:$0xff]  ;;  %v1232_v40 = vld [vmem:[%s12837_s7 + $0x50] sm:$0xff] }
 0x28f   :  { %v9477_v43 = vpop.f32.mrf.mxu1 }
 0x290   :  { %10653 = vtanh.f32 %v790_v42  ;;  %v1231_v42 = vld [vmem:[%s12837_s7 + $0x48] sm:$0xff]  ;;  %v1012_v43 = vld [vmem:[#allocation2 + $0x18] sm:$0xff] }
 0x295   :  { %v858_v44 = vpop.f32.mrf.mxu1 }
 0x297   :  { %v9488_v45 = vpop.f32.mrf.mxu1 }
 0x29d   :  { %v10654_v46 = vpop.eup %10653  ;;  %v928_v47 = vpop.f32.mrf.mxu1 }
 0x29e   :  { %v929_v48 = vadd.f32 %v928_v47, %v858_v44  ;;  %9520 = vmatmul.mubr.msk.f32.vlgmr.msra.gmra.mxu1 %vm360_vm2, %v10654_v46 }
 0x29f   :  { %9534 = vmatpush3.msra.mxu1 %v10960_v20  ;;  %v9499_v49 = vpop.f32.mrf.mxu1  ;;  %9541 = vmatprep.mubr.msk.f32.mxu1 %vm10821_vm1, %v10820_v5 }
 0x2a0   :  { %v932_v50 = vadd.f32 %v11048_v41, %v929_v48  ;;  %9535 = vmatprep.subr.mxu1 %v10820_v5  ;;  %v8681_v49 = vld [vmem:[%s12838_s8] ss:$0 sm:$0xff] }
 0x2a1   :  { %9536 = vmatpush3.msra.mxu1 %v10968_v21 }
 0x2a2   :  { %10655 = vtanh.f32 %v932_v50  ;;  %9537 = vmatprep.subr.mxu1 %v10820_v5 }
 0x2a3   :  { %9538 = vmatpush3.msra.mxu1 %v10977_v22 }
 0x2a4   :  { %9539 = vmatprep.subr.mxu1 %v10820_v5 }
 0x2a5   :  { %9540 = vmatpush3.msra.mxu1 %v10984_v23 }
 0x2a6   :  { %9542 = vmatmul.mubr.msk.f32.vlgmr.msra.gmra.mxu1 %vm360_vm2, %v10654_v46  ;;  %9555 = vmatprep.subr.mxu1 %v10820_v5 }
 0x2a7   :  { %9556 = vmatpush3.msra.mxu1 %v10890_v4  ;;  %9563 = vmatprep.mubr.msk.f32.mxu1 %vm10821_vm1, %v10820_v5 }
 0x2a8   :  { %9557 = vmatprep.subr.mxu1 %v10820_v5 }
 0x2a9   :  { %9558 = vmatpush3.msra.mxu1 %v10896_v6 }
 0x2aa   :  { %9559 = vmatprep.subr.mxu1 %v10820_v5 }
 0x2ab   :  { %9560 = vmatpush3.msra.mxu1 %v10906_v7 }
 0x2ac   :  { %9561 = vmatprep.subr.mxu1 %v10820_v5 }
 0x2ad   :  { %9562 = vmatpush3.msra.mxu1 %v10913_v8 }
 0x2ae   :  { %9577 = vmatprep.subr.mxu1 %v10820_v5 }
 0x2af   :  { %v10656_v51 = vpop.eup %10655 }
 0x2b0   :  { %9509 = vmatmul.mubr.msk.f32.vlgmr.msra.gmra.mxu0 %vm360_vm2, %v10656_v51 }
 0x2b1   :  { %9523 = vmatpush3.msra.mxu0 %v10931_v15  ;;  %9530 = vmatprep.mubr.msk.f32.mxu0 %vm10821_vm1, %v10820_v5 }
 0x2b2   :  { %9524 = vmatprep.subr.mxu0 %v10820_v5 }
 0x2b3   :  { %9525 = vmatpush3.msra.mxu0 %v10937_v17 }
 0x2b4   :  { %9526 = vmatprep.subr.mxu0 %v10820_v5 }
 0x2b5   :  { %9527 = vmatpush3.msra.mxu0 %v10946_v18 }
 0x2b6   :  { %9528 = vmatprep.subr.mxu0 %v10820_v5 }
 0x2b7   :  { %9529 = vmatpush3.msra.mxu0 %v10953_v19 }
 0x2b8   :  { %9531 = vmatmul.mubr.msk.f32.vlgmr.msra.gmra.mxu0 %vm360_vm2, %v10656_v51  ;;  %9544 = vmatprep.subr.mxu0 %v10820_v5  ;;  %v715_v51 = vadd.f32 %v8681_v49, %v11197_v37 }
 0x2b9   :  { %9552 = vmatprep.mubr.msk.f32.mxu0 %vm10821_vm1, %v10820_v5  ;;  %9545 = vmatpush3.msra.mxu0 %v1233_v39 }
 0x2ba   :  { %9546 = vmatprep.subr.mxu0 %v10820_v5 }
 0x2bb   :  { %9547 = vmatpush3.msra.mxu0 %v1232_v40 }
 0x2bc   :  { %9548 = vmatprep.subr.mxu0 %v10820_v5 }
 0x2bd   :  { %9549 = vmatpush3.msra.mxu0 %v1231_v42 }
 0x2be   :  { %9550 = vmatprep.subr.mxu0 %v10820_v5 }
 0x2bf   :  { %9551 = vmatpush3.msra.mxu0 %v1230_v9 }
 0x2c0   :  { %9566 = vmatprep.subr.mxu0 %v10820_v5 }
 0x35e   :  { %v1082_v44 = vpop.f32.mrf.mxu1 }
 0x35f   :  { %v1086_v45 = vadd.f32 %v1082_v44, %v1012_v43 }
 0x360   :  { %v9521_v46 = vpop.f32.mrf.mxu1 }
 0x361   :  { %10657 = vtanh.f32 %v1086_v45 }
 0x366   :  { %v1224_v47 = vpop.f32.mrf.mxu1 }
 0x368   :  { %v9543_v48 = vpop.f32.mrf.mxu1 }
 0x36e   :  { %v10658_v50 = vpop.eup %10657 }
 0x36f   :  { %9564 = vmatmul.mubr.msk.f32.vlgmr.msra.gmra.mxu1 %vm360_vm2, %v10658_v50 }
 0x370   :  { %9578 = vmatpush3.msra.mxu1 %v10960_v20  ;;  %v1007_v52 = vpop.f32.mrf.mxu0  ;;  %9585 = vmatprep.mubr.msk.f32.mxu1 %vm10821_vm1, %v10820_v5 }
 0x371   :  { %v11296_v53 = vadd.f32 %v1007_v52, %v715_v51  ;;  %9579 = vmatprep.subr.mxu1 %v10820_v5 }
 0x372   :  { %9580 = vmatpush3.msra.mxu1 %v10968_v21  ;;  %v9510_v54 = vpop.f32.mrf.mxu0 }
 0x373   :  { %9581 = vmatprep.subr.mxu1 %v10820_v5 }
 0x374   :  { %9582 = vmatpush3.msra.mxu1 %v10977_v22 }
 0x375   :  { %9583 = vmatprep.subr.mxu1 %v10820_v5 }
 0x376   :  { %9584 = vmatpush3.msra.mxu1 %v10984_v23 }
 0x377   :  { %9586 = vmatmul.mubr.msk.f32.vlgmr.msra.gmra.mxu1 %vm360_vm2, %v10658_v50  ;;  %9599 = vmatprep.subr.mxu1 %v10820_v5 }
 0x378   :  { %v1154_v37 = vpop.f32.mrf.mxu0  ;;  %9600 = vmatpush3.msra.mxu1 %v10890_v4  ;;  %9607 = vmatprep.mubr.msk.f32.mxu1 %vm10821_vm1, %v10820_v5 }
 0x379   :  { %v1225_v55 = vadd.f32 %v1224_v47, %v1154_v37  ;;  %9601 = vmatprep.subr.mxu1 %v10820_v5 }
 0x37a   :  { %v9532_v56 = vpop.f32.mrf.mxu0  ;;  %9602 = vmatpush3.msra.mxu1 %v10896_v6 }
 0x37b   :  { %v1228_v57 = vadd.f32 %v11048_v41, %v1225_v55  ;;  %9603 = vmatprep.subr.mxu1 %v10820_v5 }
 0x37c   :  { %9604 = vmatpush3.msra.mxu1 %v10906_v7 }
 0x37d   :  { %10659 = vtanh.f32 %v1228_v57  ;;  %9605 = vmatprep.subr.mxu1 %v10820_v5 }
 0x37e   :  { %9606 = vmatpush3.msra.mxu1 %v10913_v8 }
 0x37f   :  { %9621 = vmatprep.subr.mxu1 %v10820_v5 }
 0x38a   :  { %v10660_v58 = vpop.eup %10659 }
 0x38b   :  { %9553 = vmatmul.mubr.msk.f32.vlgmr.msra.gmra.mxu0 %vm360_vm2, %v10660_v58 }
 0x38c   :  { %9567 = vmatpush3.msra.mxu0 %v10931_v15  ;;  %9574 = vmatprep.mubr.msk.f32.mxu0 %vm10821_vm1, %v10820_v5 }
 0x38d   :  { %9568 = vmatprep.subr.mxu0 %v10820_v5 }
 0x38e   :  { %9569 = vmatpush3.msra.mxu0 %v10937_v17 }
 0x38f   :  { %9570 = vmatprep.subr.mxu0 %v10820_v5 }
 0x390   :  { %9571 = vmatpush3.msra.mxu0 %v10946_v18 }
 0x391   :  { %9572 = vmatprep.subr.mxu0 %v10820_v5 }
 0x392   :  { %9573 = vmatpush3.msra.mxu0 %v10953_v19 }
 0x393   :  { %9575 = vmatmul.mubr.msk.f32.vlgmr.msra.gmra.mxu0 %vm360_vm2, %v10660_v58  ;;  %9588 = vmatprep.subr.mxu0 %v10820_v5  ;;  %v11509_v58 = vld [vmem:[%s12835_s5 + $0x18] sm:$0xff] }
 0x394   :  { %9596 = vmatprep.mubr.msk.f32.mxu0 %vm10821_vm1, %v10820_v5  ;;  %9589 = vmatpush3.msra.mxu0 %v1529_v59  ;;  %v11525_v59 = vld [vmem:[%s12835_s5 + $0x8] sm:$0xff] }
 0x395   :  { %9590 = vmatprep.subr.mxu0 %v10820_v5 }
 0x396   :  { %9591 = vmatpush3.msra.mxu0 %v1528_v60  ;;  %v11532_v60 = vld [vmem:[%s12835_s5] sm:$0xff] }
 0x397   :  { %9592 = vmatprep.subr.mxu0 %v10820_v5 }
 0x398   :  { %9593 = vmatpush3.msra.mxu0 %v1527_v61  ;;  %v2417_v61 = vld [vmem:[%s12837_s7 + $0xd8] sm:$0xff] }
 0x399   :  { %9594 = vmatprep.subr.mxu0 %v10820_v5 }
 0x39a   :  { %9595 = vmatpush3.msra.mxu0 %v1526_v62  ;;  %v2416_v62 = vld [vmem:[%s12837_s7 + $0xd0] sm:$0xff] }
 0x39b   :  { %9610 = vmatprep.subr.mxu0 %v10820_v5 }
 0x42f   :  { %v1378_v0 = vpop.f32.mrf.mxu1 }
 0x430   :  { %v1382_v1 = vadd.f32 %v1378_v0, %v1308_v63  ;;  %v2415_v63 = vld [vmem:[%s12837_s7 + $0xc8] sm:$0xff]  ;;  %v2414_v0 = vld [vmem:[%s12837_s7 + $0xc0] sm:$0xff] }
 0x431   :  { %v9565_v2 = vpop.f32.mrf.mxu1 }
 0x432   :  { %10661 = vtanh.f32 %v1382_v1  ;;  %v2196_v1 = vld [vmem:[#allocation2 + $0x38] sm:$0xff] }
 0x437   :  { %v1520_v3 = vpop.f32.mrf.mxu1 }
 0x439   :  { %v9587_v10 = vpop.f32.mrf.mxu1 }
 0x43f   :  { %v10662_v11 = vpop.eup %10661 }
 0x440   :  { %9608 = vmatmul.mubr.msk.f32.vlgmr.msra.gmra.mxu1 %vm360_vm2, %v10662_v11 }
 0x441   :  { %9622 = vmatpush3.msra.mxu1 %v10960_v20  ;;  %9629 = vmatprep.mubr.msk.f32.mxu1 %vm10821_vm1, %v10820_v5 }
 0x442   :  { %9623 = vmatprep.subr.mxu1 %v10820_v5 }
 0x443   :  { %9624 = vmatpush3.msra.mxu1 %v10968_v21 }
 0x444   :  { %9625 = vmatprep.subr.mxu1 %v10820_v5 }
 0x445   :  { %9626 = vmatpush3.msra.mxu1 %v10977_v22 }
 0x446   :  { %9627 = vmatprep.subr.mxu1 %v10820_v5 }
 0x447   :  { %9628 = vmatpush3.msra.mxu1 %v10984_v23 }
 0x448   :  { %9630 = vmatmul.mubr.msk.f32.vlgmr.msra.gmra.mxu1 %vm360_vm2, %v10662_v11  ;;  %9643 = vmatprep.subr.mxu1 %v10820_v5 }
 0x449   :  { %9644 = vmatpush3.msra.mxu1 %v10890_v4  ;;  %9651 = vmatprep.mubr.msk.f32.mxu1 %vm10821_vm1, %v10820_v5 }
 0x44a   :  { %9645 = vmatprep.subr.mxu1 %v10820_v5 }
 0x44b   :  { %v1303_v12 = vpop.f32.mrf.mxu0  ;;  %9646 = vmatpush3.msra.mxu1 %v10896_v6 }
 0x44c   :  { %v11365_v13 = vadd.f32 %v1303_v12, %v11296_v53  ;;  %9647 = vmatprep.subr.mxu1 %v10820_v5 }
 0x44d   :  { %v9554_v14 = vpop.f32.mrf.mxu0  ;;  %9648 = vmatpush3.msra.mxu1 %v10906_v7 }
 0x44e   :  { %9649 = vmatprep.subr.mxu1 %v10820_v5  ;;  %v11559_v14 = vld [vmem:[%s12834_s4 + $0x18] sm:$0xff] }
 0x44f   :  { %9650 = vmatpush3.msra.mxu1 %v10913_v8 }
 0x450   :  { %9665 = vmatprep.subr.mxu1 %v10820_v5 }
 0x453   :  { %v1450_v16 = vpop.f32.mrf.mxu0 }
 0x454   :  { %v1521_v24 = vadd.f32 %v1520_v3, %v1450_v16  ;;  %v11568_v16 = vld [vmem:[%s12834_s4 + $0x10] sm:$0xff] }
 0x455   :  { %v9576_v25 = vpop.f32.mrf.mxu0 }
 0x456   :  { %v1524_v26 = vadd.f32 %v11048_v41, %v1521_v24  ;;  %v11575_v24 = vld [vmem:[%s12834_s4 + $0x8] sm:$0xff]  ;;  %v11582_v25 = vld [vmem:[%s12834_s4] sm:$0xff] }
 0x458   :  { %10663 = vtanh.f32 %v1524_v26 }
 0x465   :  { %v10664_v27 = vpop.eup %10663 }
 0x466   :  { %9597 = vmatmul.mubr.msk.f32.vlgmr.msra.gmra.mxu0 %vm360_vm2, %v10664_v27 }
 0x467   :  { %9611 = vmatpush3.msra.mxu0 %v10931_v15  ;;  %9618 = vmatprep.mubr.msk.f32.mxu0 %vm10821_vm1, %v10820_v5 }
 0x468   :  { %9612 = vmatprep.subr.mxu0 %v10820_v5 }
 0x469   :  { %9613 = vmatpush3.msra.mxu0 %v10937_v17 }
 0x46a   :  { %9614 = vmatprep.subr.mxu0 %v10820_v5 }
 0x46b   :  { %9615 = vmatpush3.msra.mxu0 %v10946_v18 }
 0x46c   :  { %9616 = vmatprep.subr.mxu0 %v10820_v5 }
 0x46d   :  { %9617 = vmatpush3.msra.mxu0 %v10953_v19 }
 0x46e   :  { %9619 = vmatmul.mubr.msk.f32.vlgmr.msra.gmra.mxu0 %vm360_vm2, %v10664_v27  ;;  %9632 = vmatprep.subr.mxu0 %v10820_v5 }
 0x46f   :  { %9640 = vmatprep.mubr.msk.f32.mxu0 %vm10821_vm1, %v10820_v5  ;;  %9633 = vmatpush3.msra.mxu0 %v1825_v28 }
 0x470   :  { %9634 = vmatprep.subr.mxu0 %v10820_v5 }
 0x471   :  { %9635 = vmatpush3.msra.mxu0 %v1824_v29 }
 0x472   :  { %9636 = vmatprep.subr.mxu0 %v10820_v5 }
 0x473   :  { %9637 = vmatpush3.msra.mxu0 %v1823_v30 }
 0x474   :  { %9638 = vmatprep.subr.mxu0 %v10820_v5 }
 0x475   :  { %9639 = vmatpush3.msra.mxu0 %v1822_v31 }
 0x476   :  { %9654 = vmatprep.subr.mxu0 %v10820_v5 }
 0x500   :  { %v1674_v33 = vpop.f32.mrf.mxu1 }
 0x501   :  { %v1678_v34 = vadd.f32 %v1674_v33, %v1604_v32  ;;  %v11601_v32 = vld [vmem:[%s12836_s6] ss:$0 sm:$0xff] }
 0x502   :  { %v9609_v35 = vpop.f32.mrf.mxu1 }
 0x503   :  { %10665 = vtanh.f32 %v1678_v34  ;;  %v2713_v35 = vld [vmem:[%s12837_s7 + $0xf8] sm:$0xff] }
 0x508   :  { %v1816_v36 = vpop.f32.mrf.mxu1 }
 0x50a   :  { %v9631_v38 = vpop.f32.mrf.mxu1 }
 0x50b   :  { %v2711_v38 = vld [vmem:[%s12837_s7 + $0xe8] sm:$0xff] }
 0x510   :  { %v10666_v39 = vpop.eup %10665 }
 0x511   :  { %9652 = vmatmul.mubr.msk.f32.vlgmr.msra.gmra.mxu1 %vm360_vm2, %v10666_v39 }
 0x512   :  { %9666 = vmatpush3.msra.mxu1 %v10960_v20  ;;  %9673 = vmatprep.mubr.msk.f32.mxu1 %vm10821_vm1, %v10820_v5 }
 0x513   :  { %9667 = vmatprep.subr.mxu1 %v10820_v5 }
 0x514   :  { %9668 = vmatpush3.msra.mxu1 %v10968_v21 }
 0x515   :  { %9669 = vmatprep.subr.mxu1 %v10820_v5 }
 0x516   :  { %9670 = vmatpush3.msra.mxu1 %v10977_v22 }
 0x517   :  { %9671 = vmatprep.subr.mxu1 %v10820_v5 }
 0x518   :  { %9672 = vmatpush3.msra.mxu1 %v10984_v23 }
 0x519   :  { %9674 = vmatmul.mubr.msk.f32.vlgmr.msra.gmra.mxu1 %vm360_vm2, %v10666_v39  ;;  %9687 = vmatprep.subr.mxu1 %v10820_v5  ;;  %v2710_v39 = vld [vmem:[%s12837_s7 + $0xe0] sm:$0xff] }
 0x51a   :  { %9688 = vmatpush3.msra.mxu1 %v10890_v4  ;;  %9695 = vmatprep.mubr.msk.f32.mxu1 %vm10821_vm1, %v10820_v5 }
 0x51b   :  { %9689 = vmatprep.subr.mxu1 %v10820_v5 }
 0x51c   :  { %9690 = vmatpush3.msra.mxu1 %v10896_v6 }
 0x51d   :  { %9691 = vmatprep.subr.mxu1 %v10820_v5 }
 0x51e   :  { %9692 = vmatpush3.msra.mxu1 %v10906_v7  ;;  %v2121_v7 = vld [vmem:[%s12837_s7 + $0xb8] sm:$0xff] }
 0x51f   :  { %9693 = vmatprep.subr.mxu1 %v10820_v5 }
 0x520   :  { %9694 = vmatpush3.msra.mxu1 %v10913_v8  ;;  %v2120_v8 = vld [vmem:[%s12837_s7 + $0xb0] sm:$0xff] }
 0x521   :  { %9709 = vmatprep.subr.mxu1 %v10820_v5 }
 0x526   :  { %v1599_v40 = vpop.f32.mrf.mxu0 }
 0x527   :  { %v11426_v4 = vadd.f32 %v1599_v40, %v11365_v13  ;;  %v2492_v40 = vld [vmem:[#allocation2 + $0x40] sm:$0xff] }
 0x528   :  { %v9598_v42 = vpop.f32.mrf.mxu0 }
 0x52e   :  { %v1746_v9 = vpop.f32.mrf.mxu0 }
 0x52f   :  { %v1817_v43 = vadd.f32 %v1816_v36, %v1746_v9  ;;  %v2712_v36 = vld [vmem:[%s12837_s7 + $0xf0] sm:$0xff] }
 0x530   :  { %v9620_v44 = vpop.f32.mrf.mxu0 }
 0x531   :  { %v1820_v6 = vadd.f32 %v11048_v41, %v1817_v43 }
 0x533   :  { %10667 = vtanh.f32 %v1820_v6 }
 0x540   :  { %v10668_v45 = vpop.eup %10667 }
 0x541   :  { %9641 = vmatmul.mubr.msk.f32.vlgmr.msra.gmra.mxu0 %vm360_vm2, %v10668_v45 }
 0x542   :  { %9655 = vmatpush3.msra.mxu0 %v10931_v15  ;;  %9662 = vmatprep.mubr.msk.f32.mxu0 %vm10821_vm1, %v10820_v5  ;;  %v2119_v15 = vld [vmem:[%s12837_s7 + $0xa8] sm:$0xff] }
 0x543   :  { %9656 = vmatprep.subr.mxu0 %v10820_v5 }
 0x544   :  { %9657 = vmatpush3.msra.mxu0 %v10937_v17  ;;  %v2118_v17 = vld [vmem:[%s12837_s7 + $0xa0] sm:$0xff] }
 0x545   :  { %9658 = vmatprep.subr.mxu0 %v10820_v5 }
 0x546   :  { %9659 = vmatpush3.msra.mxu0 %v10946_v18  ;;  %v1900_v18 = vld [vmem:[#allocation2 + $0x30] sm:$0xff] }
 0x547   :  { %9660 = vmatprep.subr.mxu0 %v10820_v5 }
 0x548   :  { %9661 = vmatpush3.msra.mxu0 %v10953_v19 }
 0x549   :  { %9663 = vmatmul.mubr.msk.f32.vlgmr.msra.gmra.mxu0 %vm360_vm2, %v10668_v45  ;;  %9676 = vmatprep.subr.mxu0 %v10820_v5 }
 0x54a   :  { %9684 = vmatprep.mubr.msk.f32.mxu0 %vm10821_vm1, %v10820_v5  ;;  %9677 = vmatpush3.msra.mxu0 %v2121_v7 }
 0x54b   :  { %9678 = vmatprep.subr.mxu0 %v10820_v5 }
 0x54c   :  { %9679 = vmatpush3.msra.mxu0 %v2120_v8 }
 0x54d   :  { %9680 = vmatprep.subr.mxu0 %v10820_v5 }
 0x54e   :  { %9681 = vmatpush3.msra.mxu0 %v2119_v15 }
 0x54f   :  { %9682 = vmatprep.subr.mxu0 %v10820_v5 }
 0x550   :  { %9683 = vmatpush3.msra.mxu0 %v2118_v17 }
 0x551   :  { %9698 = vmatprep.subr.mxu0 %v10820_v5 }
 0x5d1   :  { %v1970_v19 = vpop.f32.mrf.mxu1 }
 0x5d2   :  { %v1974_v46 = vadd.f32 %v1970_v19, %v1900_v18 }
 0x5d3   :  { %v9653_v47 = vpop.f32.mrf.mxu1 }
 0x5d4   :  { %10669 = vtanh.f32 %v1974_v46  ;;  %v3009_v47 = vld [vmem:[%s12837_s7 + $0x118] sm:$0xff] }
 0x5d9   :  { %v2112_v48 = vpop.f32.mrf.mxu1 }
 0x5db   :  { %v9675_v49 = vpop.f32.mrf.mxu1 }
 0x5dc   :  { %v3007_v49 = vld [vmem:[%s12837_s7 + $0x108] sm:$0xff] }
 0x5e1   :  { %v10670_v50 = vpop.eup %10669 }
 0x5e2   :  { %9696 = vmatmul.mubr.msk.f32.vlgmr.msra.gmra.mxu1 %vm360_vm2, %v10670_v50 }
 0x5e3   :  { %9710 = vmatpush3.msra.mxu1 %v10960_v20  ;;  %9717 = vmatprep.mubr.msk.f32.mxu1 %vm10821_vm1, %v10820_v5  ;;  %v11474_v20 = vld [vmem:[%s12832_s2 + $0x18] sm:$0xff] }
 0x5e4   :  { %9711 = vmatprep.subr.mxu1 %v10820_v5 }
 0x5e5   :  { %9712 = vmatpush3.msra.mxu1 %v10968_v21  ;;  %v11483_v21 = vld [vmem:[%s12832_s2 + $0x10] sm:$0xff] }
 0x5e6   :  { %9713 = vmatprep.subr.mxu1 %v10820_v5 }
 0x5e7   :  { %9714 = vmatpush3.msra.mxu1 %v10977_v22  ;;  %v11490_v22 = vld [vmem:[%s12832_s2 + $0x8] sm:$0xff] }
 0x5e8   :  { %9715 = vmatprep.subr.mxu1 %v10820_v5 }
 0x5e9   :  { %9716 = vmatpush3.msra.mxu1 %v10984_v23  ;;  %v11497_v23 = vld [vmem:[%s12832_s2] sm:$0xff] }
 0x5ea   :  { %9718 = vmatmul.mubr.msk.f32.vlgmr.msra.gmra.mxu1 %vm360_vm2, %v10670_v50  ;;  %9731 = vmatprep.subr.mxu1 %v10820_v5  ;;  %v3006_v50 = vld [vmem:[%s12837_s7 + $0x100] sm:$0xff] }
 0x5eb   :  { %9732 = vmatpush3.msra.mxu1 %v11474_v20  ;;  %9739 = vmatprep.mubr.msk.f32.mxu1 %vm10821_vm1, %v10820_v5 }
 0x5ec   :  { %9733 = vmatprep.subr.mxu1 %v10820_v5 }
 0x5ed   :  { %9734 = vmatpush3.msra.mxu1 %v11483_v21 }
 0x5ee   :  { %9735 = vmatprep.subr.mxu1 %v10820_v5 }
 0x5ef   :  { %9736 = vmatpush3.msra.mxu1 %v11490_v22 }
 0x5f0   :  { %9737 = vmatprep.subr.mxu1 %v10820_v5 }
 0x5f1   :  { %9738 = vmatpush3.msra.mxu1 %v11497_v23 }
 0x5f2   :  { %9753 = vmatprep.subr.mxu1 %v10820_v5 }
 0x601   :  { %v1895_v51 = vpop.f32.mrf.mxu0 }
 0x602   :  { %v11502_v52 = vadd.f32 %v1895_v51, %v11426_v4  ;;  %v2788_v51 = vld [vmem:[#allocation2 + $0x48] sm:$0xff] }
 0x603   :  { %v9642_v53 = vpop.f32.mrf.mxu0 }
 0x609   :  { %v2042_v54 = vpop.f32.mrf.mxu0 }
 0x60a   :  { %v2113_v37 = vadd.f32 %v2112_v48, %v2042_v54  ;;  %v3008_v48 = vld [vmem:[%s12837_s7 + $0x110] sm:$0xff] }
 0x60b   :  { %v9664_v55 = vpop.f32.mrf.mxu0 }
 0x60c   :  { %v2116_v56 = vadd.f32 %v11048_v41, %v2113_v37  ;;  %v11518_v41 = vld [vmem:[%s12835_s5 + $0x10] sm:$0xff] }
 0x60e   :  { %10671 = vtanh.f32 %v2116_v56 }
 0x61b   :  { %v10672_v57 = vpop.eup %10671 }
 0x61c   :  { %9685 = vmatmul.mubr.msk.f32.vlgmr.msra.gmra.mxu0 %vm360_vm2, %v10672_v57 }
 0x61d   :  { %9699 = vmatpush3.msra.mxu0 %v11509_v58  ;;  %9706 = vmatprep.mubr.msk.f32.mxu0 %vm10821_vm1, %v10820_v5 }
 0x61e   :  { %9700 = vmatprep.subr.mxu0 %v10820_v5 }
 0x61f   :  { %9701 = vmatpush3.msra.mxu0 %v11518_v41 }
 0x620   :  { %9702 = vmatprep.subr.mxu0 %v10820_v5 }
 0x621   :  { %9703 = vmatpush3.msra.mxu0 %v11525_v59 }
 0x622   :  { %9704 = vmatprep.subr.mxu0 %v10820_v5 }
 0x623   :  { %9705 = vmatpush3.msra.mxu0 %v11532_v60 }
 0x624   :  { %9707 = vmatmul.mubr.msk.f32.vlgmr.msra.gmra.mxu0 %vm360_vm2, %v10672_v57  ;;  %9720 = vmatprep.subr.mxu0 %v10820_v5 }
 0x625   :  { %9728 = vmatprep.mubr.msk.f32.mxu0 %vm10821_vm1, %v10820_v5  ;;  %9721 = vmatpush3.msra.mxu0 %v2417_v61 }
 0x626   :  { %9722 = vmatprep.subr.mxu0 %v10820_v5 }
 0x627   :  { %9723 = vmatpush3.msra.mxu0 %v2416_v62 }
 0x628   :  { %9724 = vmatprep.subr.mxu0 %v10820_v5 }
 0x629   :  { %9725 = vmatpush3.msra.mxu0 %v2415_v63 }
 0x62a   :  { %9726 = vmatprep.subr.mxu0 %v10820_v5 }
 0x62b   :  { %9727 = vmatpush3.msra.mxu0 %v2414_v0 }
 0x62c   :  { %9742 = vmatprep.subr.mxu0 %v10820_v5 }
 0x6a2   :  { %v2266_v2 = vpop.f32.mrf.mxu1 }
 0x6a3   :  { %v2270_v3 = vadd.f32 %v2266_v2, %v2196_v1 }
 0x6a4   :  { %v9697_v10 = vpop.f32.mrf.mxu1 }
 0x6a5   :  { %10673 = vtanh.f32 %v2270_v3  ;;  %v3305_v10 = vld [vmem:[%s12837_s7 + $0x138] sm:$0xff] }
 0x6aa   :  { %v2408_v11 = vpop.f32.mrf.mxu1 }
 0x6ac   :  { %v9719_v12 = vpop.f32.mrf.mxu1 }
 0x6ad   :  { %v3303_v12 = vld [vmem:[%s12837_s7 + $0x128] sm:$0xff] }
 0x6b2   :  { %v10674_v13 = vpop.eup %10673 }
 0x6b3   :  { %9740 = vmatmul.mubr.msk.f32.vlgmr.msra.gmra.mxu1 %vm360_vm2, %v10674_v13 }
 0x6b4   :  { %9754 = vmatpush3.msra.mxu1 %v11559_v14  ;;  %9761 = vmatprep.mubr.msk.f32.mxu1 %vm10821_vm1, %v10820_v5 }
 0x6b5   :  { %9755 = vmatprep.subr.mxu1 %v10820_v5 }
 0x6b6   :  { %9756 = vmatpush3.msra.mxu1 %v11568_v16 }
 0x6b7   :  { %9757 = vmatprep.subr.mxu1 %v10820_v5 }
 0x6b8   :  { %9758 = vmatpush3.msra.mxu1 %v11575_v24 }
 0x6b9   :  { %9759 = vmatprep.subr.mxu1 %v10820_v5 }
 0x6ba   :  { %9760 = vmatpush3.msra.mxu1 %v11582_v25 }
 0x6bb   :  { %9762 = vmatmul.mubr.msk.f32.vlgmr.msra.gmra.mxu1 %vm360_vm2, %v10674_v13  ;;  %9775 = vmatprep.subr.mxu1 %v10820_v5  ;;  %v3302_v13 = vld [vmem:[%s12837_s7 + $0x120] sm:$0xff] }
 0x6bc   :  { %9776 = vmatpush3.msra.mxu1 %v11474_v20  ;;  %9783 = vmatprep.mubr.msk.f32.mxu1 %vm10821_vm1, %v10820_v5 }
 0x6bd   :  { %9777 = vmatprep.subr.mxu1 %v10820_v5 }
 0x6be   :  { %9778 = vmatpush3.msra.mxu1 %v11483_v21 }
 0x6bf   :  { %9779 = vmatprep.subr.mxu1 %v10820_v5 }
 0x6c0   :  { %9780 = vmatpush3.msra.mxu1 %v11490_v22 }
 0x6c1   :  { %9781 = vmatprep.subr.mxu1 %v10820_v5 }
 0x6c2   :  { %9782 = vmatpush3.msra.mxu1 %v11497_v23 }
 0x6c3   :  { %9797 = vmatprep.subr.mxu1 %v10820_v5 }
 0x6dc   :  { %v2191_v26 = vpop.f32.mrf.mxu0 }
 0x6dd   :  { %v2195_v27 = vadd.f32 %v2191_v26, %v11502_v52  ;;  %v3084_v26 = vld [vmem:[#allocation2 + $0x50] sm:$0xff] }
 0x6de   :  { %v9686_v28 = vpop.f32.mrf.mxu0 }
 0x6e4   :  { %v2338_v29 = vpop.f32.mrf.mxu0 }
 0x6e5   :  { %v2409_v30 = vadd.f32 %v2408_v11, %v2338_v29  ;;  %v3304_v11 = vld [vmem:[%s12837_s7 + $0x130] sm:$0xff] }
 0x6e6   :  { %v9708_v31 = vpop.f32.mrf.mxu0 }
 0x6e7   :  { %v2412_v33 = vadd.f32 %v11601_v32, %v2409_v30 }
 0x6e9   :  { %10675 = vtanh.f32 %v2412_v33 }
 0x6f6   :  { %v10676_v34 = vpop.eup %10675 }
 0x6f7   :  { %9729 = vmatmul.mubr.msk.f32.vlgmr.msra.gmra.mxu0 %vm360_vm2, %v10676_v34 }
 0x6f8   :  { %9743 = vmatpush3.msra.mxu0 %v11509_v58  ;;  %9750 = vmatprep.mubr.msk.f32.mxu0 %vm10821_vm1, %v10820_v5 }
 0x6f9   :  { %9744 = vmatprep.subr.mxu0 %v10820_v5 }
 0x6fa   :  { %9745 = vmatpush3.msra.mxu0 %v11518_v41 }
 0x6fb   :  { %9746 = vmatprep.subr.mxu0 %v10820_v5 }
 0x6fc   :  { %9747 = vmatpush3.msra.mxu0 %v11525_v59 }
 0x6fd   :  { %9748 = vmatprep.subr.mxu0 %v10820_v5 }
 0x6fe   :  { %9749 = vmatpush3.msra.mxu0 %v11532_v60 }
 0x6ff   :  { %9751 = vmatmul.mubr.msk.f32.vlgmr.msra.gmra.mxu0 %vm360_vm2, %v10676_v34  ;;  %9764 = vmatprep.subr.mxu0 %v10820_v5 }
 0x700   :  { %9772 = vmatprep.mubr.msk.f32.mxu0 %vm10821_vm1, %v10820_v5  ;;  %9765 = vmatpush3.msra.mxu0 %v2713_v35 }
 0x701   :  { %9766 = vmatprep.subr.mxu0 %v10820_v5 }
 0x702   :  { %9767 = vmatpush3.msra.mxu0 %v2712_v36 }
 0x703   :  { %9768 = vmatprep.subr.mxu0 %v10820_v5 }
 0x704   :  { %9769 = vmatpush3.msra.mxu0 %v2711_v38 }
 0x705   :  { %9770 = vmatprep.subr.mxu0 %v10820_v5 }
 0x706   :  { %9771 = vmatpush3.msra.mxu0 %v2710_v39 }
 0x707   :  { %9786 = vmatprep.subr.mxu0 %v10820_v5 }
 0x773   :  { %v2562_v4 = vpop.f32.mrf.mxu1 }
 0x774   :  { %v2566_v42 = vadd.f32 %v2562_v4, %v2492_v40 }
 0x775   :  { %v9741_v9 = vpop.f32.mrf.mxu1 }
 0x776   :  { %10677 = vtanh.f32 %v2566_v42  ;;  %v3601_v9 = vld [vmem:[%s12837_s7 + $0x158] sm:$0xff] }
 0x77b   :  { %v2704_v43 = vpop.f32.mrf.mxu1 }
 0x77d   :  { %v9763_v44 = vpop.f32.mrf.mxu1 }
 0x77e   :  { %v3599_v44 = vld [vmem:[%s12837_s7 + $0x148] sm:$0xff] }
 0x783   :  { %v10678_v6 = vpop.eup %10677 }
 0x784   :  { %9784 = vmatmul.mubr.msk.f32.vlgmr.msra.gmra.mxu1 %vm360_vm2, %v10678_v6 }
 0x785   :  { %9798 = vmatpush3.msra.mxu1 %v11559_v14  ;;  %9805 = vmatprep.mubr.msk.f32.mxu1 %vm10821_vm1, %v10820_v5 }
 0x786   :  { %9799 = vmatprep.subr.mxu1 %v10820_v5 }
 0x787   :  { %9800 = vmatpush3.msra.mxu1 %v11568_v16 }
 0x788   :  { %9801 = vmatprep.subr.mxu1 %v10820_v5 }
 0x789   :  { %9802 = vmatpush3.msra.mxu1 %v11575_v24 }
 0x78a   :  { %9803 = vmatprep.subr.mxu1 %v10820_v5 }
 0x78b   :  { %9804 = vmatpush3.msra.mxu1 %v11582_v25 }
 0x78c   :  { %9806 = vmatmul.mubr.msk.f32.vlgmr.msra.gmra.mxu1 %vm360_vm2, %v10678_v6  ;;  %9819 = vmatprep.subr.mxu1 %v10820_v5  ;;  %v3598_v6 = vld [vmem:[%s12837_s7 + $0x140] sm:$0xff] }
 0x78d   :  { %9820 = vmatpush3.msra.mxu1 %v11474_v20  ;;  %9827 = vmatprep.mubr.msk.f32.mxu1 %vm10821_vm1, %v10820_v5 }
 0x78e   :  { %9821 = vmatprep.subr.mxu1 %v10820_v5 }
 0x78f   :  { %9822 = vmatpush3.msra.mxu1 %v11483_v21 }
 0x790   :  { %9823 = vmatprep.subr.mxu1 %v10820_v5 }
 0x791   :  { %9824 = vmatpush3.msra.mxu1 %v11490_v22 }
 0x792   :  { %9825 = vmatprep.subr.mxu1 %v10820_v5 }
 0x793   :  { %9826 = vmatpush3.msra.mxu1 %v11497_v23 }
 0x794   :  { %9841 = vmatprep.subr.mxu1 %v10820_v5 }
 0x7b7   :  { %v2487_v45 = vpop.f32.mrf.mxu0 }
 0x7b8   :  { %v2491_v7 = vadd.f32 %v2487_v45, %v2195_v27  ;;  %v3380_v45 = vld [vmem:[#allocation2 + $0x58] sm:$0xff] }
 0x7b9   :  { %v9730_v8 = vpop.f32.mrf.mxu0 }
 0x7bf   :  { %v2634_v15 = vpop.f32.mrf.mxu0 }
 0x7c0   :  { %v2705_v17 = vadd.f32 %v2704_v43, %v2634_v15  ;;  %v3600_v43 = vld [vmem:[%s12837_s7 + $0x150] sm:$0xff] }
 0x7c1   :  { %v9752_v18 = vpop.f32.mrf.mxu0 }
 0x7c2   :  { %v2708_v19 = vadd.f32 %v11601_v32, %v2705_v17 }
 0x7c4   :  { %10679 = vtanh.f32 %v2708_v19 }
 0x7d1   :  { %v10680_v46 = vpop.eup %10679 }
 0x7d2   :  { %9773 = vmatmul.mubr.msk.f32.vlgmr.msra.gmra.mxu0 %vm360_vm2, %v10680_v46 }
 0x7d3   :  { %9787 = vmatpush3.msra.mxu0 %v11509_v58  ;;  %9794 = vmatprep.mubr.msk.f32.mxu0 %vm10821_vm1, %v10820_v5 }
 0x7d4   :  { %9788 = vmatprep.subr.mxu0 %v10820_v5 }
 0x7d5   :  { %9789 = vmatpush3.msra.mxu0 %v11518_v41 }
 0x7d6   :  { %9790 = vmatprep.subr.mxu0 %v10820_v5 }
 0x7d7   :  { %9791 = vmatpush3.msra.mxu0 %v11525_v59 }
 0x7d8   :  { %9792 = vmatprep.subr.mxu0 %v10820_v5 }
 0x7d9   :  { %9793 = vmatpush3.msra.mxu0 %v11532_v60 }
 0x7da   :  { %9795 = vmatmul.mubr.msk.f32.vlgmr.msra.gmra.mxu0 %vm360_vm2, %v10680_v46  ;;  %9808 = vmatprep.subr.mxu0 %v10820_v5 }
 0x7db   :  { %9816 = vmatprep.mubr.msk.f32.mxu0 %vm10821_vm1, %v10820_v5  ;;  %9809 = vmatpush3.msra.mxu0 %v3009_v47 }
 0x7dc   :  { %9810 = vmatprep.subr.mxu0 %v10820_v5 }
 0x7dd   :  { %9811 = vmatpush3.msra.mxu0 %v3008_v48 }
 0x7de   :  { %9812 = vmatprep.subr.mxu0 %v10820_v5 }
 0x7df   :  { %9813 = vmatpush3.msra.mxu0 %v3007_v49 }
 0x7e0   :  { %9814 = vmatprep.subr.mxu0 %v10820_v5 }
 0x7e1   :  { %9815 = vmatpush3.msra.mxu0 %v3006_v50 }
 0x7e2   :  { %9830 = vmatprep.subr.mxu0 %v10820_v5 }
 0x844   :  { %v2858_v52 = vpop.f32.mrf.mxu1 }
 0x845   :  { %v2862_v53 = vadd.f32 %v2858_v52, %v2788_v51 }
 0x846   :  { %v9785_v54 = vpop.f32.mrf.mxu1 }
 0x847   :  { %10681 = vtanh.f32 %v2862_v53  ;;  %v3897_v54 = vld [vmem:[%s12837_s7 + $0x178] sm:$0xff] }
 0x84c   :  { %v3000_v37 = vpop.f32.mrf.mxu1 }
 0x84e   :  { %v9807_v55 = vpop.f32.mrf.mxu1 }
 0x84f   :  { %v3895_v55 = vld [vmem:[%s12837_s7 + $0x168] sm:$0xff] }
 0x854   :  { %v10682_v56 = vpop.eup %10681 }
 0x855   :  { %9828 = vmatmul.mubr.msk.f32.vlgmr.msra.gmra.mxu1 %vm360_vm2, %v10682_v56 }
 0x856   :  { %9842 = vmatpush3.msra.mxu1 %v11559_v14  ;;  %9849 = vmatprep.mubr.msk.f32.mxu1 %vm10821_vm1, %v10820_v5 }
 0x857   :  { %9843 = vmatprep.subr.mxu1 %v10820_v5 }
 0x858   :  { %9844 = vmatpush3.msra.mxu1 %v11568_v16 }
 0x859   :  { %9845 = vmatprep.subr.mxu1 %v10820_v5 }
 0x85a   :  { %9846 = vmatpush3.msra.mxu1 %v11575_v24 }
 0x85b   :  { %9847 = vmatprep.subr.mxu1 %v10820_v5 }
 0x85c   :  { %9848 = vmatpush3.msra.mxu1 %v11582_v25 }
 0x85d   :  { %9850 = vmatmul.mubr.msk.f32.vlgmr.msra.gmra.mxu1 %vm360_vm2, %v10682_v56  ;;  %9863 = vmatprep.subr.mxu1 %v10820_v5  ;;  %v3894_v56 = vld [vmem:[%s12837_s7 + $0x160] sm:$0xff] }
 0x85e   :  { %9864 = vmatpush3.msra.mxu1 %v11474_v20  ;;  %9871 = vmatprep.mubr.msk.f32.mxu1 %vm10821_vm1, %v10820_v5 }
 0x85f   :  { %9865 = vmatprep.subr.mxu1 %v10820_v5 }
 0x860   :  { %9866 = vmatpush3.msra.mxu1 %v11483_v21 }
 0x861   :  { %9867 = vmatprep.subr.mxu1 %v10820_v5 }
 0x862   :  { %9868 = vmatpush3.msra.mxu1 %v11490_v22 }
 0x863   :  { %9869 = vmatprep.subr.mxu1 %v10820_v5 }
 0x864   :  { %9870 = vmatpush3.msra.mxu1 %v11497_v23 }
 0x865   :  { %9885 = vmatprep.subr.mxu1 %v10820_v5 }
 0x892   :  { %v2783_v57 = vpop.f32.mrf.mxu0 }
 0x893   :  { %v2787_v61 = vadd.f32 %v2783_v57, %v2491_v7  ;;  %v3676_v57 = vld [vmem:[#allocation2 + $0x60] sm:$0xff] }
 0x894   :  { %v9774_v62 = vpop.f32.mrf.mxu0 }
 0x89a   :  { %v2930_v63 = vpop.f32.mrf.mxu0 }
 0x89b   :  { %v3001_v0 = vadd.f32 %v3000_v37, %v2930_v63  ;;  %v3896_v37 = vld [vmem:[%s12837_s7 + $0x170] sm:$0xff] }
 0x89c   :  { %v9796_v1 = vpop.f32.mrf.mxu0 }
 0x89d   :  { %v3004_v2 = vadd.f32 %v11601_v32, %v3001_v0 }
 0x89f   :  { %10683 = vtanh.f32 %v3004_v2 }
 0x8ac   :  { %v10684_v3 = vpop.eup %10683 }
 0x8ad   :  { %9817 = vmatmul.mubr.msk.f32.vlgmr.msra.gmra.mxu0 %vm360_vm2, %v10684_v3 }
 0x8ae   :  { %9831 = vmatpush3.msra.mxu0 %v11509_v58  ;;  %9838 = vmatprep.mubr.msk.f32.mxu0 %vm10821_vm1, %v10820_v5 }
 0x8af   :  { %9832 = vmatprep.subr.mxu0 %v10820_v5 }
 0x8b0   :  { %9833 = vmatpush3.msra.mxu0 %v11518_v41 }
 0x8b1   :  { %9834 = vmatprep.subr.mxu0 %v10820_v5 }
 0x8b2   :  { %9835 = vmatpush3.msra.mxu0 %v11525_v59 }
 0x8b3   :  { %9836 = vmatprep.subr.mxu0 %v10820_v5 }
 0x8b4   :  { %9837 = vmatpush3.msra.mxu0 %v11532_v60 }
 0x8b5   :  { %9839 = vmatmul.mubr.msk.f32.vlgmr.msra.gmra.mxu0 %vm360_vm2, %v10684_v3  ;;  %9852 = vmatprep.subr.mxu0 %v10820_v5 }
 0x8b6   :  { %9860 = vmatprep.mubr.msk.f32.mxu0 %vm10821_vm1, %v10820_v5  ;;  %9853 = vmatpush3.msra.mxu0 %v3305_v10 }
 0x8b7   :  { %9854 = vmatprep.subr.mxu0 %v10820_v5 }
 0x8b8   :  { %9855 = vmatpush3.msra.mxu0 %v3304_v11 }
 0x8b9   :  { %9856 = vmatprep.subr.mxu0 %v10820_v5 }
 0x8ba   :  { %9857 = vmatpush3.msra.mxu0 %v3303_v12 }
 0x8bb   :  { %9858 = vmatprep.subr.mxu0 %v10820_v5 }
 0x8bc   :  { %9859 = vmatpush3.msra.mxu0 %v3302_v13 }
 0x8bd   :  { %9874 = vmatprep.subr.mxu0 %v10820_v5 }
 0x915   :  { %v3154_v27 = vpop.f32.mrf.mxu1 }
 0x916   :  { %v3158_v28 = vadd.f32 %v3154_v27, %v3084_v26 }
 0x917   :  { %v9829_v29 = vpop.f32.mrf.mxu1 }
 0x918   :  { %10685 = vtanh.f32 %v3158_v28  ;;  %v3972_v29 = vld [vmem:[#allocation2 + $0x68] sm:$0xff] }
 0x91d   :  { %v3296_v30 = vpop.f32.mrf.mxu1 }
 0x91f   :  { %v9851_v31 = vpop.f32.mrf.mxu1 }
 0x925   :  { %v10686_v33 = vpop.eup %10685 }
 0x926   :  { %9872 = vmatmul.mubr.msk.f32.vlgmr.msra.gmra.mxu1 %vm360_vm2, %v10686_v33 }
 0x927   :  { %9886 = vmatpush3.msra.mxu1 %v11559_v14  ;;  %9893 = vmatprep.mubr.msk.f32.mxu1 %vm10821_vm1, %v10820_v5 }
 0x928   :  { %9887 = vmatprep.subr.mxu1 %v10820_v5 }
 0x929   :  { %9888 = vmatpush3.msra.mxu1 %v11568_v16 }
 0x92a   :  { %9889 = vmatprep.subr.mxu1 %v10820_v5 }
 0x92b   :  { %9890 = vmatpush3.msra.mxu1 %v11575_v24 }
 0x92c   :  { %9891 = vmatprep.subr.mxu1 %v10820_v5 }
 0x92d   :  { %9892 = vmatpush3.msra.mxu1 %v11582_v25 }
 0x92e   :  { %9894 = vmatmul.mubr.msk.f32.vlgmr.msra.gmra.mxu1 %vm360_vm2, %v10686_v33  ;;  %9907 = vmatprep.subr.mxu1 %v10820_v5 }
 0x92f   :  { %9908 = vmatpush3.msra.mxu1 %v11474_v20  ;;  %9915 = vmatprep.mubr.msk.f32.mxu1 %vm10821_vm1, %v10820_v5 }
 0x930   :  { %9909 = vmatprep.subr.mxu1 %v10820_v5 }
 0x931   :  { %9910 = vmatpush3.msra.mxu1 %v11483_v21 }
 0x932   :  { %9911 = vmatprep.subr.mxu1 %v10820_v5 }
 0x933   :  { %9912 = vmatpush3.msra.mxu1 %v11490_v22 }
 0x934   :  { %9913 = vmatprep.subr.mxu1 %v10820_v5 }
 0x935   :  { %9914 = vmatpush3.msra.mxu1 %v11497_v23 }
 0x936   :  { %9929 = vmatprep.subr.mxu1 %v10820_v5 }
 0x96d   :  { %v3079_v34 = vpop.f32.mrf.mxu0 }
 0x96e   :  { %v3083_v35 = vadd.f32 %v3079_v34, %v2787_v61  ;;  %v4193_v34 = vld [vmem:[%s12837_s7 + $0x198] sm:$0xff] }
 0x96f   :  { %v9818_v36 = vpop.f32.mrf.mxu0 }
 0x970   :  { %v4191_v36 = vld [vmem:[%s12837_s7 + $0x188] sm:$0xff] }
 0x975   :  { %v3226_v38 = vpop.f32.mrf.mxu0 }
 0x976   :  { %v3297_v39 = vadd.f32 %v3296_v30, %v3226_v38  ;;  %v4190_v38 = vld [vmem:[%s12837_s7 + $0x180] sm:$0xff] }
 0x977   :  { %v9840_v40 = vpop.f32.mrf.mxu0 }
 0x978   :  { %v3300_v4 = vadd.f32 %v11601_v32, %v3297_v39 }
 0x97a   :  { %10687 = vtanh.f32 %v3300_v4 }
 0x987   :  { %v10688_v42 = vpop.eup %10687 }
 0x988   :  { %9861 = vmatmul.mubr.msk.f32.vlgmr.msra.gmra.mxu0 %vm360_vm2, %v10688_v42 }
 0x989   :  { %9875 = vmatpush3.msra.mxu0 %v11509_v58  ;;  %9882 = vmatprep.mubr.msk.f32.mxu0 %vm10821_vm1, %v10820_v5 }
 0x98a   :  { %9876 = vmatprep.subr.mxu0 %v10820_v5 }
 0x98b   :  { %9877 = vmatpush3.msra.mxu0 %v11518_v41 }
 0x98c   :  { %9878 = vmatprep.subr.mxu0 %v10820_v5 }
 0x98d   :  { %9879 = vmatpush3.msra.mxu0 %v11525_v59 }
 0x98e   :  { %9880 = vmatprep.subr.mxu0 %v10820_v5 }
 0x98f   :  { %9881 = vmatpush3.msra.mxu0 %v11532_v60 }
 0x990   :  { %9883 = vmatmul.mubr.msk.f32.vlgmr.msra.gmra.mxu0 %vm360_vm2, %v10688_v42  ;;  %9896 = vmatprep.subr.mxu0 %v10820_v5 }
 0x991   :  { %9904 = vmatprep.mubr.msk.f32.mxu0 %vm10821_vm1, %v10820_v5  ;;  %9897 = vmatpush3.msra.mxu0 %v3601_v9 }
 0x992   :  { %9898 = vmatprep.subr.mxu0 %v10820_v5 }
 0x993   :  { %9899 = vmatpush3.msra.mxu0 %v3600_v43 }
 0x994   :  { %9900 = vmatprep.subr.mxu0 %v10820_v5 }
 0x995   :  { %9901 = vmatpush3.msra.mxu0 %v3599_v44 }
 0x996   :  { %9902 = vmatprep.subr.mxu0 %v10820_v5 }
 0x997   :  { %9903 = vmatpush3.msra.mxu0 %v3598_v6 }
 0x998   :  { %9918 = vmatprep.subr.mxu0 %v10820_v5 }
 0x9e6   :  { %v3450_v7 = vpop.f32.mrf.mxu1 }
 0x9e7   :  { %v3454_v8 = vadd.f32 %v3450_v7, %v3380_v45 }
 0x9e8   :  { %v9873_v15 = vpop.f32.mrf.mxu1 }
 0x9e9   :  { %10689 = vtanh.f32 %v3454_v8  ;;  %v4268_v15 = vld [vmem:[#allocation2 + $0x70] sm:$0xff] }
 0x9ee   :  { %v3592_v17 = vpop.f32.mrf.mxu1 }
 0x9f0   :  { %v9895_v18 = vpop.f32.mrf.mxu1 }
 0x9f6   :  { %v10690_v19 = vpop.eup %10689 }
 0x9f7   :  { %9916 = vmatmul.mubr.msk.f32.vlgmr.msra.gmra.mxu1 %vm360_vm2, %v10690_v19 }
 0x9f8   :  { %9930 = vmatpush3.msra.mxu1 %v11559_v14  ;;  %9937 = vmatprep.mubr.msk.f32.mxu1 %vm10821_vm1, %v10820_v5 }
 0x9f9   :  { %9931 = vmatprep.subr.mxu1 %v10820_v5 }
 0x9fa   :  { %9932 = vmatpush3.msra.mxu1 %v11568_v16 }
 0x9fb   :  { %9933 = vmatprep.subr.mxu1 %v10820_v5 }
 0x9fc   :  { %9934 = vmatpush3.msra.mxu1 %v11575_v24 }
 0x9fd   :  { %9935 = vmatprep.subr.mxu1 %v10820_v5 }
 0x9fe   :  { %9936 = vmatpush3.msra.mxu1 %v11582_v25 }
 0x9ff   :  { %9938 = vmatmul.mubr.msk.f32.vlgmr.msra.gmra.mxu1 %vm360_vm2, %v10690_v19  ;;  %9951 = vmatprep.subr.mxu1 %v10820_v5 }
 0xa00   :  { %9952 = vmatpush3.msra.mxu1 %v11474_v20  ;;  %9959 = vmatprep.mubr.msk.f32.mxu1 %vm10821_vm1, %v10820_v5 }
 0xa01   :  { %9953 = vmatprep.subr.mxu1 %v10820_v5 }
 0xa02   :  { %9954 = vmatpush3.msra.mxu1 %v11483_v21 }
 0xa03   :  { %9955 = vmatprep.subr.mxu1 %v10820_v5 }
 0xa04   :  { %9956 = vmatpush3.msra.mxu1 %v11490_v22 }
 0xa05   :  { %9957 = vmatprep.subr.mxu1 %v10820_v5 }
 0xa06   :  { %9958 = vmatpush3.msra.mxu1 %v11497_v23 }
 0xa07   :  { %9973 = vmatprep.subr.mxu1 %v10820_v5 }
 0xa48   :  { %v3375_v46 = vpop.f32.mrf.mxu0 }
 0xa49   :  { %v3379_v47 = vadd.f32 %v3375_v46, %v3083_v35  ;;  %v4192_v35 = vld [vmem:[%s12837_s7 + $0x190] sm:$0xff] }
 0xa4a   :  { %v9862_v48 = vpop.f32.mrf.mxu0 }
 0xa4b   :  { %v4489_v48 = vld [vmem:[%s12837_s7 + $0x1b8] sm:$0xff] }
 0xa50   :  { %v3522_v49 = vpop.f32.mrf.mxu0 }
 0xa51   :  { %v3593_v50 = vadd.f32 %v3592_v17, %v3522_v49  ;;  %v4488_v49 = vld [vmem:[%s12837_s7 + $0x1b0] sm:$0xff] }
 0xa52   :  { %v9884_v51 = vpop.f32.mrf.mxu0 }
 0xa53   :  { %v3596_v52 = vadd.f32 %v11601_v32, %v3593_v50  ;;  %v4487_v51 = vld [vmem:[%s12837_s7 + $0x1a8] sm:$0xff] }
 0xa55   :  { %10691 = vtanh.f32 %v3596_v52  ;;  %v4486_v52 = vld [vmem:[%s12837_s7 + $0x1a0] sm:$0xff] }
 0xa62   :  { %v10692_v53 = vpop.eup %10691 }
 0xa63   :  { %9905 = vmatmul.mubr.msk.f32.vlgmr.msra.gmra.mxu0 %vm360_vm2, %v10692_v53 }
 0xa64   :  { %9919 = vmatpush3.msra.mxu0 %v11509_v58  ;;  %9926 = vmatprep.mubr.msk.f32.mxu0 %vm10821_vm1, %v10820_v5 }
 0xa65   :  { %9920 = vmatprep.subr.mxu0 %v10820_v5 }
 0xa66   :  { %9921 = vmatpush3.msra.mxu0 %v11518_v41 }
 0xa67   :  { %9922 = vmatprep.subr.mxu0 %v10820_v5 }
 0xa68   :  { %9923 = vmatpush3.msra.mxu0 %v11525_v59 }
 0xa69   :  { %9924 = vmatprep.subr.mxu0 %v10820_v5 }
 0xa6a   :  { %9925 = vmatpush3.msra.mxu0 %v11532_v60 }
 0xa6b   :  { %9927 = vmatmul.mubr.msk.f32.vlgmr.msra.gmra.mxu0 %vm360_vm2, %v10692_v53  ;;  %9940 = vmatprep.subr.mxu0 %v10820_v5 }
 0xa6c   :  { %9948 = vmatprep.mubr.msk.f32.mxu0 %vm10821_vm1, %v10820_v5  ;;  %9941 = vmatpush3.msra.mxu0 %v3897_v54 }
 0xa6d   :  { %9942 = vmatprep.subr.mxu0 %v10820_v5 }
 0xa6e   :  { %9943 = vmatpush3.msra.mxu0 %v3896_v37 }
 0xa6f   :  { %9944 = vmatprep.subr.mxu0 %v10820_v5 }
 0xa70   :  { %9945 = vmatpush3.msra.mxu0 %v3895_v55 }
 0xa71   :  { %9946 = vmatprep.subr.mxu0 %v10820_v5 }
 0xa72   :  { %9947 = vmatpush3.msra.mxu0 %v3894_v56 }
 0xa73   :  { %9962 = vmatprep.subr.mxu0 %v10820_v5 }
 0xab7   :  { %v3746_v61 = vpop.f32.mrf.mxu1 }
 0xab8   :  { %v3750_v62 = vadd.f32 %v3746_v61, %v3676_v57 }
 0xab9   :  { %v9917_v63 = vpop.f32.mrf.mxu1 }
 0xaba   :  { %10693 = vtanh.f32 %v3750_v62 }
 0xabf   :  { %v3888_v0 = vpop.f32.mrf.mxu1 }
 0xac1   :  { %v9939_v1 = vpop.f32.mrf.mxu1 }
 0xac2   :  { %v12045_v1 = vld [vmem:[%s12832_s2] sm:$0xff] }
 0xac7   :  { %v10694_v2 = vpop.eup %10693 }
 0xac8   :  { %9960 = vmatmul.mubr.msk.f32.vlgmr.msra.gmra.mxu1 %vm360_vm2, %v10694_v2 }
 0xac9   :  { %9974 = vmatpush3.msra.mxu1 %v11559_v14  ;;  %9981 = vmatprep.mubr.msk.f32.mxu1 %vm10821_vm1, %v10820_v5 }
 0xaca   :  { %9975 = vmatprep.subr.mxu1 %v10820_v5 }
 0xacb   :  { %9976 = vmatpush3.msra.mxu1 %v11568_v16 }
 0xacc   :  { %9977 = vmatprep.subr.mxu1 %v10820_v5 }
 0xacd   :  { %9978 = vmatpush3.msra.mxu1 %v11575_v24 }
 0xace   :  { %9979 = vmatprep.subr.mxu1 %v10820_v5 }
 0xacf   :  { %9980 = vmatpush3.msra.mxu1 %v11582_v25 }
 0xad0   :  { %9982 = vmatmul.mubr.msk.f32.vlgmr.msra.gmra.mxu1 %vm360_vm2, %v10694_v2  ;;  %9995 = vmatprep.subr.mxu1 %v10820_v5 }
 0xad1   :  { %9996 = vmatpush3.msra.mxu1 %v11474_v20  ;;  %10003 = vmatprep.mubr.msk.f32.mxu1 %vm10821_vm1, %v10820_v5 }
 0xad2   :  { %9997 = vmatprep.subr.mxu1 %v10820_v5 }
 0xad3   :  { %9998 = vmatpush3.msra.mxu1 %v11483_v21 }
 0xad4   :  { %9999 = vmatprep.subr.mxu1 %v10820_v5 }
 0xad5   :  { %10000 = vmatpush3.msra.mxu1 %v11490_v22 }
 0xad6   :  { %10001 = vmatprep.subr.mxu1 %v10820_v5 }
 0xad7   :  { %10002 = vmatpush3.msra.mxu1 %v11497_v23 }
 0xad8   :  { %10017 = vmatprep.subr.mxu1 %v10820_v5 }
 0xb23   :  { %v3671_v3 = vpop.f32.mrf.mxu0 }
 0xb24   :  { %v3675_v10 = vadd.f32 %v3671_v3, %v3379_v47 }
 0xb25   :  { %v9906_v11 = vpop.f32.mrf.mxu0 }
 0xb2b   :  { %v3818_v12 = vpop.f32.mrf.mxu0 }
 0xb2c   :  { %v3889_v13 = vadd.f32 %v3888_v0, %v3818_v12  ;;  %v12036_v0 = vld [vmem:[%s12832_s2 + $0x8] sm:$0xff] }
 0xb2d   :  { %v9928_v26 = vpop.f32.mrf.mxu0 }
 0xb2e   :  { %v3892_v27 = vadd.f32 %v11601_v32, %v3889_v13 }
 0xb30   :  { %10695 = vtanh.f32 %v3892_v27 }
 0xb3d   :  { %v10696_v28 = vpop.eup %10695 }
 0xb3e   :  { %9949 = vmatmul.mubr.msk.f32.vlgmr.msra.gmra.mxu0 %vm360_vm2, %v10696_v28 }
 0xb3f   :  { %9963 = vmatpush3.msra.mxu0 %v11509_v58  ;;  %9970 = vmatprep.mubr.msk.f32.mxu0 %vm10821_vm1, %v10820_v5 }
 0xb40   :  { %9964 = vmatprep.subr.mxu0 %v10820_v5 }
 0xb41   :  { %9965 = vmatpush3.msra.mxu0 %v11518_v41 }
 0xb42   :  { %9966 = vmatprep.subr.mxu0 %v10820_v5 }
 0xb43   :  { %9967 = vmatpush3.msra.mxu0 %v11525_v59 }
 0xb44   :  { %9968 = vmatprep.subr.mxu0 %v10820_v5 }
 0xb45   :  { %9969 = vmatpush3.msra.mxu0 %v11532_v60 }
 0xb46   :  { %9971 = vmatmul.mubr.msk.f32.vlgmr.msra.gmra.mxu0 %vm360_vm2, %v10696_v28  ;;  %9984 = vmatprep.subr.mxu0 %v10820_v5  ;;  %v12057_v28 = vld [vmem:[%s12835_s5 + $0x18] sm:$0xff] }
 0xb47   :  { %9992 = vmatprep.mubr.msk.f32.mxu0 %vm10821_vm1, %v10820_v5  ;;  %9985 = vmatpush3.msra.mxu0 %v4193_v34 }
 0xb48   :  { %9986 = vmatprep.subr.mxu0 %v10820_v5 }
 0xb49   :  { %9987 = vmatpush3.msra.mxu0 %v4192_v35 }
 0xb4a   :  { %9988 = vmatprep.subr.mxu0 %v10820_v5 }
 0xb4b   :  { %9989 = vmatpush3.msra.mxu0 %v4191_v36 }
 0xb4c   :  { %9990 = vmatprep.subr.mxu0 %v10820_v5 }
 0xb4d   :  { %9991 = vmatpush3.msra.mxu0 %v4190_v38 }
 0xb4e   :  { %10006 = vmatprep.subr.mxu0 %v10820_v5 }
 0xb88   :  { %v4042_v30 = vpop.f32.mrf.mxu1 }
 0xb89   :  { %v4046_v31 = vadd.f32 %v4042_v30, %v3972_v29  ;;  %v12073_v29 = vld [vmem:[%s12835_s5 + $0x8] sm:$0xff]  ;;  %v12080_v30 = vld [vmem:[%s12835_s5] sm:$0xff] }
 0xb8a   :  { %v9961_v33 = vpop.f32.mrf.mxu1 }
 0xb8b   :  { %10697 = vtanh.f32 %v4046_v31  ;;  %v4860_v31 = vld [vmem:[#allocation2 + $0x80] sm:$0xff] }
 0xb90   :  { %v4184_v39 = vpop.f32.mrf.mxu1 }
 0xb92   :  { %v9983_v40 = vpop.f32.mrf.mxu1 }
 0xb93   :  { %v12091_v40 = vld [vmem:[%s12834_s4 + $0x18] sm:$0xff] }
 0xb98   :  { %v10698_v4 = vpop.eup %10697 }
 0xb99   :  { %10004 = vmatmul.mubr.msk.f32.vlgmr.msra.gmra.mxu1 %vm360_vm2, %v10698_v4 }
 0xb9a   :  { %10018 = vmatpush3.msra.mxu1 %v11559_v14  ;;  %10025 = vmatprep.mubr.msk.f32.mxu1 %vm10821_vm1, %v10820_v5 }
 0xb9b   :  { %10019 = vmatprep.subr.mxu1 %v10820_v5 }
 0xb9c   :  { %10020 = vmatpush3.msra.mxu1 %v11568_v16 }
 0xb9d   :  { %10021 = vmatprep.subr.mxu1 %v10820_v5 }
 0xb9e   :  { %10022 = vmatpush3.msra.mxu1 %v11575_v24 }
 0xb9f   :  { %10023 = vmatprep.subr.mxu1 %v10820_v5 }
 0xba0   :  { %10024 = vmatpush3.msra.mxu1 %v11582_v25 }
 0xba1   :  { %10026 = vmatmul.mubr.msk.f32.vlgmr.msra.gmra.mxu1 %vm360_vm2, %v10698_v4  ;;  %10039 = vmatprep.subr.mxu1 %v10820_v5  ;;  %v12100_v4 = vld [vmem:[%s12834_s4 + $0x10] sm:$0xff] }
 0xba2   :  { %10040 = vmatpush3.msra.mxu1 %v11474_v20  ;;  %10047 = vmatprep.mubr.msk.f32.mxu1 %vm10821_vm1, %v10820_v5 }
 0xba3   :  { %10041 = vmatprep.subr.mxu1 %v10820_v5 }
 0xba4   :  { %10042 = vmatpush3.msra.mxu1 %v11483_v21 }
 0xba5   :  { %10043 = vmatprep.subr.mxu1 %v10820_v5 }
 0xba6   :  { %10044 = vmatpush3.msra.mxu1 %v11490_v22 }
 0xba7   :  { %10045 = vmatprep.subr.mxu1 %v10820_v5 }
 0xba8   :  { %10046 = vmatpush3.msra.mxu1 %v11497_v23 }
 0xba9   :  { %10061 = vmatprep.subr.mxu1 %v10820_v5 }
 0xbfe   :  { %v3967_v42 = vpop.f32.mrf.mxu0 }
 0xbff   :  { %v3971_v9 = vadd.f32 %v3967_v42, %v3675_v10  ;;  %v12107_v42 = vld [vmem:[%s12834_s4 + $0x8] sm:$0xff] }
 0xc00   :  { %v9950_v43 = vpop.f32.mrf.mxu0 }
 0xc01   :  { %v5081_v43 = vld [vmem:[%s12837_s7 + $0x1f8] sm:$0xff] }
 0xc06   :  { %v4114_v44 = vpop.f32.mrf.mxu0 }
 0xc07   :  { %v4185_v6 = vadd.f32 %v4184_v39, %v4114_v44  ;;  %v5080_v44 = vld [vmem:[%s12837_s7 + $0x1f0] sm:$0xff] }
 0xc08   :  { %v9972_v45 = vpop.f32.mrf.mxu0 }
 0xc09   :  { %v4188_v7 = vadd.f32 %v11601_v32, %v4185_v6  ;;  %v5079_v6 = vld [vmem:[%s12837_s7 + $0x1e8] sm:$0xff]  ;;  %v5078_v45 = vld [vmem:[%s12837_s7 + $0x1e0] sm:$0xff] }
 0xc0b   :  { %10699 = vtanh.f32 %v4188_v7 }
 0xc18   :  { %v10700_v8 = vpop.eup %10699 }
 0xc19   :  { %9993 = vmatmul.mubr.msk.f32.vlgmr.msra.gmra.mxu0 %vm360_vm2, %v10700_v8 }
 0xc1a   :  { %10007 = vmatpush3.msra.mxu0 %v11509_v58  ;;  %10014 = vmatprep.mubr.msk.f32.mxu0 %vm10821_vm1, %v10820_v5 }
 0xc1b   :  { %10008 = vmatprep.subr.mxu0 %v10820_v5 }
 0xc1c   :  { %10009 = vmatpush3.msra.mxu0 %v11518_v41 }
 0xc1d   :  { %10010 = vmatprep.subr.mxu0 %v10820_v5 }
 0xc1e   :  { %10011 = vmatpush3.msra.mxu0 %v11525_v59 }
 0xc1f   :  { %10012 = vmatprep.subr.mxu0 %v10820_v5 }
 0xc20   :  { %10013 = vmatpush3.msra.mxu0 %v11532_v60 }
 0xc21   :  { %10015 = vmatmul.mubr.msk.f32.vlgmr.msra.gmra.mxu0 %vm360_vm2, %v10700_v8  ;;  %10028 = vmatprep.subr.mxu0 %v10820_v5 }
 0xc22   :  { %10036 = vmatprep.mubr.msk.f32.mxu0 %vm10821_vm1, %v10820_v5  ;;  %10029 = vmatpush3.msra.mxu0 %v4489_v48 }
 0xc23   :  { %10030 = vmatprep.subr.mxu0 %v10820_v5 }
 0xc24   :  { %10031 = vmatpush3.msra.mxu0 %v4488_v49  ;;  %v5156_v49 = vld [vmem:[#allocation2 + $0x88] sm:$0xff] }
 0xc25   :  { %10032 = vmatprep.subr.mxu0 %v10820_v5 }
 0xc26   :  { %10033 = vmatpush3.msra.mxu0 %v4487_v51 }
 0xc27   :  { %10034 = vmatprep.subr.mxu0 %v10820_v5 }
 0xc28   :  { %10035 = vmatpush3.msra.mxu0 %v4486_v52 }
 0xc29   :  { %10050 = vmatprep.subr.mxu0 %v10820_v5 }
 0xc59   :  { %v4338_v17 = vpop.f32.mrf.mxu1 }
 0xc5a   :  { %v4342_v18 = vadd.f32 %v4338_v17, %v4268_v15 }
 0xc5b   :  { %v10005_v19 = vpop.f32.mrf.mxu1 }
 0xc5c   :  { %10701 = vtanh.f32 %v4342_v18 }
 0xc61   :  { %v4480_v46 = vpop.f32.mrf.mxu1 }
 0xc63   :  { %v10027_v47 = vpop.f32.mrf.mxu1 }
 0xc69   :  { %v10702_v50 = vpop.eup %10701 }
 0xc6a   :  { %10048 = vmatmul.mubr.msk.f32.vlgmr.msra.gmra.mxu1 %vm360_vm2, %v10702_v50 }
 0xc6b   :  { %10062 = vmatpush3.msra.mxu1 %v11559_v14  ;;  %10069 = vmatprep.mubr.msk.f32.mxu1 %vm10821_vm1, %v10820_v5 }
 0xc6c   :  { %10063 = vmatprep.subr.mxu1 %v10820_v5 }
 0xc6d   :  { %10064 = vmatpush3.msra.mxu1 %v11568_v16 }
 0xc6e   :  { %10065 = vmatprep.subr.mxu1 %v10820_v5 }
 0xc6f   :  { %10066 = vmatpush3.msra.mxu1 %v11575_v24 }
 0xc70   :  { %10067 = vmatprep.subr.mxu1 %v10820_v5 }
 0xc71   :  { %10068 = vmatpush3.msra.mxu1 %v11582_v25 }
 0xc72   :  { %10070 = vmatmul.mubr.msk.f32.vlgmr.msra.gmra.mxu1 %vm360_vm2, %v10702_v50  ;;  %10083 = vmatprep.subr.mxu1 %v10820_v5 }
 0xc73   :  { %10084 = vmatpush3.msra.mxu1 %v11474_v20  ;;  %10091 = vmatprep.mubr.msk.f32.mxu1 %vm10821_vm1, %v10820_v5 }
 0xc74   :  { %10085 = vmatprep.subr.mxu1 %v10820_v5 }
 0xc75   :  { %10086 = vmatpush3.msra.mxu1 %v11483_v21 }
 0xc76   :  { %10087 = vmatprep.subr.mxu1 %v10820_v5 }
 0xc77   :  { %10088 = vmatpush3.msra.mxu1 %v11490_v22  ;;  %v4564_v22 = vld [vmem:[#allocation2 + $0x78] sm:$0xff] }
 0xc78   :  { %10089 = vmatprep.subr.mxu1 %v10820_v5 }
 0xc79   :  { %10090 = vmatpush3.msra.mxu1 %v11497_v23 }
 0xc7a   :  { %10105 = vmatprep.subr.mxu1 %v10820_v5 }
 0xcd9   :  { %v4263_v53 = vpop.f32.mrf.mxu0 }
 0xcda   :  { %v11974_v54 = vadd.f32 %v4263_v53, %v3971_v9  ;;  %v12114_v9 = vld [vmem:[%s12834_s4] sm:$0xff] }
 0xcdb   :  { %v9994_v20 = vpop.f32.mrf.mxu0 }
 0xce1   :  { %v4410_v37 = vpop.f32.mrf.mxu0 }
 0xce2   :  { %v4481_v55 = vadd.f32 %v4480_v46, %v4410_v37  ;;  %v12149_v46 = vld [vmem:[%s12836_s6] ss:$0 sm:$0xff]  ;;  %v5377_v37 = vld [vmem:[%s12837_s7 + $0x218] sm:$0xff] }
 0xce3   :  { %v10016_v56 = vpop.f32.mrf.mxu0 }
 0xce4   :  { %v4484_v57 = vadd.f32 %v11601_v32, %v4481_v55  ;;  %v5376_v55 = vld [vmem:[%s12837_s7 + $0x210] sm:$0xff]  ;;  %v5375_v56 = vld [vmem:[%s12837_s7 + $0x208] sm:$0xff] }
 0xce6   :  { %10703 = vtanh.f32 %v4484_v57  ;;  %v5374_v57 = vld [vmem:[%s12837_s7 + $0x200] sm:$0xff] }
 0xcf3   :  { %v10704_v21 = vpop.eup %10703 }
 0xcf4   :  { %10037 = vmatmul.mubr.msk.f32.vlgmr.msra.gmra.mxu0 %vm360_vm2, %v10704_v21 }
 0xcf5   :  { %10051 = vmatpush3.msra.mxu0 %v11509_v58  ;;  %10058 = vmatprep.mubr.msk.f32.mxu0 %vm10821_vm1, %v10820_v5 }
 0xcf6   :  { %10052 = vmatprep.subr.mxu0 %v10820_v5 }
 0xcf7   :  { %10053 = vmatpush3.msra.mxu0 %v11518_v41 }
 0xcf8   :  { %10054 = vmatprep.subr.mxu0 %v10820_v5 }
 0xcf9   :  { %10055 = vmatpush3.msra.mxu0 %v11525_v59  ;;  %v4785_v59 = vld [vmem:[%s12837_s7 + $0x1d8] sm:$0xff] }
 0xcfa   :  { %10056 = vmatprep.subr.mxu0 %v10820_v5 }
 0xcfb   :  { %10057 = vmatpush3.msra.mxu0 %v11532_v60  ;;  %v4784_v60 = vld [vmem:[%s12837_s7 + $0x1d0] sm:$0xff] }
 0xcfc   :  { %10059 = vmatmul.mubr.msk.f32.vlgmr.msra.gmra.mxu0 %vm360_vm2, %v10704_v21  ;;  %10072 = vmatprep.subr.mxu0 %v10820_v5 }
 0xcfd   :  { %10080 = vmatprep.mubr.msk.f32.mxu0 %vm10821_vm1, %v10820_v5  ;;  %10073 = vmatpush3.msra.mxu0 %v4785_v59  ;;  %v5452_v59 = vld [vmem:[#allocation2 + $0x90] sm:$0xff] }
 0xcfe   :  { %10074 = vmatprep.subr.mxu0 %v10820_v5 }
 0xcff   :  { %10075 = vmatpush3.msra.mxu0 %v4784_v60 }
 0xd00   :  { %10076 = vmatprep.subr.mxu0 %v10820_v5 }
 0xd2a   :  { %v4634_v23 = vpop.f32.mrf.mxu1 }
 0xd2b   :  { %v4638_v58 = vadd.f32 %v4634_v23, %v4564_v22 }
 0xd2c   :  { %v10049_v61 = vpop.f32.mrf.mxu1 }
 0xd2d   :  { %10705 = vtanh.f32 %v4638_v58 }
 0xd32   :  { %v4776_v41 = vpop.f32.mrf.mxu1 }
 0xd34   :  { %v10071_v62 = vpop.f32.mrf.mxu1 }
 0xd3a   :  { %v10706_v63 = vpop.eup %10705 }
 0xd3b   :  { %10092 = vmatmul.mubr.msk.f32.vlgmr.msra.gmra.mxu1 %vm360_vm2, %v10706_v63 }
 0xd3c   :  { %10106 = vmatpush3.msra.mxu1 %v11559_v14  ;;  %10113 = vmatprep.mubr.msk.f32.mxu1 %vm10821_vm1, %v10820_v5  ;;  %v4783_v14 = vld [vmem:[%s12837_s7 + $0x1c8] sm:$0xff] }
 0xd3d   :  { %10107 = vmatprep.subr.mxu1 %v10820_v5  ;;  %10077 = vmatpush3.msra.mxu0 %v4783_v14 }
 0xd3e   :  { %10108 = vmatpush3.msra.mxu1 %v11568_v16  ;;  %v4782_v16 = vld [vmem:[%s12837_s7 + $0x1c0] sm:$0xff]  ;;  %10078 = vmatprep.subr.mxu0 %v10820_v5 }
 0xd3f   :  { %10109 = vmatprep.subr.mxu1 %v10820_v5  ;;  %10079 = vmatpush3.msra.mxu0 %v4782_v16 }
 0xd40   :  { %10110 = vmatpush3.msra.mxu1 %v11575_v24  ;;  %v12020_v24 = vld [vmem:[%s12832_s2 + $0x18] sm:$0xff]  ;;  %10094 = vmatprep.subr.mxu0 %v10820_v5 }
 0xd41   :  { %10111 = vmatprep.subr.mxu1 %v10820_v5 }
 0xd42   :  { %10112 = vmatpush3.msra.mxu1 %v11582_v25  ;;  %v12028_v25 = vld [vmem:[%s12832_s2 + $0x10] sm:$0xff] }
 0xd43   :  { %10114 = vmatmul.mubr.msk.f32.vlgmr.msra.gmra.mxu1 %vm360_vm2, %v10706_v63  ;;  %10127 = vmatprep.subr.mxu1 %v10820_v5 }
 0xd44   :  { %10128 = vmatpush3.msra.mxu1 %v12020_v24  ;;  %10135 = vmatprep.mubr.msk.f32.mxu1 %vm10821_vm1, %v10820_v5 }
 0xd45   :  { %10129 = vmatprep.subr.mxu1 %v10820_v5 }
 0xd46   :  { %10130 = vmatpush3.msra.mxu1 %v12028_v25 }
 0xd47   :  { %10131 = vmatprep.subr.mxu1 %v10820_v5 }
 0xd48   :  { %10132 = vmatpush3.msra.mxu1 %v12036_v0 }
 0xd49   :  { %10133 = vmatprep.subr.mxu1 %v10820_v5 }
 0xd4a   :  { %10134 = vmatpush3.msra.mxu1 %v12045_v1 }
 0xd4b   :  { %10149 = vmatprep.subr.mxu1 %v10820_v5 }
 0xdb4   :  { %v4559_v2 = vpop.f32.mrf.mxu0 }
 0xdb5   :  { %v12050_v3 = vadd.f32 %v4559_v2, %v11974_v54 }
 0xdb6   :  { %v10038_v10 = vpop.f32.mrf.mxu0 }
 0xdbc   :  { %v4706_v11 = vpop.f32.mrf.mxu0 }
 0xdbd   :  { %v4777_v12 = vadd.f32 %v4776_v41, %v4706_v11  ;;  %v5673_v11 = vld [vmem:[%s12837_s7 + $0x238] sm:$0xff] }
 0xdbe   :  { %v10060_v13 = vpop.f32.mrf.mxu0 }
 0xdbf   :  { %v4780_v26 = vadd.f32 %v11601_v32, %v4777_v12  ;;  %v12066_v32 = vld [vmem:[%s12835_s5 + $0x10] sm:$0xff]  ;;  %v5671_v13 = vld [vmem:[%s12837_s7 + $0x228] sm:$0xff] }
 0xdc0   :  { %v5672_v12 = vld [vmem:[%s12837_s7 + $0x230] sm:$0xff] }
 0xdc1   :  { %10707 = vtanh.f32 %v4780_v26  ;;  %v5670_v26 = vld [vmem:[%s12837_s7 + $0x220] sm:$0xff] }
 0xdce   :  { %v10708_v27 = vpop.eup %10707 }
 0xdcf   :  { %10081 = vmatmul.mubr.msk.f32.vlgmr.msra.gmra.mxu0 %vm360_vm2, %v10708_v27 }
 0xdd0   :  { %10095 = vmatpush3.msra.mxu0 %v12057_v28  ;;  %10102 = vmatprep.mubr.msk.f32.mxu0 %vm10821_vm1, %v10820_v5 }
 0xdd1   :  { %10096 = vmatprep.subr.mxu0 %v10820_v5 }
 0xdd2   :  { %10097 = vmatpush3.msra.mxu0 %v12066_v32 }
 0xdd3   :  { %10098 = vmatprep.subr.mxu0 %v10820_v5 }
 0xdd4   :  { %10099 = vmatpush3.msra.mxu0 %v12073_v29 }
 0xdd5   :  { %10100 = vmatprep.subr.mxu0 %v10820_v5 }
 0xdd6   :  { %10101 = vmatpush3.msra.mxu0 %v12080_v30 }
 0xdd7   :  { %10103 = vmatmul.mubr.msk.f32.vlgmr.msra.gmra.mxu0 %vm360_vm2, %v10708_v27  ;;  %10116 = vmatprep.subr.mxu0 %v10820_v5 }
 0xdd8   :  { %10124 = vmatprep.mubr.msk.f32.mxu0 %vm10821_vm1, %v10820_v5  ;;  %10117 = vmatpush3.msra.mxu0 %v5081_v43  ;;  %v5748_v43 = vld [vmem:[#allocation2 + $0x98] sm:$0xff] }
 0xdd9   :  { %10118 = vmatprep.subr.mxu0 %v10820_v5 }
 0xdda   :  { %10119 = vmatpush3.msra.mxu0 %v5080_v44 }
 0xddb   :  { %10120 = vmatprep.subr.mxu0 %v10820_v5 }
 0xddc   :  { %10121 = vmatpush3.msra.mxu0 %v5079_v6 }
 0xddd   :  { %10122 = vmatprep.subr.mxu0 %v10820_v5 }
 0xdde   :  { %10123 = vmatpush3.msra.mxu0 %v5078_v45 }
 0xddf   :  { %10138 = vmatprep.subr.mxu0 %v10820_v5 }
 0xdfb   :  { %v4930_v33 = vpop.f32.mrf.mxu1 }
 0xdfc   :  { %v4934_v34 = vadd.f32 %v4930_v33, %v4860_v31 }
 0xdfd   :  { %v10093_v35 = vpop.f32.mrf.mxu1 }
 0xdfe   :  { %10709 = vtanh.f32 %v4934_v34 }
 0xe03   :  { %v5072_v36 = vpop.f32.mrf.mxu1 }
 0xe05   :  { %v10115_v38 = vpop.f32.mrf.mxu1 }
 0xe0b   :  { %v10710_v39 = vpop.eup %10709 }
 0xe0c   :  { %10136 = vmatmul.mubr.msk.f32.vlgmr.msra.gmra.mxu1 %vm360_vm2, %v10710_v39 }
 0xe0d   :  { %10150 = vmatpush3.msra.mxu1 %v12091_v40  ;;  %10157 = vmatprep.mubr.msk.f32.mxu1 %vm10821_vm1, %v10820_v5 }
 0xe0e   :  { %10151 = vmatprep.subr.mxu1 %v10820_v5 }
 0xe0f   :  { %10152 = vmatpush3.msra.mxu1 %v12100_v4 }
 0xe10   :  { %10153 = vmatprep.subr.mxu1 %v10820_v5 }
 0xe11   :  { %10154 = vmatpush3.msra.mxu1 %v12107_v42 }
 0xe12   :  { %10155 = vmatprep.subr.mxu1 %v10820_v5 }
 0xe13   :  { %10156 = vmatpush3.msra.mxu1 %v12114_v9 }
 0xe14   :  { %10158 = vmatmul.mubr.msk.f32.vlgmr.msra.gmra.mxu1 %vm360_vm2, %v10710_v39  ;;  %10171 = vmatprep.subr.mxu1 %v10820_v5 }
 0xe15   :  { %10172 = vmatpush3.msra.mxu1 %v12020_v24  ;;  %10179 = vmatprep.mubr.msk.f32.mxu1 %vm10821_vm1, %v10820_v5 }
 0xe16   :  { %10173 = vmatprep.subr.mxu1 %v10820_v5 }
 0xe17   :  { %10174 = vmatpush3.msra.mxu1 %v12028_v25 }
 0xe18   :  { %10175 = vmatprep.subr.mxu1 %v10820_v5 }
 0xe19   :  { %10176 = vmatpush3.msra.mxu1 %v12036_v0 }
 0xe1a   :  { %10177 = vmatprep.subr.mxu1 %v10820_v5 }
 0xe1b   :  { %10178 = vmatpush3.msra.mxu1 %v12045_v1 }
 0xe1c   :  { %10193 = vmatprep.subr.mxu1 %v10820_v5 }
 0xe8f   :  { %v4855_v7 = vpop.f32.mrf.mxu0 }
 0xe90   :  { %v4859_v8 = vadd.f32 %v4855_v7, %v12050_v3 }
 0xe91   :  { %v10082_v15 = vpop.f32.mrf.mxu0 }
 0xe97   :  { %v5002_v17 = vpop.f32.mrf.mxu0 }
 0xe98   :  { %v5073_v18 = vadd.f32 %v5072_v36, %v5002_v17  ;;  %v5969_v17 = vld [vmem:[%s12837_s7 + $0x258] sm:$0xff] }
 0xe99   :  { %v10104_v19 = vpop.f32.mrf.mxu0 }
 0xe9a   :  { %v5076_v47 = vadd.f32 %v12149_v46, %v5073_v18  ;;  %v5968_v18 = vld [vmem:[%s12837_s7 + $0x250] sm:$0xff]  ;;  %v5967_v19 = vld [vmem:[%s12837_s7 + $0x248] sm:$0xff] }
 0xe9c   :  { %10711 = vtanh.f32 %v5076_v47  ;;  %v5966_v47 = vld [vmem:[%s12837_s7 + $0x240] sm:$0xff] }
 0xea9   :  { %v10712_v48 = vpop.eup %10711 }
 0xeaa   :  { %10125 = vmatmul.mubr.msk.f32.vlgmr.msra.gmra.mxu0 %vm360_vm2, %v10712_v48 }
 0xeab   :  { %10139 = vmatpush3.msra.mxu0 %v12057_v28  ;;  %10146 = vmatprep.mubr.msk.f32.mxu0 %vm10821_vm1, %v10820_v5 }
 0xeac   :  { %10140 = vmatprep.subr.mxu0 %v10820_v5 }
 0xead   :  { %10141 = vmatpush3.msra.mxu0 %v12066_v32 }
 0xeae   :  { %10142 = vmatprep.subr.mxu0 %v10820_v5 }
 0xeaf   :  { %10143 = vmatpush3.msra.mxu0 %v12073_v29 }
 0xeb0   :  { %10144 = vmatprep.subr.mxu0 %v10820_v5 }
 0xeb1   :  { %10145 = vmatpush3.msra.mxu0 %v12080_v30 }
 0xeb2   :  { %10147 = vmatmul.mubr.msk.f32.vlgmr.msra.gmra.mxu0 %vm360_vm2, %v10712_v48  ;;  %10160 = vmatprep.subr.mxu0 %v10820_v5 }
 0xeb3   :  { %10168 = vmatprep.mubr.msk.f32.mxu0 %vm10821_vm1, %v10820_v5  ;;  %10161 = vmatpush3.msra.mxu0 %v5377_v37  ;;  %v6044_v37 = vld [vmem:[#allocation2 + $0xa0] sm:$0xff] }
 0xeb4   :  { %10162 = vmatprep.subr.mxu0 %v10820_v5 }
 0xeb5   :  { %10163 = vmatpush3.msra.mxu0 %v5376_v55 }
 0xeb6   :  { %10164 = vmatprep.subr.mxu0 %v10820_v5 }
 0xeb7   :  { %10165 = vmatpush3.msra.mxu0 %v5375_v56 }
 0xeb8   :  { %10166 = vmatprep.subr.mxu0 %v10820_v5 }
 0xeb9   :  { %10167 = vmatpush3.msra.mxu0 %v5374_v57 }
 0xeba   :  { %10182 = vmatprep.subr.mxu0 %v10820_v5 }
 0xecc   :  { %v5226_v50 = vpop.f32.mrf.mxu1 }
 0xecd   :  { %v5230_v51 = vadd.f32 %v5226_v50, %v5156_v49 }
 0xece   :  { %v10137_v52 = vpop.f32.mrf.mxu1 }
 0xecf   :  { %10713 = vtanh.f32 %v5230_v51 }
 0xed4   :  { %v5368_v53 = vpop.f32.mrf.mxu1 }
 0xed6   :  { %v10159_v54 = vpop.f32.mrf.mxu1 }
 0xedc   :  { %v10714_v20 = vpop.eup %10713 }
 0xedd   :  { %10180 = vmatmul.mubr.msk.f32.vlgmr.msra.gmra.mxu1 %vm360_vm2, %v10714_v20 }
 0xede   :  { %10194 = vmatpush3.msra.mxu1 %v12091_v40  ;;  %10201 = vmatprep.mubr.msk.f32.mxu1 %vm10821_vm1, %v10820_v5 }
 0xedf   :  { %10195 = vmatprep.subr.mxu1 %v10820_v5 }
 0xee0   :  { %10196 = vmatpush3.msra.mxu1 %v12100_v4 }
 0xee1   :  { %10197 = vmatprep.subr.mxu1 %v10820_v5 }
 0xee2   :  { %10198 = vmatpush3.msra.mxu1 %v12107_v42 }
 0xee3   :  { %10199 = vmatprep.subr.mxu1 %v10820_v5 }
 0xee4   :  { %10200 = vmatpush3.msra.mxu1 %v12114_v9 }
 0xee5   :  { %10202 = vmatmul.mubr.msk.f32.vlgmr.msra.gmra.mxu1 %vm360_vm2, %v10714_v20  ;;  %10215 = vmatprep.subr.mxu1 %v10820_v5 }
 0xee6   :  { %10216 = vmatpush3.msra.mxu1 %v12020_v24  ;;  %10223 = vmatprep.mubr.msk.f32.mxu1 %vm10821_vm1, %v10820_v5 }
 0xee7   :  { %10217 = vmatprep.subr.mxu1 %v10820_v5 }
 0xee8   :  { %10218 = vmatpush3.msra.mxu1 %v12028_v25 }
 0xee9   :  { %10219 = vmatprep.subr.mxu1 %v10820_v5 }
 0xeea   :  { %10220 = vmatpush3.msra.mxu1 %v12036_v0 }
 0xeeb   :  { %10221 = vmatprep.subr.mxu1 %v10820_v5 }
 0xeec   :  { %10222 = vmatpush3.msra.mxu1 %v12045_v1 }
 0xeed   :  { %10237 = vmatprep.subr.mxu1 %v10820_v5 }
 0xf6a   :  { %v5151_v21 = vpop.f32.mrf.mxu0 }
 0xf6b   :  { %v5155_v22 = vadd.f32 %v5151_v21, %v4859_v8 }
 0xf6c   :  { %v10126_v23 = vpop.f32.mrf.mxu0 }
 0xf72   :  { %v5298_v58 = vpop.f32.mrf.mxu0 }
 0xf73   :  { %v5369_v61 = vadd.f32 %v5368_v53, %v5298_v58  ;;  %v6265_v58 = vld [vmem:[%s12837_s7 + $0x278] sm:$0xff] }
 0xf74   :  { %v10148_v41 = vpop.f32.mrf.mxu0 }
 0xf75   :  { %v5372_v62 = vadd.f32 %v12149_v46, %v5369_v61  ;;  %v6264_v61 = vld [vmem:[%s12837_s7 + $0x270] sm:$0xff]  ;;  %v6263_v41 = vld [vmem:[%s12837_s7 + $0x268] sm:$0xff] }
 0xf77   :  { %10715 = vtanh.f32 %v5372_v62  ;;  %v6262_v62 = vld [vmem:[%s12837_s7 + $0x260] sm:$0xff] }
 0xf84   :  { %v10716_v63 = vpop.eup %10715 }
 0xf85   :  { %10169 = vmatmul.mubr.msk.f32.vlgmr.msra.gmra.mxu0 %vm360_vm2, %v10716_v63 }
 0xf86   :  { %10183 = vmatpush3.msra.mxu0 %v12057_v28  ;;  %10190 = vmatprep.mubr.msk.f32.mxu0 %vm10821_vm1, %v10820_v5 }
 0xf87   :  { %10184 = vmatprep.subr.mxu0 %v10820_v5 }
 0xf88   :  { %10185 = vmatpush3.msra.mxu0 %v12066_v32 }
 0xf89   :  { %10186 = vmatprep.subr.mxu0 %v10820_v5 }
 0xf8a   :  { %10187 = vmatpush3.msra.mxu0 %v12073_v29 }
 0xf8b   :  { %10188 = vmatprep.subr.mxu0 %v10820_v5 }
 0xf8c   :  { %10189 = vmatpush3.msra.mxu0 %v12080_v30 }
 0xf8d   :  { %10191 = vmatmul.mubr.msk.f32.vlgmr.msra.gmra.mxu0 %vm360_vm2, %v10716_v63  ;;  %10204 = vmatprep.subr.mxu0 %v10820_v5 }
 0xf8e   :  { %10212 = vmatprep.mubr.msk.f32.mxu0 %vm10821_vm1, %v10820_v5  ;;  %10205 = vmatpush3.msra.mxu0 %v5673_v11 }
 0xf8f   :  { %10206 = vmatprep.subr.mxu0 %v10820_v5 }
 0xf90   :  { %10207 = vmatpush3.msra.mxu0 %v5672_v12 }
 0xf91   :  { %10208 = vmatprep.subr.mxu0 %v10820_v5 }
 0xf92   :  { %10209 = vmatpush3.msra.mxu0 %v5671_v13 }
 0xf93   :  { %10210 = vmatprep.subr.mxu0 %v10820_v5 }
 0xf94   :  { %10211 = vmatpush3.msra.mxu0 %v5670_v26 }
 0xf95   :  { %10226 = vmatprep.subr.mxu0 %v10820_v5 }
 0xf9d   :  { %v5522_v60 = vpop.f32.mrf.mxu1 }
 0xf9e   :  { %v5526_v14 = vadd.f32 %v5522_v60, %v5452_v59 }
 0xf9f   :  { %v10181_v16 = vpop.f32.mrf.mxu1 }
 0xfa0   :  { %10717 = vtanh.f32 %v5526_v14 }
 0xfa5   :  { %v5664_v2 = vpop.f32.mrf.mxu1 }
 0xfa7   :  { %v10203_v3 = vpop.f32.mrf.mxu1 }
 0xfad   :  { %v10718_v10 = vpop.eup %10717 }
 0xfae   :  { %10224 = vmatmul.mubr.msk.f32.vlgmr.msra.gmra.mxu1 %vm360_vm2, %v10718_v10 }
 0xfaf   :  { %10238 = vmatpush3.msra.mxu1 %v12091_v40  ;;  %10245 = vmatprep.mubr.msk.f32.mxu1 %vm10821_vm1, %v10820_v5 }
 0xfb0   :  { %10239 = vmatprep.subr.mxu1 %v10820_v5 }
 0xfb1   :  { %10240 = vmatpush3.msra.mxu1 %v12100_v4 }
 0xfb2   :  { %10241 = vmatprep.subr.mxu1 %v10820_v5 }
 0xfb3   :  { %10242 = vmatpush3.msra.mxu1 %v12107_v42 }
 0xfb4   :  { %10243 = vmatprep.subr.mxu1 %v10820_v5 }
 0xfb5   :  { %10244 = vmatpush3.msra.mxu1 %v12114_v9 }
 0xfb6   :  { %10246 = vmatmul.mubr.msk.f32.vlgmr.msra.gmra.mxu1 %vm360_vm2, %v10718_v10  ;;  %10259 = vmatprep.subr.mxu1 %v10820_v5  ;;  %v6340_v10 = vld [vmem:[#allocation2 + $0xa8] sm:$0xff] }
 0xfb7   :  { %10260 = vmatpush3.msra.mxu1 %v12020_v24  ;;  %10267 = vmatprep.mubr.msk.f32.mxu1 %vm10821_vm1, %v10820_v5 }
 0xfb8   :  { %10261 = vmatprep.subr.mxu1 %v10820_v5 }
 0xfb9   :  { %10262 = vmatpush3.msra.mxu1 %v12028_v25 }
 0xfba   :  { %10263 = vmatprep.subr.mxu1 %v10820_v5 }
 0xfbb   :  { %10264 = vmatpush3.msra.mxu1 %v12036_v0 }
 0xfbc   :  { %10265 = vmatprep.subr.mxu1 %v10820_v5 }
 0xfbd   :  { %10266 = vmatpush3.msra.mxu1 %v12045_v1 }
 0xfbe   :  { %10281 = vmatprep.subr.mxu1 %v10820_v5 }
0x1045   :  { %v5447_v27 = vpop.f32.mrf.mxu0 }
0x1046   :  { %v5451_v31 = vadd.f32 %v5447_v27, %v5155_v22 }
0x1047   :  { %v10170_v33 = vpop.f32.mrf.mxu0 }
0x104d   :  { %v5594_v34 = vpop.f32.mrf.mxu0 }
0x104e   :  { %v5665_v35 = vadd.f32 %v5664_v2, %v5594_v34  ;;  %v6561_v34 = vld [vmem:[%s12837_s7 + $0x298] sm:$0xff] }
0x104f   :  { %v10192_v36 = vpop.f32.mrf.mxu0 }
0x1050   :  { %v5668_v38 = vadd.f32 %v12149_v46, %v5665_v35  ;;  %v6560_v35 = vld [vmem:[%s12837_s7 + $0x290] sm:$0xff]  ;;  %v6559_v36 = vld [vmem:[%s12837_s7 + $0x288] sm:$0xff] }
0x1052   :  { %10719 = vtanh.f32 %v5668_v38  ;;  %v6558_v38 = vld [vmem:[%s12837_s7 + $0x280] sm:$0xff] }
0x105f   :  { %v10720_v39 = vpop.eup %10719 }
0x1060   :  { %10213 = vmatmul.mubr.msk.f32.vlgmr.msra.gmra.mxu0 %vm360_vm2, %v10720_v39 }
0x1061   :  { %10227 = vmatpush3.msra.mxu0 %v12057_v28  ;;  %10234 = vmatprep.mubr.msk.f32.mxu0 %vm10821_vm1, %v10820_v5 }
0x1062   :  { %10228 = vmatprep.subr.mxu0 %v10820_v5 }
0x1063   :  { %10229 = vmatpush3.msra.mxu0 %v12066_v32 }
0x1064   :  { %10230 = vmatprep.subr.mxu0 %v10820_v5 }
0x1065   :  { %10231 = vmatpush3.msra.mxu0 %v12073_v29 }
0x1066   :  { %10232 = vmatprep.subr.mxu0 %v10820_v5 }
0x1067   :  { %10233 = vmatpush3.msra.mxu0 %v12080_v30 }
0x1068   :  { %10235 = vmatmul.mubr.msk.f32.vlgmr.msra.gmra.mxu0 %vm360_vm2, %v10720_v39  ;;  %10248 = vmatprep.subr.mxu0 %v10820_v5 }
0x1069   :  { %10256 = vmatprep.mubr.msk.f32.mxu0 %vm10821_vm1, %v10820_v5  ;;  %10249 = vmatpush3.msra.mxu0 %v5969_v17 }
0x106a   :  { %10250 = vmatprep.subr.mxu0 %v10820_v5 }
0x106b   :  { %10251 = vmatpush3.msra.mxu0 %v5968_v18 }
0x106c   :  { %10252 = vmatprep.subr.mxu0 %v10820_v5 }
0x106d   :  { %10253 = vmatpush3.msra.mxu0 %v5967_v19 }
0x106e   :  { %v5818_v44 = vpop.f32.mrf.mxu1  ;;  %10254 = vmatprep.subr.mxu0 %v10820_v5 }
0x106f   :  { %v5822_v6 = vadd.f32 %v5818_v44, %v5748_v43  ;;  %10255 = vmatpush3.msra.mxu0 %v5966_v47 }
0x1070   :  { %v10225_v45 = vpop.f32.mrf.mxu1  ;;  %10270 = vmatprep.subr.mxu0 %v10820_v5 }
0x1071   :  { %10721 = vtanh.f32 %v5822_v6 }
0x1076   :  { %v5960_v7 = vpop.f32.mrf.mxu1 }
0x1078   :  { %v10247_v8 = vpop.f32.mrf.mxu1 }
0x107e   :  { %v10722_v15 = vpop.eup %10721 }
0x107f   :  { %10268 = vmatmul.mubr.msk.f32.vlgmr.msra.gmra.mxu1 %vm360_vm2, %v10722_v15 }
0x1080   :  { %10282 = vmatpush3.msra.mxu1 %v12091_v40  ;;  %10289 = vmatprep.mubr.msk.f32.mxu1 %vm10821_vm1, %v10820_v5 }
0x1081   :  { %10283 = vmatprep.subr.mxu1 %v10820_v5 }
0x1082   :  { %10284 = vmatpush3.msra.mxu1 %v12100_v4 }
0x1083   :  { %10285 = vmatprep.subr.mxu1 %v10820_v5 }
0x1084   :  { %10286 = vmatpush3.msra.mxu1 %v12107_v42 }
0x1085   :  { %10287 = vmatprep.subr.mxu1 %v10820_v5 }
0x1086   :  { %10288 = vmatpush3.msra.mxu1 %v12114_v9 }
0x1087   :  { %10290 = vmatmul.mubr.msk.f32.vlgmr.msra.gmra.mxu1 %vm360_vm2, %v10722_v15  ;;  %10303 = vmatprep.subr.mxu1 %v10820_v5  ;;  %v6636_v15 = vld [vmem:[#allocation2 + $0xb0] sm:$0xff] }
0x1088   :  { %10304 = vmatpush3.msra.mxu1 %v12020_v24  ;;  %10311 = vmatprep.mubr.msk.f32.mxu1 %vm10821_vm1, %v10820_v5 }
0x1089   :  { %10305 = vmatprep.subr.mxu1 %v10820_v5 }
0x108a   :  { %10306 = vmatpush3.msra.mxu1 %v12028_v25 }
0x108b   :  { %10307 = vmatprep.subr.mxu1 %v10820_v5 }
0x108c   :  { %10308 = vmatpush3.msra.mxu1 %v12036_v0 }
0x108d   :  { %10309 = vmatprep.subr.mxu1 %v10820_v5 }
0x108e   :  { %10310 = vmatpush3.msra.mxu1 %v12045_v1 }
0x108f   :  { %10325 = vmatprep.subr.mxu1 %v10820_v5 }
0x1120   :  { %v5743_v48 = vpop.f32.mrf.mxu0 }
0x1121   :  { %v5747_v49 = vadd.f32 %v5743_v48, %v5451_v31 }
0x1122   :  { %v10214_v50 = vpop.f32.mrf.mxu0 }
0x1128   :  { %v5890_v51 = vpop.f32.mrf.mxu0 }
0x1129   :  { %v5961_v52 = vadd.f32 %v5960_v7, %v5890_v51  ;;  %v6857_v51 = vld [vmem:[%s12837_s7 + $0x2b8] sm:$0xff] }
0x112a   :  { %v10236_v53 = vpop.f32.mrf.mxu0 }
0x112b   :  { %v5964_v54 = vadd.f32 %v12149_v46, %v5961_v52  ;;  %v6856_v52 = vld [vmem:[%s12837_s7 + $0x2b0] sm:$0xff]  ;;  %v6855_v53 = vld [vmem:[%s12837_s7 + $0x2a8] sm:$0xff] }
0x112d   :  { %10723 = vtanh.f32 %v5964_v54  ;;  %v6854_v54 = vld [vmem:[%s12837_s7 + $0x2a0] sm:$0xff] }
0x113a   :  { %v10724_v20 = vpop.eup %10723 }
0x113b   :  { %10257 = vmatmul.mubr.msk.f32.vlgmr.msra.gmra.mxu0 %vm360_vm2, %v10724_v20 }
0x113c   :  { %10271 = vmatpush3.msra.mxu0 %v12057_v28  ;;  %10278 = vmatprep.mubr.msk.f32.mxu0 %vm10821_vm1, %v10820_v5 }
0x113d   :  { %10272 = vmatprep.subr.mxu0 %v10820_v5 }
0x113e   :  { %10273 = vmatpush3.msra.mxu0 %v12066_v32 }
0x113f   :  { %10274 = vmatprep.subr.mxu0 %v10820_v5  ;;  %v6114_v55 = vpop.f32.mrf.mxu1 }
0x1140   :  { %10275 = vmatpush3.msra.mxu0 %v12073_v29  ;;  %v6118_v56 = vadd.f32 %v6114_v55, %v6044_v37 }
0x1141   :  { %10276 = vmatprep.subr.mxu0 %v10820_v5  ;;  %v10269_v57 = vpop.f32.mrf.mxu1 }
0x1142   :  { %10277 = vmatpush3.msra.mxu0 %v12080_v30  ;;  %10725 = vtanh.f32 %v6118_v56  ;;  %v6932_v56 = vld [vmem:[#allocation2 + $0xb8] sm:$0xff] }
0x1143   :  { %10279 = vmatmul.mubr.msk.f32.vlgmr.msra.gmra.mxu0 %vm360_vm2, %v10724_v20  ;;  %10292 = vmatprep.subr.mxu0 %v10820_v5 }
0x1144   :  { %10300 = vmatprep.mubr.msk.f32.mxu0 %vm10821_vm1, %v10820_v5  ;;  %10293 = vmatpush3.msra.mxu0 %v6265_v58 }
0x1145   :  { %10294 = vmatprep.subr.mxu0 %v10820_v5 }
0x1146   :  { %10295 = vmatpush3.msra.mxu0 %v6264_v61 }
0x1147   :  { %v6256_v21 = vpop.f32.mrf.mxu1  ;;  %10296 = vmatprep.subr.mxu0 %v10820_v5 }
0x1148   :  { %10297 = vmatpush3.msra.mxu0 %v6263_v41 }
0x1149   :  { %v10291_v22 = vpop.f32.mrf.mxu1  ;;  %10298 = vmatprep.subr.mxu0 %v10820_v5 }
0x114a   :  { %10299 = vmatpush3.msra.mxu0 %v6262_v62 }
0x114b   :  { %10314 = vmatprep.subr.mxu0 %v10820_v5 }
0x114f   :  { %v10726_v23 = vpop.eup %10725 }
0x1150   :  { %10312 = vmatmul.mubr.msk.f32.vlgmr.msra.gmra.mxu1 %vm360_vm2, %v10726_v23 }
0x1151   :  { %10326 = vmatpush3.msra.mxu1 %v12091_v40  ;;  %10333 = vmatprep.mubr.msk.f32.mxu1 %vm10821_vm1, %v10820_v5 }
0x1152   :  { %10327 = vmatprep.subr.mxu1 %v10820_v5 }
0x1153   :  { %10328 = vmatpush3.msra.mxu1 %v12100_v4 }
0x1154   :  { %10329 = vmatprep.subr.mxu1 %v10820_v5 }
0x1155   :  { %10330 = vmatpush3.msra.mxu1 %v12107_v42 }
0x1156   :  { %10331 = vmatprep.subr.mxu1 %v10820_v5 }
0x1157   :  { %10332 = vmatpush3.msra.mxu1 %v12114_v9 }
0x1158   :  { %10334 = vmatmul.mubr.msk.f32.vlgmr.msra.gmra.mxu1 %vm360_vm2, %v10726_v23  ;;  %10347 = vmatprep.subr.mxu1 %v10820_v5 }
0x1159   :  { %10348 = vmatpush3.msra.mxu1 %v12020_v24  ;;  %10355 = vmatprep.mubr.msk.f32.mxu1 %vm10821_vm1, %v10820_v5 }
0x115a   :  { %10349 = vmatprep.subr.mxu1 %v10820_v5 }
0x115b   :  { %10350 = vmatpush3.msra.mxu1 %v12028_v25 }
0x115c   :  { %10351 = vmatprep.subr.mxu1 %v10820_v5 }
0x115d   :  { %10352 = vmatpush3.msra.mxu1 %v12036_v0 }
0x115e   :  { %10353 = vmatprep.subr.mxu1 %v10820_v5 }
0x115f   :  { %10354 = vmatpush3.msra.mxu1 %v12045_v1 }
0x1160   :  { %10369 = vmatprep.subr.mxu1 %v10820_v5 }
0x11fb   :  { %v6039_v63 = vpop.f32.mrf.mxu0 }
0x11fc   :  { %v6043_v59 = vadd.f32 %v6039_v63, %v5747_v49 }
0x11fd   :  { %v10258_v60 = vpop.f32.mrf.mxu0 }
0x1203   :  { %v6186_v14 = vpop.f32.mrf.mxu0 }
0x1204   :  { %v6257_v16 = vadd.f32 %v6256_v21, %v6186_v14 }
0x1205   :  { %v10280_v2 = vpop.f32.mrf.mxu0 }
0x1206   :  { %v6260_v3 = vadd.f32 %v12149_v46, %v6257_v16 }
0x1208   :  { %10727 = vtanh.f32 %v6260_v3 }
0x1210   :  { %v6410_v11 = vpop.f32.mrf.mxu1 }
0x1211   :  { %v6414_v12 = vadd.f32 %v6410_v11, %v6340_v10 }
0x1212   :  { %v10313_v13 = vpop.f32.mrf.mxu1 }
0x1213   :  { %10729 = vtanh.f32 %v6414_v12 }
0x1215   :  { %v10728_v26 = vpop.eup %10727 }
0x1216   :  { %10301 = vmatmul.mubr.msk.f32.vlgmr.msra.gmra.mxu0 %vm360_vm2, %v10728_v26 }
0x1217   :  { %10315 = vmatpush3.msra.mxu0 %v12057_v28  ;;  %10322 = vmatprep.mubr.msk.f32.mxu0 %vm10821_vm1, %v10820_v5 }
0x1218   :  { %10316 = vmatprep.subr.mxu0 %v10820_v5  ;;  %v6552_v27 = vpop.f32.mrf.mxu1 }
0x1219   :  { %10317 = vmatpush3.msra.mxu0 %v12066_v32 }
0x121a   :  { %10318 = vmatprep.subr.mxu0 %v10820_v5  ;;  %v10335_v31 = vpop.f32.mrf.mxu1 }
0x121b   :  { %10319 = vmatpush3.msra.mxu0 %v12073_v29 }
0x121c   :  { %10320 = vmatprep.subr.mxu0 %v10820_v5 }
0x121d   :  { %10321 = vmatpush3.msra.mxu0 %v12080_v30 }
0x121e   :  { %10323 = vmatmul.mubr.msk.f32.vlgmr.msra.gmra.mxu0 %vm360_vm2, %v10728_v26  ;;  %10336 = vmatprep.subr.mxu0 %v10820_v5 }
0x121f   :  { %10344 = vmatprep.mubr.msk.f32.mxu0 %vm10821_vm1, %v10820_v5  ;;  %10337 = vmatpush3.msra.mxu0 %v6561_v34  ;;  %v12585_v34 = vld [vmem:[%s12835_s5 + $0x10] sm:$0xff] }
0x1220   :  { %v10730_v33 = vpop.eup %10729  ;;  %10338 = vmatprep.subr.mxu0 %v10820_v5 }
0x1221   :  { %10356 = vmatmul.mubr.msk.f32.vlgmr.msra.gmra.mxu1 %vm360_vm2, %v10730_v33  ;;  %10339 = vmatpush3.msra.mxu0 %v6560_v35  ;;  %v12592_v35 = vld [vmem:[%s12835_s5 + $0x8] sm:$0xff] }
0x1222   :  { %10370 = vmatpush3.msra.mxu1 %v12091_v40  ;;  %10377 = vmatprep.mubr.msk.f32.mxu1 %vm10821_vm1, %v10820_v5 }
0x1223   :  { %10371 = vmatprep.subr.mxu1 %v10820_v5  ;;  %10340 = vmatprep.subr.mxu0 %v10820_v5 }
0x1224   :  { %10372 = vmatpush3.msra.mxu1 %v12100_v4  ;;  %10341 = vmatpush3.msra.mxu0 %v6559_v36  ;;  %v12599_v36 = vld [vmem:[%s12835_s5] sm:$0xff] }
0x1225   :  { %10373 = vmatprep.subr.mxu1 %v10820_v5  ;;  %10342 = vmatprep.subr.mxu0 %v10820_v5 }
0x1226   :  { %10374 = vmatpush3.msra.mxu1 %v12107_v42  ;;  %10343 = vmatpush3.msra.mxu0 %v6558_v38  ;;  %v7449_v38 = vld [vmem:[%s12837_s7 + $0x2f8] sm:$0xff] }
0x1227   :  { %10375 = vmatprep.subr.mxu1 %v10820_v5  ;;  %10358 = vmatprep.subr.mxu0 %v10820_v5 }
0x1228   :  { %10376 = vmatpush3.msra.mxu1 %v12114_v9 }
0x1229   :  { %10378 = vmatmul.mubr.msk.f32.vlgmr.msra.gmra.mxu1 %vm360_vm2, %v10730_v33  ;;  %10391 = vmatprep.subr.mxu1 %v10820_v5  ;;  %v12576_v33 = vld [vmem:[%s12835_s5 + $0x18] sm:$0xff] }
0x122a   :  { %10392 = vmatpush3.msra.mxu1 %v12020_v24  ;;  %10399 = vmatprep.mubr.msk.f32.mxu1 %vm10821_vm1, %v10820_v5 }
0x122b   :  { %10393 = vmatprep.subr.mxu1 %v10820_v5 }
0x122c   :  { %10394 = vmatpush3.msra.mxu1 %v12028_v25 }
0x122d   :  { %10395 = vmatprep.subr.mxu1 %v10820_v5 }
0x122e   :  { %10396 = vmatpush3.msra.mxu1 %v12036_v0 }
0x122f   :  { %10397 = vmatprep.subr.mxu1 %v10820_v5 }
0x1230   :  { %10398 = vmatpush3.msra.mxu1 %v12045_v1 }
0x1231   :  { %10413 = vmatprep.subr.mxu1 %v10820_v5 }
0x12d6   :  { %v6335_v39 = vpop.f32.mrf.mxu0 }
0x12d7   :  { %v6339_v43 = vadd.f32 %v6335_v39, %v6043_v59  ;;  %v7448_v39 = vld [vmem:[%s12837_s7 + $0x2f0] sm:$0xff] }
0x12d8   :  { %v10302_v44 = vpop.f32.mrf.mxu0 }
0x12d9   :  { %v7446_v44 = vld [vmem:[%s12837_s7 + $0x2e0] sm:$0xff] }
0x12de   :  { %v6482_v6 = vpop.f32.mrf.mxu0 }
0x12df   :  { %v6553_v45 = vadd.f32 %v6552_v27, %v6482_v6  ;;  %v7524_v6 = vld [vmem:[#allocation2 + $0xc8] sm:$0xff] }
0x12e0   :  { %v10324_v7 = vpop.f32.mrf.mxu0 }
0x12e1   :  { %v6556_v8 = vadd.f32 %v12149_v46, %v6553_v45  ;;  %v6706_v17 = vpop.f32.mrf.mxu1 }
0x12e2   :  { %v6710_v18 = vadd.f32 %v6706_v17, %v6636_v15 }
0x12e3   :  { %10731 = vtanh.f32 %v6556_v8  ;;  %v10357_v19 = vpop.f32.mrf.mxu1 }
0x12e4   :  { %10733 = vtanh.f32 %v6710_v18 }
0x12e9   :  { %v6848_v47 = vpop.f32.mrf.mxu1 }
0x12eb   :  { %v10379_v48 = vpop.f32.mrf.mxu1 }
0x12f0   :  { %v10732_v49 = vpop.eup %10731 }
0x12f1   :  { %v10734_v50 = vpop.eup %10733  ;;  %10345 = vmatmul.mubr.msk.f32.vlgmr.msra.gmra.mxu0 %vm360_vm2, %v10732_v49 }
0x12f2   :  { %10359 = vmatpush3.msra.mxu0 %v12057_v28  ;;  %10366 = vmatprep.mubr.msk.f32.mxu0 %vm10821_vm1, %v10820_v5 }
0x12f3   :  { %10360 = vmatprep.subr.mxu0 %v10820_v5  ;;  %10400 = vmatmul.mubr.msk.f32.vlgmr.msra.gmra.mxu1 %vm360_vm2, %v10734_v50 }
0x12f4   :  { %10361 = vmatpush3.msra.mxu0 %v12066_v32  ;;  %10414 = vmatpush3.msra.mxu1 %v12091_v40 }
0x12f5   :  { %10362 = vmatprep.subr.mxu0 %v10820_v5  ;;  %10415 = vmatprep.subr.mxu1 %v10820_v5 }
0x12f6   :  { %10363 = vmatpush3.msra.mxu0 %v12073_v29  ;;  %10416 = vmatpush3.msra.mxu1 %v12100_v4 }
0x12f7   :  { %10364 = vmatprep.subr.mxu0 %v10820_v5  ;;  %10417 = vmatprep.subr.mxu1 %v10820_v5 }
0x12f8   :  { %10365 = vmatpush3.msra.mxu0 %v12080_v30  ;;  %10418 = vmatpush3.msra.mxu1 %v12107_v42 }
0x12f9   :  { %10367 = vmatmul.mubr.msk.f32.vlgmr.msra.gmra.mxu0 %vm360_vm2, %v10732_v49  ;;  %10419 = vmatprep.subr.mxu1 %v10820_v5 }
0x12fa   :  { %10420 = vmatpush3.msra.mxu1 %v12114_v9  ;;  %10421 = vmatprep.mubr.msk.f32.mxu1 %vm10821_vm1, %v10820_v5 }
0x12fb   :  { %10422 = vmatmul.mubr.msk.f32.vlgmr.msra.gmra.mxu1 %vm360_vm2, %v10734_v50  ;;  %10380 = vmatprep.subr.mxu0 %v10820_v5  ;;  %v12640_v50 = vld [vmem:[%s12834_s4 + $0x10] sm:$0xff] }
0x12fc   :  { %10388 = vmatprep.mubr.msk.f32.mxu0 %vm10821_vm1, %v10820_v5  ;;  %10435 = vmatprep.subr.mxu1 %v10820_v5 }
0x12fd   :  { %10436 = vmatpush3.msra.mxu1 %v12020_v24  ;;  %10443 = vmatprep.mubr.msk.f32.mxu1 %vm10821_vm1, %v10820_v5 }
0x12fe   :  { %10437 = vmatprep.subr.mxu1 %v10820_v5  ;;  %10381 = vmatpush3.msra.mxu0 %v6857_v51  ;;  %v12647_v51 = vld [vmem:[%s12834_s4 + $0x8] sm:$0xff] }
0x12ff   :  { %10438 = vmatpush3.msra.mxu1 %v12028_v25  ;;  %10382 = vmatprep.subr.mxu0 %v10820_v5 }
0x1300   :  { %10439 = vmatprep.subr.mxu1 %v10820_v5  ;;  %10383 = vmatpush3.msra.mxu0 %v6856_v52  ;;  %v12654_v52 = vld [vmem:[%s12834_s4] sm:$0xff] }
0x1301   :  { %10440 = vmatpush3.msra.mxu1 %v12036_v0  ;;  %10384 = vmatprep.subr.mxu0 %v10820_v5 }
0x1302   :  { %10441 = vmatprep.subr.mxu1 %v10820_v5  ;;  %10385 = vmatpush3.msra.mxu0 %v6855_v53 }
0x1303   :  { %10442 = vmatpush3.msra.mxu1 %v12045_v1  ;;  %10386 = vmatprep.subr.mxu0 %v10820_v5 }
0x1304   :  { %10457 = vmatprep.subr.mxu1 %v10820_v5  ;;  %10387 = vmatpush3.msra.mxu0 %v6854_v54 }
0x1305   :  { %10402 = vmatprep.subr.mxu0 %v10820_v5 }
0x13b1   :  { %v6631_v20 = vpop.f32.mrf.mxu0 }
0x13b2   :  { %v12469_v37 = vadd.f32 %v6631_v20, %v6339_v43  ;;  %v7447_v43 = vld [vmem:[%s12837_s7 + $0x2e8] sm:$0xff] }
0x13b3   :  { %v10346_v55 = vpop.f32.mrf.mxu0  ;;  %v7002_v57 = vpop.f32.mrf.mxu1 }
0x13b4   :  { %v7006_v21 = vadd.f32 %v7002_v57, %v6932_v56  ;;  %v7744_v56 = vld [vmem:[%s12837_s7 + $0x310] sm:$0xff]  ;;  %v7743_v57 = vld [vmem:[%s12837_s7 + $0x308] sm:$0xff] }
0x13b5   :  { %v10401_v22 = vpop.f32.mrf.mxu1 }
0x13b6   :  { %10735 = vtanh.f32 %v7006_v21  ;;  %v7742_v21 = vld [vmem:[%s12837_s7 + $0x300] sm:$0xff]  ;;  %v7820_v22 = vld [vmem:[#allocation2 + $0xd0] sm:$0xff] }
0x13b9   :  { %v6778_v23 = vpop.f32.mrf.mxu0 }
0x13ba   :  { %v6849_v58 = vadd.f32 %v6848_v47, %v6778_v23  ;;  %v12628_v47 = vld [vmem:[%s12834_s4 + $0x18] sm:$0xff] }
0x13bb   :  { %v10368_v61 = vpop.f32.mrf.mxu0  ;;  %v7144_v41 = vpop.f32.mrf.mxu1 }
0x13bc   :  { %v6852_v62 = vadd.f32 %v12149_v46, %v6849_v58 }
0x13bd   :  { %v10423_v63 = vpop.f32.mrf.mxu1 }
0x13be   :  { %10737 = vtanh.f32 %v6852_v62 }
0x13c3   :  { %v10736_v59 = vpop.eup %10735 }
0x13c4   :  { %10444 = vmatmul.mubr.msk.f32.vlgmr.msra.gmra.mxu1 %vm360_vm2, %v10736_v59 }
0x13c5   :  { %10458 = vmatpush3.msra.mxu1 %v12091_v40  ;;  %10465 = vmatprep.mubr.msk.f32.mxu1 %vm10821_vm1, %v10820_v5 }
0x13c6   :  { %10459 = vmatprep.subr.mxu1 %v10820_v5 }
0x13c7   :  { %10460 = vmatpush3.msra.mxu1 %v12100_v4 }
0x13c8   :  { %10461 = vmatprep.subr.mxu1 %v10820_v5 }
0x13c9   :  { %10462 = vmatpush3.msra.mxu1 %v12107_v42 }
0x13ca   :  { %10463 = vmatprep.subr.mxu1 %v10820_v5 }
0x13cb   :  { %v10738_v60 = vpop.eup %10737  ;;  %10464 = vmatpush3.msra.mxu1 %v12114_v9 }
0x13cc   :  { %10389 = vmatmul.mubr.msk.f32.vlgmr.msra.gmra.mxu0 %vm360_vm2, %v10738_v60  ;;  %10466 = vmatmul.mubr.msk.f32.vlgmr.msra.gmra.mxu1 %vm360_vm2, %v10736_v59 }
0x13cd   :  { %10403 = vmatpush3.msra.mxu0 %v12057_v28  ;;  %10410 = vmatprep.mubr.msk.f32.mxu0 %vm10821_vm1, %v10820_v5  ;;  %v7228_v28 = vld [vmem:[#allocation2 + $0xc0] sm:$0xff] }
0x13ce   :  { %10404 = vmatprep.subr.mxu0 %v10820_v5  ;;  %10479 = vmatprep.subr.mxu1 %v10820_v5 }
0x13cf   :  { %10405 = vmatpush3.msra.mxu0 %v12066_v32  ;;  %10480 = vmatpush3.msra.mxu1 %v12020_v24  ;;  %v7153_v24 = vld [vmem:[%s12837_s7 + $0x2d8] sm:$0xff] }
0x13d0   :  { %10406 = vmatprep.subr.mxu0 %v10820_v5  ;;  %10481 = vmatprep.subr.mxu1 %v10820_v5 }
0x13d1   :  { %10407 = vmatpush3.msra.mxu0 %v12073_v29  ;;  %10482 = vmatpush3.msra.mxu1 %v12028_v25  ;;  %v7152_v25 = vld [vmem:[%s12837_s7 + $0x2d0] sm:$0xff] }
0x13d2   :  { %10408 = vmatprep.subr.mxu0 %v10820_v5  ;;  %10483 = vmatprep.subr.mxu1 %v10820_v5 }
0x13d3   :  { %10409 = vmatpush3.msra.mxu0 %v12080_v30  ;;  %10484 = vmatpush3.msra.mxu1 %v12036_v0  ;;  %v7151_v0 = vld [vmem:[%s12837_s7 + $0x2c8] sm:$0xff] }
0x13d4   :  { %10411 = vmatmul.mubr.msk.f32.vlgmr.msra.gmra.mxu0 %vm360_vm2, %v10738_v60  ;;  %10424 = vmatprep.subr.mxu0 %v10820_v5 }
0x13d5   :  { %10432 = vmatprep.mubr.msk.f32.mxu0 %vm10821_vm1, %v10820_v5  ;;  %10485 = vmatprep.subr.mxu1 %v10820_v5 }
0x13d6   :  { %10486 = vmatpush3.msra.mxu1 %v12045_v1  ;;  %10487 = vmatprep.mubr.msk.f32.mxu1 %vm10821_vm1, %v10820_v5  ;;  %v7150_v1 = vld [vmem:[%s12837_s7 + $0x2c0] sm:$0xff] }
0x13d7   :  { %10501 = vmatprep.subr.mxu1 %v10820_v5  ;;  %10425 = vmatpush3.msra.mxu0 %v7153_v24 }
0x13d8   :  { %10426 = vmatprep.subr.mxu0 %v10820_v5 }
0x13d9   :  { %10427 = vmatpush3.msra.mxu0 %v7152_v25 }
0x13da   :  { %10428 = vmatprep.subr.mxu0 %v10820_v5 }
0x13db   :  { %10429 = vmatpush3.msra.mxu0 %v7151_v0 }
0x13dc   :  { %10430 = vmatprep.subr.mxu0 %v10820_v5 }
0x13dd   :  { %10431 = vmatpush3.msra.mxu0 %v7150_v1 }
0x13de   :  { %10446 = vmatprep.subr.mxu0 %v10820_v5 }
0x1484   :  { %v7298_v32 = vpop.f32.mrf.mxu1 }
0x1485   :  { %v7302_v29 = vadd.f32 %v7298_v32, %v7228_v28  ;;  %v12730_v28 = vld [vmem:[%s12836_s6] ss:$0 sm:$0xff] }
0x1486   :  { %v10445_v30 = vpop.f32.mrf.mxu1 }
0x1487   :  { %10739 = vtanh.f32 %v7302_v29  ;;  %v8041_v30 = vld [vmem:[%s12837_s7 + $0x338] sm:$0xff] }
0x148c   :  { %v6927_v14 = vpop.f32.mrf.mxu0  ;;  %v12524_v16 = vpop.f32.mrf.mxu1 }
0x148d   :  { %v12527_v2 = vadd.f32 %v6927_v14, %v12469_v37  ;;  %v8040_v14 = vld [vmem:[%s12837_s7 + $0x330] sm:$0xff] }
0x148e   :  { %v10390_v3 = vpop.f32.mrf.mxu0  ;;  %v10467_v10 = vpop.f32.mrf.mxu1 }
0x1494   :  { %v10740_v11 = vpop.eup %10739  ;;  %v7074_v12 = vpop.f32.mrf.mxu0 }
0x1495   :  { %v7145_v13 = vadd.f32 %v7144_v41, %v7074_v12  ;;  %10488 = vmatmul.mubr.msk.f32.vlgmr.msra.gmra.mxu1 %vm360_vm2, %v10740_v11 }
0x1496   :  { %v10412_v26 = vpop.f32.mrf.mxu0  ;;  %10502 = vmatpush3.msra.mxu1 %v12091_v40  ;;  %10509 = vmatprep.mubr.msk.f32.mxu1 %vm10821_vm1, %v10820_v5  ;;  %v12545_v40 = vld [vmem:[%s12832_s2 + $0x18] sm:$0xff] }
0x1497   :  { %v7148_v27 = vadd.f32 %v12149_v46, %v7145_v13  ;;  %10503 = vmatprep.subr.mxu1 %v10820_v5 }
0x1498   :  { %10504 = vmatpush3.msra.mxu1 %v12100_v4  ;;  %v12554_v4 = vld [vmem:[%s12832_s2 + $0x10] sm:$0xff] }
0x1499   :  { %10741 = vtanh.f32 %v7148_v27  ;;  %10505 = vmatprep.subr.mxu1 %v10820_v5 }
0x149a   :  { %10506 = vmatpush3.msra.mxu1 %v12107_v42  ;;  %v12561_v42 = vld [vmem:[%s12832_s2 + $0x8] sm:$0xff] }
0x149b   :  { %10507 = vmatprep.subr.mxu1 %v10820_v5 }
0x149c   :  { %10508 = vmatpush3.msra.mxu1 %v12114_v9  ;;  %v12568_v9 = vld [vmem:[%s12832_s2] sm:$0xff] }
0x149d   :  { %10510 = vmatmul.mubr.msk.f32.vlgmr.msra.gmra.mxu1 %vm360_vm2, %v10740_v11  ;;  %10523 = vmatprep.subr.mxu1 %v10820_v5 }
0x149e   :  { %10524 = vmatpush3.msra.mxu1 %v12545_v40  ;;  %10531 = vmatprep.mubr.msk.f32.mxu1 %vm10821_vm1, %v10820_v5 }
0x149f   :  { %10525 = vmatprep.subr.mxu1 %v10820_v5 }
0x14a0   :  { %10526 = vmatpush3.msra.mxu1 %v12554_v4 }
0x14a1   :  { %10527 = vmatprep.subr.mxu1 %v10820_v5 }
0x14a2   :  { %10528 = vmatpush3.msra.mxu1 %v12561_v42 }
0x14a3   :  { %10529 = vmatprep.subr.mxu1 %v10820_v5 }
0x14a4   :  { %10530 = vmatpush3.msra.mxu1 %v12568_v9 }
0x14a5   :  { %10545 = vmatprep.subr.mxu1 %v10820_v5 }
0x14a6   :  { %v10742_v31 = vpop.eup %10741 }
0x14a7   :  { %10433 = vmatmul.mubr.msk.f32.vlgmr.msra.gmra.mxu0 %vm360_vm2, %v10742_v31 }
0x14a8   :  { %10447 = vmatpush3.msra.mxu0 %v12576_v33  ;;  %10454 = vmatprep.mubr.msk.f32.mxu0 %vm10821_vm1, %v10820_v5 }
0x14a9   :  { %10448 = vmatprep.subr.mxu0 %v10820_v5 }
0x14aa   :  { %10449 = vmatpush3.msra.mxu0 %v12585_v34 }
0x14ab   :  { %10450 = vmatprep.subr.mxu0 %v10820_v5 }
0x14ac   :  { %10451 = vmatpush3.msra.mxu0 %v12592_v35 }
0x14ad   :  { %10452 = vmatprep.subr.mxu0 %v10820_v5 }
0x14ae   :  { %10453 = vmatpush3.msra.mxu0 %v12599_v36 }
0x14af   :  { %10455 = vmatmul.mubr.msk.f32.vlgmr.msra.gmra.mxu0 %vm360_vm2, %v10742_v31  ;;  %10468 = vmatprep.subr.mxu0 %v10820_v5 }
0x14b0   :  { %10476 = vmatprep.mubr.msk.f32.mxu0 %vm10821_vm1, %v10820_v5  ;;  %10469 = vmatpush3.msra.mxu0 %v7449_v38 }
0x14b1   :  { %10470 = vmatprep.subr.mxu0 %v10820_v5 }
0x14b2   :  { %10471 = vmatpush3.msra.mxu0 %v7448_v39 }
0x14b3   :  { %10472 = vmatprep.subr.mxu0 %v10820_v5 }
0x14b4   :  { %10473 = vmatpush3.msra.mxu0 %v7447_v43 }
0x14b5   :  { %10474 = vmatprep.subr.mxu0 %v10820_v5 }
0x14b6   :  { %10475 = vmatpush3.msra.mxu0 %v7446_v44 }
0x14b7   :  { %10490 = vmatprep.subr.mxu0 %v10820_v5 }
0x1555   :  { %v7594_v45 = vpop.f32.mrf.mxu1 }
0x1556   :  { %v7598_v7 = vadd.f32 %v7594_v45, %v7524_v6 }
0x1557   :  { %v10489_v8 = vpop.f32.mrf.mxu1 }
0x1558   :  { %10743 = vtanh.f32 %v7598_v7  ;;  %v8116_v8 = vld [vmem:[#allocation2 + $0xd8] sm:$0xff] }
0x155d   :  { %v12622_v15 = vpop.f32.mrf.mxu1 }
0x155f   :  { %v10511_v17 = vpop.f32.mrf.mxu1 }
0x1565   :  { %v10744_v18 = vpop.eup %10743 }
0x1566   :  { %10532 = vmatmul.mubr.msk.f32.vlgmr.msra.gmra.mxu1 %vm360_vm2, %v10744_v18 }
0x1567   :  { %v7223_v19 = vpop.f32.mrf.mxu0  ;;  %10546 = vmatpush3.msra.mxu1 %v12628_v47  ;;  %10553 = vmatprep.mubr.msk.f32.mxu1 %vm10821_vm1, %v10820_v5 }
0x1568   :  { %v12634_v48 = vadd.f32 %v7223_v19, %v12527_v2  ;;  %10547 = vmatprep.subr.mxu1 %v10820_v5  ;;  %v8038_v2 = vld [vmem:[%s12837_s7 + $0x320] sm:$0xff]  ;;  %v8560_v19 = vld [vmem:[%s12837_s7 + $0x378] sm:$0xff] }
0x1569   :  { %v10434_v49 = vpop.f32.mrf.mxu0  ;;  %10548 = vmatpush3.msra.mxu1 %v12640_v50 }
0x156a   :  { %10549 = vmatprep.subr.mxu1 %v10820_v5  ;;  %v8557_v49 = vld [vmem:[%s12837_s7 + $0x360] sm:$0xff] }
0x156b   :  { %10550 = vmatpush3.msra.mxu1 %v12647_v51 }
0x156c   :  { %10551 = vmatprep.subr.mxu1 %v10820_v5 }
0x156d   :  { %10552 = vmatpush3.msra.mxu1 %v12654_v52 }
0x156e   :  { %10554 = vmatmul.mubr.msk.f32.vlgmr.msra.gmra.mxu1 %vm360_vm2, %v10744_v18  ;;  %10567 = vmatprep.subr.mxu1 %v10820_v5 }
0x156f   :  { %v7370_v53 = vpop.f32.mrf.mxu0  ;;  %10568 = vmatpush3.msra.mxu1 %v12545_v40  ;;  %10575 = vmatprep.mubr.msk.f32.mxu1 %vm10821_vm1, %v10820_v5 }
0x1570   :  { %v7441_v54 = vadd.f32 %v12524_v16, %v7370_v53  ;;  %10569 = vmatprep.subr.mxu1 %v10820_v5  ;;  %v8039_v16 = vld [vmem:[%s12837_s7 + $0x328] sm:$0xff] }
0x1571   :  { %v10456_v20 = vpop.f32.mrf.mxu0  ;;  %10570 = vmatpush3.msra.mxu1 %v12554_v4 }
0x1572   :  { %v7444_v37 = vadd.f32 %v12149_v46, %v7441_v54  ;;  %10571 = vmatprep.subr.mxu1 %v10820_v5  ;;  %v7745_v46 = vld [vmem:[%s12837_s7 + $0x318] sm:$0xff] }
0x1573   :  { %10572 = vmatpush3.msra.mxu1 %v12561_v42 }
0x1574   :  { %10745 = vtanh.f32 %v7444_v37  ;;  %10573 = vmatprep.subr.mxu1 %v10820_v5 }
0x1575   :  { %10574 = vmatpush3.msra.mxu1 %v12568_v9 }
0x1576   :  { %10589 = vmatprep.subr.mxu1 %v10820_v5 }
0x1581   :  { %v10746_v55 = vpop.eup %10745 }
0x1582   :  { %10477 = vmatmul.mubr.msk.f32.vlgmr.msra.gmra.mxu0 %vm360_vm2, %v10746_v55 }
0x1583   :  { %10491 = vmatpush3.msra.mxu0 %v12576_v33  ;;  %10498 = vmatprep.mubr.msk.f32.mxu0 %vm10821_vm1, %v10820_v5 }
0x1584   :  { %10492 = vmatprep.subr.mxu0 %v10820_v5 }
0x1585   :  { %10493 = vmatpush3.msra.mxu0 %v12585_v34 }
0x1586   :  { %10494 = vmatprep.subr.mxu0 %v10820_v5 }
0x1587   :  { %10495 = vmatpush3.msra.mxu0 %v12592_v35 }
0x1588   :  { %10496 = vmatprep.subr.mxu0 %v10820_v5 }
0x1589   :  { %10497 = vmatpush3.msra.mxu0 %v12599_v36 }
0x158a   :  { %10499 = vmatmul.mubr.msk.f32.vlgmr.msra.gmra.mxu0 %vm360_vm2, %v10746_v55  ;;  %10512 = vmatprep.subr.mxu0 %v10820_v5 }
0x158b   :  { %10520 = vmatprep.mubr.msk.f32.mxu0 %vm10821_vm1, %v10820_v5  ;;  %10513 = vmatpush3.msra.mxu0 %v7745_v46 }
0x158c   :  { %10514 = vmatprep.subr.mxu0 %v10820_v5 }
0x158d   :  { %10515 = vmatpush3.msra.mxu0 %v7744_v56 }
0x158e   :  { %10516 = vmatprep.subr.mxu0 %v10820_v5 }
0x158f   :  { %10517 = vmatpush3.msra.mxu0 %v7743_v57 }
0x1590   :  { %10518 = vmatprep.subr.mxu0 %v10820_v5 }
0x1591   :  { %10519 = vmatpush3.msra.mxu0 %v7742_v21 }
0x1592   :  { %10534 = vmatprep.subr.mxu0 %v10820_v5 }
0x1626   :  { %v7890_v23 = vpop.f32.mrf.mxu1 }
0x1627   :  { %v7894_v58 = vadd.f32 %v7890_v23, %v7820_v22 }
0x1628   :  { %v10533_v61 = vpop.f32.mrf.mxu1 }
0x1629   :  { %10747 = vtanh.f32 %v7894_v58 }
0x162e   :  { %v12701_v41 = vpop.f32.mrf.mxu1 }
0x1630   :  { %v10555_v62 = vpop.f32.mrf.mxu1 }
0x1636   :  { %v10748_v63 = vpop.eup %10747 }
0x1637   :  { %10576 = vmatmul.mubr.msk.f32.vlgmr.msra.gmra.mxu1 %vm360_vm2, %v10748_v63 }
0x1638   :  { %10590 = vmatpush3.msra.mxu1 %v12628_v47  ;;  %10597 = vmatprep.mubr.msk.f32.mxu1 %vm10821_vm1, %v10820_v5 }
0x1639   :  { %10591 = vmatprep.subr.mxu1 %v10820_v5 }
0x163a   :  { %10592 = vmatpush3.msra.mxu1 %v12640_v50 }
0x163b   :  { %10593 = vmatprep.subr.mxu1 %v10820_v5 }
0x163c   :  { %10594 = vmatpush3.msra.mxu1 %v12647_v51 }
0x163d   :  { %10595 = vmatprep.subr.mxu1 %v10820_v5 }
0x163e   :  { %10596 = vmatpush3.msra.mxu1 %v12654_v52 }
0x163f   :  { %10598 = vmatmul.mubr.msk.f32.vlgmr.msra.gmra.mxu1 %vm360_vm2, %v10748_v63  ;;  %10611 = vmatprep.subr.mxu1 %v10820_v5 }
0x1640   :  { %10612 = vmatpush3.msra.mxu1 %v12576_v33  ;;  %10619 = vmatprep.mubr.msk.f32.mxu1 %vm10821_vm1, %v10820_v5 }
0x1641   :  { %10613 = vmatprep.subr.mxu1 %v10820_v5 }
0x1642   :  { %v7519_v59 = vpop.f32.mrf.mxu0  ;;  %10614 = vmatpush3.msra.mxu1 %v12585_v34 }
0x1643   :  { %v7523_v60 = vadd.f32 %v7519_v59, %v12634_v48  ;;  %10615 = vmatprep.subr.mxu1 %v10820_v5  ;;  %v8558_v48 = vld [vmem:[%s12837_s7 + $0x368] sm:$0xff] }
0x1644   :  { %v10478_v24 = vpop.f32.mrf.mxu0  ;;  %10616 = vmatpush3.msra.mxu1 %v12592_v35 }
0x1645   :  { %10617 = vmatprep.subr.mxu1 %v10820_v5 }
0x1646   :  { %10618 = vmatpush3.msra.mxu1 %v12599_v36 }
0x1647   :  { %10633 = vmatprep.subr.mxu1 %v10820_v5 }
0x164a   :  { %v7666_v25 = vpop.f32.mrf.mxu0 }
0x164b   :  { %v7737_v0 = vadd.f32 %v12622_v15, %v7666_v25 }
0x164c   :  { %v10500_v1 = vpop.f32.mrf.mxu0 }
0x164d   :  { %v7740_v32 = vadd.f32 %v12730_v28, %v7737_v0 }
0x164f   :  { %10749 = vtanh.f32 %v7740_v32 }
0x165c   :  { %v10750_v29 = vpop.eup %10749 }
0x165d   :  { %10521 = vmatmul.mubr.msk.f32.vlgmr.msra.gmra.mxu0 %vm360_vm2, %v10750_v29 }
0x165e   :  { %10535 = vmatpush3.msra.mxu0 %v12576_v33  ;;  %10542 = vmatprep.mubr.msk.f32.mxu0 %vm10821_vm1, %v10820_v5 }
0x165f   :  { %10536 = vmatprep.subr.mxu0 %v10820_v5 }
0x1660   :  { %10537 = vmatpush3.msra.mxu0 %v12585_v34 }
0x1661   :  { %10538 = vmatprep.subr.mxu0 %v10820_v5 }
0x1662   :  { %10539 = vmatpush3.msra.mxu0 %v12592_v35 }
0x1663   :  { %10540 = vmatprep.subr.mxu0 %v10820_v5 }
0x1664   :  { %10541 = vmatpush3.msra.mxu0 %v12599_v36 }
0x1665   :  { %10543 = vmatmul.mubr.msk.f32.vlgmr.msra.gmra.mxu0 %vm360_vm2, %v10750_v29  ;;  %10556 = vmatprep.subr.mxu0 %v10820_v5 }
0x1666   :  { %10564 = vmatprep.mubr.msk.f32.mxu0 %vm10821_vm1, %v10820_v5  ;;  %10557 = vmatpush3.msra.mxu0 %v8041_v30 }
0x1667   :  { %10558 = vmatprep.subr.mxu0 %v10820_v5 }
0x1668   :  { %10559 = vmatpush3.msra.mxu0 %v8040_v14 }
0x1669   :  { %10560 = vmatprep.subr.mxu0 %v10820_v5 }
0x166a   :  { %10561 = vmatpush3.msra.mxu0 %v8039_v16 }
0x166b   :  { %10562 = vmatprep.subr.mxu0 %v10820_v5 }
0x166c   :  { %10563 = vmatpush3.msra.mxu0 %v8038_v2 }
0x166d   :  { %10578 = vmatprep.subr.mxu0 %v10820_v5 }
0x16f7   :  { %v8186_v3 = vpop.f32.mrf.mxu1 }
0x16f8   :  { %v8190_v15 = vadd.f32 %v8186_v3, %v8116_v8 }
0x16f9   :  { %v10577_v10 = vpop.f32.mrf.mxu1 }
0x16ff   :  { %v8328_v11 = vpop.f32.mrf.mxu1 }
0x1701   :  { %v10599_v12 = vpop.f32.mrf.mxu1 }
0x171d   :  { %v7815_v13 = vpop.f32.mrf.mxu0 }
0x171e   :  { %v7819_v26 = vadd.f32 %v7815_v13, %v7523_v60 }
0x171f   :  { %v10522_v27 = vpop.f32.mrf.mxu0 }
0x1725   :  { %v7962_v40 = vpop.f32.mrf.mxu0 }
0x1726   :  { %v8033_v4 = vadd.f32 %v12701_v41, %v7962_v40 }
0x1727   :  { %v10544_v42 = vpop.f32.mrf.mxu0 }
0x1728   :  { %v8036_v9 = vadd.f32 %v12730_v28, %v8033_v4 }
0x172a   :  { %10751 = vtanh.f32 %v8036_v9 }
0x1737   :  { %v10752_v31 = vpop.eup %10751 }
0x1738   :  { %10565 = vmatmul.mubr.msk.f32.vlgmr.msra.gmra.mxu0 %vm360_vm2, %v10752_v31 }
0x1739   :  { %10579 = vmatpush3.msra.mxu0 %v12576_v33  ;;  %10586 = vmatprep.mubr.msk.f32.mxu0 %vm10821_vm1, %v10820_v5  ;;  %v8337_v33 = vld [vmem:[%s12837_s7 + $0x358] sm:$0xff] }
0x173a   :  { %10580 = vmatprep.subr.mxu0 %v10820_v5 }
0x173b   :  { %10581 = vmatpush3.msra.mxu0 %v12585_v34  ;;  %v8336_v34 = vld [vmem:[%s12837_s7 + $0x350] sm:$0xff] }
0x173c   :  { %10582 = vmatprep.subr.mxu0 %v10820_v5 }
0x173d   :  { %10583 = vmatpush3.msra.mxu0 %v12592_v35  ;;  %v8335_v35 = vld [vmem:[%s12837_s7 + $0x348] sm:$0xff] }
0x173e   :  { %10584 = vmatprep.subr.mxu0 %v10820_v5 }
0x173f   :  { %10585 = vmatpush3.msra.mxu0 %v12599_v36  ;;  %v8334_v36 = vld [vmem:[%s12837_s7 + $0x340] sm:$0xff] }
0x1740   :  { %10587 = vmatmul.mubr.msk.f32.vlgmr.msra.gmra.mxu0 %vm360_vm2, %v10752_v31  ;;  %10600 = vmatprep.subr.mxu0 %v10820_v5 }
0x1741   :  { %10608 = vmatprep.mubr.msk.f32.mxu0 %vm10821_vm1, %v10820_v5  ;;  %10601 = vmatpush3.msra.mxu0 %v8337_v33 }
0x1742   :  { %10602 = vmatprep.subr.mxu0 %v10820_v5 }
0x1743   :  { %10603 = vmatpush3.msra.mxu0 %v8336_v34 }
0x1744   :  { %10604 = vmatprep.subr.mxu0 %v10820_v5 }
0x1745   :  { %10605 = vmatpush3.msra.mxu0 %v8335_v35 }
0x1746   :  { %10606 = vmatprep.subr.mxu0 %v10820_v5 }
0x1747   :  { %10607 = vmatpush3.msra.mxu0 %v8334_v36 }
0x1748   :  { %10622 = vmatprep.subr.mxu0 %v10820_v5 }
0x17f8   :  { %v8111_v38 = vpop.f32.mrf.mxu0 }
0x17f9   :  { %v8115_v39 = vadd.f32 %v8111_v38, %v7819_v26 }
0x17fa   :  { %v10566_v43 = vpop.f32.mrf.mxu0 }
0x1800   :  { %v8258_v44 = vpop.f32.mrf.mxu0 }
0x1801   :  { %v8329_v6 = vadd.f32 %v8328_v11, %v8258_v44 }
0x1802   :  { %v10588_v45 = vpop.f32.mrf.mxu0 }
0x1803   :  { %v8332_v7 = vadd.f32 %v12730_v28, %v8329_v6 }
0x1805   :  { %10753 = vtanh.f32 %v8332_v7 }
0x1806   :  { %10755 = vtanh.f32 %v8190_v15 }
0x1812   :  { %v10754_v17 = vpop.eup %10753 }
0x1813   :  { %10609 = vmatmul.mubr.msk.f32.vlgmr.msra.gmra.mxu0 %vm360_vm2, %v10754_v17  ;;  %10620 = vmatmul.mubr.msk.f32.vlgmr.msra.gmra.mxu1 %vm360_vm2, %v10754_v17  ;;  %v10756_v18 = vpop.eup %10755 }
0x1814   :  { %10623 = vmatpush3.msra.mxu0 %v12628_v47  ;;  %10630 = vmatprep.mubr.msk.f32.mxu0 %vm10821_vm1, %v10820_v5  ;;  %v8559_v47 = vld [vmem:[%s12837_s7 + $0x370] sm:$0xff]  ;;  %s8643_s7 = sshll.u32 %s10822_s25, 4  ;;  %s8644_s7 = int_to_ptr.vmem [resolvable:$true] %s8643_s7 }
0x1815   :  { %10624 = vmatprep.subr.mxu0 %v10820_v5  ;;  %10641 = vmatprep.mubr.msk.f32.mxu1 %vm10821_vm1, %v10820_v5  ;;  %s10798_s2 = scalar_lea.vmem %s8644_s7, 128  ;;  %p10803_p1 = scmp.lt.s32.totalorder %s8644_s7, %s8644_s7 }
0x1816   :  { %10625 = vmatpush3.msra.mxu0 %v12640_v50  ;;  %10634 = vmatpush3.msra.mxu1 %v8560_v19  ;;  %p10799_p0 = scmp.ne.s32.totalorder %s8644_s7, %s10798_s2  ;;  %p10804_p2 = scmp.lt.s32.totalorder %s10798_s2, %s10798_s2 }
0x1817   :  { %10626 = vmatprep.subr.mxu0 %v10820_v5  ;;  %10635 = vmatprep.subr.mxu1 %v10820_v5 }
0x1818   :  { %10627 = vmatpush3.msra.mxu0 %v12647_v51  ;;  %10636 = vmatpush3.msra.mxu1 %v8559_v47  ;;  %p10805_p3 = por %p10804_p2, %p10803_p1 }
0x1819   :  { %10628 = vmatprep.subr.mxu0 %v10820_v5  ;;  %10637 = vmatprep.subr.mxu1 %v10820_v5 }
0x181a   :  { %10629 = vmatpush3.msra.mxu0 %v12654_v52  ;;  %10638 = vmatpush3.msra.mxu1 %v8558_v48  ;;  %p10806_p4 = pnand %p10805_p3, %p10799_p0 }
0x181b   :  { %10631 = vmatmul.mubr.msk.f32.vlgmr.msra.gmra.mxu0 %vm360_vm2, %v10756_v18  ;;  %10639 = vmatprep.subr.mxu1 %v10820_v5 }
0x181c   :  { %10640 = vmatpush3.msra.mxu1 %v8557_v49 }
0x18d3   :  { %v8407_v50 = vpop.f32.mrf.mxu0  ;;  %v8478_v51 = vpop.f32.mrf.mxu1 }
0x18d4   :  { %v8411_v52 = vadd.f32 %v8407_v50, %v8115_v39 }
0x18d5   :  { %v10610_v53 = vpop.f32.mrf.mxu0  ;;  %v10621_v54 = vpop.f32.mrf.mxu1 }
0x18db   :  { %v8551_v20 = vpop.f32.mrf.mxu0 }
0x18dc   :  { %v8552_v37 = vadd.f32 %v8551_v20, %v8478_v51 }
0x18dd   :  { %v10632_v55 = vpop.f32.mrf.mxu0 }
0x18de   :  { %v8555_v46 = vadd.f32 %v12730_v28, %v8552_v37 }
0x18e0   :  { %10757 = vtanh.f32 %v8555_v46 }
0x18ed   :  { %v10758_v56 = vpop.eup %10757 }
0x18ee   :  { %10642 = vmatmul.mubr.msk.f32.vlgmr.msra.gmra.mxu1 %vm360_vm2, %v10758_v56 }
0x19ae   :  { %v8630_v57 = vpop.f32.mrf.mxu1 }
0x19af   :  { %v8634_v5 = vadd.f32 %v8630_v57, %v8411_v52 }
0x19b0   :  { %v10643_v21 = vpop.f32.mrf.mxu1 }
0x19b1   :  { %8636 = vst.msk [vmem:[#allocation4] sm:$0xff] %vm8635_vm3, %v8634_v5 }
0x19b2   :  { %10809 = shalt.err (!%p10806_p4)
}
0x19b3   :  { %8646 = dma.vmem_to_hbm [thread:$0]  %s8644_s7, 128, %s12839_s9, [#allocation5]  }
0x19b4   :  { %10818 = dma.done.wait [#allocation5], 128  }
0x19b5   :  { %10819 = vsyncadd [#allocation5], 4294967168 }
0x19b6   :  { %8650 = vsyncpa [#allocation5], 1 }

</bundles_post_ra>
